<compile_context>
chip_gen: v6e
topology: v6e:2x2x1
jax: 0.10.0
libtpu: 0.0.40
codegen_flags: <defaults>
</compile_context>

<pallas_src>
import jax
import jax.numpy as jnp
from jax.experimental import pallas as pl
from jax.experimental.pallas import tpu as pltpu


def _round_up(x, m):
    return ((x + m - 1) // m) * m


# ------------------------- fused ConvBlock kernel ---------------------------
def _conv_block_kernel(x_ref, w_ref, b_ref, o_ref, act_a, act_b, p_scr):
    # x_ref:   (1, H, W, C)        lane-dense (channel-padded) input, one batch element
    # w_ref:   (L, 3, 3*C, C)      per-layer weights; contraction dim packs (kx, ci)
    # b_ref:   (L, C)              per-layer bias (zero in padded channels)
    # o_ref:   (1, H//2, W//2, C)  pooled output
    # act_a/b: (H+2, W+2, C)       VMEM ping-pong activations with 1-px zero halo
    # p_scr:   (H+2, W, 3*C)       kx-packed im2col slab (rebuilt per layer)
    _, H, W, C = x_ref.shape
    n_layers = w_ref.shape[0]
    Ho, Wo = H // 2, W // 2
    mxu_dtype = w_ref.dtype

    # Zero halos (cheap: ~2 x 160KB of contiguous vst). Interiors are fully overwritten
    # every layer, halos are never written again -> they stay zero (this replaces the
    # host-side per-layer jnp.pad). Done unconditionally so each megacore shard of the
    # batch axis initializes its own scratch.
    act_a[...] = jnp.zeros_like(act_a)
    act_b[...] = jnp.zeros_like(act_b)
    act_a[1:H + 1, 1:W + 1, :] = x_ref[0].astype(act_a.dtype)

    def conv_out(src, l):
        """bias-free conv output (H*W, C) f32 for layer l reading from `src`."""
        # Pack the 3 kx-shifted windows once (reused across all 3 ky taps). Lane
        # offsets are multiples of C=128 -> lane-aligned stores.
        p_scr[:, :, 0 * C:1 * C] = src[:, 0:W, :]
        p_scr[:, :, 1 * C:2 * C] = src[:, 1:W + 1, :]
        p_scr[:, :, 2 * C:3 * C] = src[:, 2:W + 2, :]
        acc = None
        for ky in range(3):                        # ky slices the leading axis -> free
            lhs = p_scr[ky:ky + H, :, :].reshape(H * W, 3 * C)
            d = jnp.dot(lhs.astype(mxu_dtype), w_ref[l, ky],
                        preferred_element_type=jnp.float32)
            acc = d if acc is None else acc + d
        return acc

    src, dst = act_a, act_b
    for l in range(n_layers):                      # static unroll (n_layers is small)
        out = jnp.maximum(conv_out(src, l) + b_ref[l:l + 1, :], 0.0)   # bias + ReLU
        if l < n_layers - 1:
            # Write into the padded layout of the other ping-pong buffer and swap.
            dst[1:H + 1, 1:W + 1, :] = out.reshape(H, W, C).astype(dst.dtype)
            src, dst = dst, src
        else:
            # Fused 2x2 max-pool epilogue directly on the last conv's output value
            # (no write-back into the padded buffer, no reload).
            fin = out.reshape(Ho, 2, W, C)
            hp = jnp.maximum(fin[:, 0], fin[:, 1])           # pool along H (slab select)
            wp = hp.reshape(Ho, Wo, 2, C)
            pooled = jnp.maximum(wp[:, :, 0], wp[:, :, 1])   # pool along W
            o_ref[...] = pooled[None].astype(o_ref.dtype)


# ------------------------------- wrapper ------------------------------------
def conv_block_forward(x_nchw, weights, biases, compute_dtype=jnp.float32):
    """Pallas equivalent of ConvBlock.forward; x_nchw is PyTorch-style NCHW.

    compute_dtype: MXU operand dtype. jnp.float32 keeps tight parity with the f32
    reference; set jnp.bfloat16 on v6e/v7x for higher MXU throughput (accumulation
    stays f32 either way).
    """
    N, Cin, H, W = x_nchw.shape
    assert H % 2 == 0 and W % 2 == 0, "even spatial dims expected for MaxPool2d(2,2)"
    # TODO(synk): odd H/W (PyTorch floors the pooled size) would need cropping last row/col.
    n_layers = len(weights)
    Cout = weights[0].shape[-1]
    C = _round_up(max(Cin, Cout), 128)             # lane-dense internal channel count
    Ho, Wo = H // 2, W // 2

    # One-time layout plumbing: NCHW -> NHWC and pad channels to the lane width.
    x = jnp.transpose(x_nchw, (0, 2, 3, 1))
    x = jnp.pad(x, ((0, 0), (0, 0), (0, 0), (0, C - Cin)))

    # Pack per-layer HWIO weights into (L, 3, 3*C, C); contraction dim packs (kx, ci).
    w_list, b_list = [], []
    for w, b in zip(weights, biases):
        ci, co = w.shape[2], w.shape[3]
        wpad = jnp.zeros((3, 3, C, C), compute_dtype)
        wpad = wpad.at[:, :, :ci, :co].set(w.astype(compute_dtype))
        w_list.append(wpad.reshape(3, 3 * C, C))
        b_list.append(jnp.zeros((C,), jnp.float32).at[:co].set(b.astype(jnp.float32)))
    w_packed = jnp.stack(w_list)                   # (L, 3, 3*C, C) -- grid-invariant, DMA'd once
    b_packed = jnp.stack(b_list)                   # (L, C)

    out = pl.pallas_call(
        _conv_block_kernel,
        out_shape=jax.ShapeDtypeStruct((N, Ho, Wo, C), x_nchw.dtype),
        grid=(N,),
        in_specs=[
            pl.BlockSpec((1, H, W, C), lambda n: (n, 0, 0, 0)),
            pl.BlockSpec((n_layers, 3, 3 * C, C), lambda n: (0, 0, 0, 0)),
            pl.BlockSpec((n_layers, C), lambda n: (0, 0)),
        ],
        out_specs=pl.BlockSpec((1, Ho, Wo, C), lambda n: (n, 0, 0, 0)),
        scratch_shapes=[
            pltpu.VMEM((H + 2, W + 2, C), jnp.float32),   # activation ping
            pltpu.VMEM((H + 2, W + 2, C), jnp.float32),   # activation pong
            pltpu.VMEM((H + 2, W, 3 * C), jnp.float32),   # kx-packed im2col slab
        ],
        compiler_params=pltpu.CompilerParams(
            dimension_semantics=("parallel",),            # batch axis -> megacore shardable
            vmem_limit_bytes=32 * 1024 * 1024,
        ),
    )(x, w_packed, b_packed)

    out = out[..., :Cout]                          # drop lane padding
    return jnp.transpose(out, (0, 3, 1, 2))        # NHWC -> NCHW


# ------------------------------- init / ref ----------------------------------
def init_params(key, in_channels, out_channels, n_layers):
    """Deterministic PyTorch-like (kaiming-uniform-ish) init. Weights HWIO."""
    weights, biases = [], []
    cin = in_channels
    for _ in range(n_layers):
        key, kw, kb = jax.random.split(key, 3)
        bound = 1.0 / float(jnp.sqrt(cin * 9))
        w = jax.random.uniform(kw, (3, 3, cin, out_channels), jnp.float32,
                               -bound, bound)
        b = jax.random.uniform(kb, (out_channels,), jnp.float32, -bound, bound)
        weights.append(w)
        biases.append(b)
        cin = out_channels
    return weights, biases


def _reference_forward(x_nchw, weights, biases):
    """Pure-JAX reference (lax conv + reduce_window) for correctness check."""
    x = jnp.transpose(x_nchw, (0, 2, 3, 1))
    for w, b in zip(weights, biases):
        x = jax.lax.conv_general_dilated(
            x, w, window_strides=(1, 1), padding="SAME",
            dimension_numbers=("NHWC", "HWIO", "NHWC"))
        x = jnp.maximum(x + b, 0.0)
    x = jax.lax.reduce_window(x, -jnp.inf, jax.lax.max,
                              (1, 2, 2, 1), (1, 2, 2, 1), "VALID")
    return jnp.transpose(x, (0, 3, 1, 2))


if __name__ == "__main__":
    key = jax.random.PRNGKey(0)
    key, kx = jax.random.split(key)

    batch, in_channels, out_channels, spatial, n_layers = 2, 4, 8, 16, 2
    x = jax.random.normal(kx, (batch, in_channels, spatial, spatial),
                          dtype=jnp.float32)
    weights, biases = init_params(key, in_channels, out_channels, n_layers)

    fwd = jax.jit(conv_block_forward)
    out = jax.block_until_ready(fwd(x, weights, biases))

    ref = _reference_forward(x, weights, biases)
    assert out.shape == (batch, out_channels, spatial // 2, spatial // 2)
    assert jnp.allclose(out, ref, rtol=1e-4, atol=1e-4)

    print("KERNEL_OK")
</pallas_src>

<mosaic_0001>
module attributes {stable_mosaic.version = 11 : i64} {
  func.func @_conv_block_kernel(%arg0: i32, %arg1: memref<1x16x16x128xf32, #tpu.memory_space<vmem>>, %arg2: memref<2x3x384x128xf32, #tpu.memory_space<vmem>>, %arg3: memref<2x128xf32, #tpu.memory_space<vmem>>, %arg4: memref<1x8x8x128xf32, #tpu.memory_space<vmem>>, %arg5: memref<18x18x128xf32, #tpu.memory_space<vmem>>, %arg6: memref<18x18x128xf32, #tpu.memory_space<vmem>>, %arg7: memref<18x16x384xf32, #tpu.memory_space<vmem>>) attributes {dimension_semantics = [#tpu.dimension_semantics<parallel>], iteration_bounds = array<i64: 2>, scalar_prefetch = 0 : i64, scratch_operands = 3 : i64, tpu.core_type = #tpu.core_type<tc>, window_params = [{transform_indices = @transform_0, window_bounds = array<i64: 1, 16, 16, 128>}, {pipeline_mode = #tpu.pipeline_mode<synchronous>, transform_indices = @transform_1, window_bounds = array<i64: 2, 3, 384, 128>}, {pipeline_mode = #tpu.pipeline_mode<synchronous>, transform_indices = @transform_2, window_bounds = array<i64: 2, 128>}, {transform_indices = @transform_3, window_bounds = array<i64: 1, 8, 8, 128>}]} {
    %cst = arith.constant 0.000000e+00 : f32
    %0 = vector.broadcast %cst : f32 to vector<18x18x128xf32>
    %c0 = arith.constant 0 : index
    %c0_0 = arith.constant 0 : index
    %c0_1 = arith.constant 0 : index
    %1 = vector.load %arg5[%c0, %c0_0, %c0_1] : memref<18x18x128xf32, #tpu.memory_space<vmem>>, vector<18x18x128xf32>
    tpu.vector_store %arg5[%c0, %c0_0, %c0_1], %0 {strides = array<i32>} : memref<18x18x128xf32, #tpu.memory_space<vmem>>, vector<18x18x128xf32>,
    %cst_2 = arith.constant 0.000000e+00 : f32
    %2 = vector.broadcast %cst_2 : f32 to vector<18x18x128xf32>
    %c0_3 = arith.constant 0 : index
    %c0_4 = arith.constant 0 : index
    %c0_5 = arith.constant 0 : index
    %3 = vector.load %arg6[%c0_3, %c0_4, %c0_5] : memref<18x18x128xf32, #tpu.memory_space<vmem>>, vector<18x18x128xf32>
    tpu.vector_store %arg6[%c0_3, %c0_4, %c0_5], %2 {strides = array<i32>} : memref<18x18x128xf32, #tpu.memory_space<vmem>>, vector<18x18x128xf32>,
    %c0_6 = arith.constant 0 : index
    %c0_7 = arith.constant 0 : index
    %c0_8 = arith.constant 0 : index
    %c0_9 = arith.constant 0 : index
    %4 = vector.load %arg1[%c0_6, %c0_7, %c0_8, %c0_9] : memref<1x16x16x128xf32, #tpu.memory_space<vmem>>, vector<1x16x16x128xf32>
    %5 = vector.shape_cast %4 : vector<1x16x16x128xf32> to vector<16x16x128xf32>
    %c1 = arith.constant 1 : index
    %c1_10 = arith.constant 1 : index
    %c0_11 = arith.constant 0 : index
    %6 = vector.load %arg5[%c1, %c1_10, %c0_11] : memref<18x18x128xf32, #tpu.memory_space<vmem>>, vector<16x16x128xf32>
    tpu.vector_store %arg5[%c1, %c1_10, %c0_11], %5 {strides = array<i32>} : memref<18x18x128xf32, #tpu.memory_space<vmem>>, vector<16x16x128xf32>,
    %c0_12 = arith.constant 0 : index
    %c0_13 = arith.constant 0 : index
    %c0_14 = arith.constant 0 : index
    %7 = vector.load %arg5[%c0_12, %c0_13, %c0_14] : memref<18x18x128xf32, #tpu.memory_space<vmem>>, vector<18x16x128xf32>
    %c0_15 = arith.constant 0 : index
    %c0_16 = arith.constant 0 : index
    %c0_17 = arith.constant 0 : index
    %8 = vector.load %arg7[%c0_15, %c0_16, %c0_17] : memref<18x16x384xf32, #tpu.memory_space<vmem>>, vector<18x16x128xf32>
    tpu.vector_store %arg7[%c0_15, %c0_16, %c0_17], %7 {strides = array<i32>} : memref<18x16x384xf32, #tpu.memory_space<vmem>>, vector<18x16x128xf32>,
    %c0_18 = arith.constant 0 : index
    %c1_19 = arith.constant 1 : index
    %c0_20 = arith.constant 0 : index
    %9 = vector.load %arg5[%c0_18, %c1_19, %c0_20] : memref<18x18x128xf32, #tpu.memory_space<vmem>>, vector<18x16x128xf32>
    %c0_21 = arith.constant 0 : index
    %c0_22 = arith.constant 0 : index
    %c128 = arith.constant 128 : index
    %10 = vector.load %arg7[%c0_21, %c0_22, %c128] : memref<18x16x384xf32, #tpu.memory_space<vmem>>, vector<18x16x128xf32>
    tpu.vector_store %arg7[%c0_21, %c0_22, %c128], %9 {strides = array<i32>} : memref<18x16x384xf32, #tpu.memory_space<vmem>>, vector<18x16x128xf32>,
    %c0_23 = arith.constant 0 : index
    %c2 = arith.constant 2 : index
    %c0_24 = arith.constant 0 : index
    %11 = vector.load %arg5[%c0_23, %c2, %c0_24] : memref<18x18x128xf32, #tpu.memory_space<vmem>>, vector<18x16x128xf32>
    %c0_25 = arith.constant 0 : index
    %c0_26 = arith.constant 0 : index
    %c256 = arith.constant 256 : index
    %12 = vector.load %arg7[%c0_25, %c0_26, %c256] : memref<18x16x384xf32, #tpu.memory_space<vmem>>, vector<18x16x128xf32>
    tpu.vector_store %arg7[%c0_25, %c0_26, %c256], %11 {strides = array<i32>} : memref<18x16x384xf32, #tpu.memory_space<vmem>>, vector<18x16x128xf32>,
    %c0_27 = arith.constant 0 : index
    %c0_28 = arith.constant 0 : index
    %c0_29 = arith.constant 0 : index
    %13 = vector.load %arg7[%c0_27, %c0_28, %c0_29] : memref<18x16x384xf32, #tpu.memory_space<vmem>>, vector<16x16x384xf32>
    %14 = vector.shape_cast %13 : vector<16x16x384xf32> to vector<256x384xf32>
    %c0_30 = arith.constant 0 : index
    %c0_31 = arith.constant 0 : index
    %c0_32 = arith.constant 0 : index
    %c0_33 = arith.constant 0 : index
    %15 = vector.load %arg2[%c0_30, %c0_31, %c0_32, %c0_33] : memref<2x3x384x128xf32, #tpu.memory_space<vmem>>, vector<1x1x384x128xf32>
    %16 = vector.shape_cast %15 : vector<1x1x384x128xf32> to vector<384x128xf32>
    %cst_34 = arith.constant dense<0.000000e+00> : vector<256x128xf32>
    %17 = tpu.matmul %14, %16, %cst_34 {dimension_numbers = #tpu.dot_dimension_numbers<[1], [0], [0], [1], [0, 0, 1, 1], [], []>} : vector<256x384xf32>, vector<384x128xf32>, vector<256x128xf32> -> vector<256x128xf32>
    %c1_35 = arith.constant 1 : index
    %c0_36 = arith.constant 0 : index
    %c0_37 = arith.constant 0 : index
    %18 = vector.load %arg7[%c1_35, %c0_36, %c0_37] : memref<18x16x384xf32, #tpu.memory_space<vmem>>, vector<16x16x384xf32>
    %19 = vector.shape_cast %18 : vector<16x16x384xf32> to vector<256x384xf32>
    %c0_38 = arith.constant 0 : index
    %c1_39 = arith.constant 1 : index
    %c0_40 = arith.constant 0 : index
    %c0_41 = arith.constant 0 : index
    %20 = vector.load %arg2[%c0_38, %c1_39, %c0_40, %c0_41] : memref<2x3x384x128xf32, #tpu.memory_space<vmem>>, vector<1x1x384x128xf32>
    %21 = vector.shape_cast %20 : vector<1x1x384x128xf32> to vector<384x128xf32>
    %cst_42 = arith.constant dense<0.000000e+00> : vector<256x128xf32>
    %22 = tpu.matmul %19, %21, %cst_42 {dimension_numbers = #tpu.dot_dimension_numbers<[1], [0], [0], [1], [0, 0, 1, 1], [], []>} : vector<256x384xf32>, vector<384x128xf32>, vector<256x128xf32> -> vector<256x128xf32>
    %23 = arith.addf %17, %22 : vector<256x128xf32>
    %c2_43 = arith.constant 2 : index
    %c0_44 = arith.constant 0 : index
    %c0_45 = arith.constant 0 : index
    %24 = vector.load %arg7[%c2_43, %c0_44, %c0_45] : memref<18x16x384xf32, #tpu.memory_space<vmem>>, vector<16x16x384xf32>
    %25 = vector.shape_cast %24 : vector<16x16x384xf32> to vector<256x384xf32>
    %c0_46 = arith.constant 0 : index
    %c2_47 = arith.constant 2 : index
    %c0_48 = arith.constant 0 : index
    %c0_49 = arith.constant 0 : index
    %26 = vector.load %arg2[%c0_46, %c2_47, %c0_48, %c0_49] : memref<2x3x384x128xf32, #tpu.memory_space<vmem>>, vector<1x1x384x128xf32>
    %27 = vector.shape_cast %26 : vector<1x1x384x128xf32> to vector<384x128xf32>
    %cst_50 = arith.constant dense<0.000000e+00> : vector<256x128xf32>
    %28 = tpu.matmul %25, %27, %cst_50 {dimension_numbers = #tpu.dot_dimension_numbers<[1], [0], [0], [1], [0, 0, 1, 1], [], []>} : vector<256x384xf32>, vector<384x128xf32>, vector<256x128xf32> -> vector<256x128xf32>
    %29 = arith.addf %23, %28 : vector<256x128xf32>
    %c0_51 = arith.constant 0 : index
    %c0_52 = arith.constant 0 : index
    %30 = vector.load %arg3[%c0_51, %c0_52] : memref<2x128xf32, #tpu.memory_space<vmem>>, vector<1x128xf32>
    %31 = vector.broadcast %30 : vector<1x128xf32> to vector<256x128xf32>
    %32 = arith.addf %29, %31 : vector<256x128xf32>
    %cst_53 = arith.constant 0.000000e+00 : f32
    %33 = vector.broadcast %cst_53 : f32 to vector<256x128xf32>
    %34 = arith.maximumf %32, %33 : vector<256x128xf32>
    %35 = vector.shape_cast %34 : vector<256x128xf32> to vector<16x16x128xf32>
    %c1_54 = arith.constant 1 : index
    %c1_55 = arith.constant 1 : index
    %c0_56 = arith.constant 0 : index
    %36 = vector.load %arg6[%c1_54, %c1_55, %c0_56] : memref<18x18x128xf32, #tpu.memory_space<vmem>>, vector<16x16x128xf32>
    tpu.vector_store %arg6[%c1_54, %c1_55, %c0_56], %35 {strides = array<i32>} : memref<18x18x128xf32, #tpu.memory_space<vmem>>, vector<16x16x128xf32>,
    %c0_57 = arith.constant 0 : index
    %c0_58 = arith.constant 0 : index
    %c0_59 = arith.constant 0 : index
    %37 = vector.load %arg6[%c0_57, %c0_58, %c0_59] : memref<18x18x128xf32, #tpu.memory_space<vmem>>, vector<18x16x128xf32>
    %c0_60 = arith.constant 0 : index
    %c0_61 = arith.constant 0 : index
    %c0_62 = arith.constant 0 : index
    %38 = vector.load %arg7[%c0_60, %c0_61, %c0_62] : memref<18x16x384xf32, #tpu.memory_space<vmem>>, vector<18x16x128xf32>
    tpu.vector_store %arg7[%c0_60, %c0_61, %c0_62], %37 {strides = array<i32>} : memref<18x16x384xf32, #tpu.memory_space<vmem>>, vector<18x16x128xf32>,
    %c0_63 = arith.constant 0 : index
    %c1_64 = arith.constant 1 : index
    %c0_65 = arith.constant 0 : index
    %39 = vector.load %arg6[%c0_63, %c1_64, %c0_65] : memref<18x18x128xf32, #tpu.memory_space<vmem>>, vector<18x16x128xf32>
    %c0_66 = arith.constant 0 : index
    %c0_67 = arith.constant 0 : index
    %c128_68 = arith.constant 128 : index
    %40 = vector.load %arg7[%c0_66, %c0_67, %c128_68] : memref<18x16x384xf32, #tpu.memory_space<vmem>>, vector<18x16x128xf32>
    tpu.vector_store %arg7[%c0_66, %c0_67, %c128_68], %39 {strides = array<i32>} : memref<18x16x384xf32, #tpu.memory_space<vmem>>, vector<18x16x128xf32>,
    %c0_69 = arith.constant 0 : index
    %c2_70 = arith.constant 2 : index
    %c0_71 = arith.constant 0 : index
    %41 = vector.load %arg6[%c0_69, %c2_70, %c0_71] : memref<18x18x128xf32, #tpu.memory_space<vmem>>, vector<18x16x128xf32>
    %c0_72 = arith.constant 0 : index
    %c0_73 = arith.constant 0 : index
    %c256_74 = arith.constant 256 : index
    %42 = vector.load %arg7[%c0_72, %c0_73, %c256_74] : memref<18x16x384xf32, #tpu.memory_space<vmem>>, vector<18x16x128xf32>
    tpu.vector_store %arg7[%c0_72, %c0_73, %c256_74], %41 {strides = array<i32>} : memref<18x16x384xf32, #tpu.memory_space<vmem>>, vector<18x16x128xf32>,
    %c0_75 = arith.constant 0 : index
    %c0_76 = arith.constant 0 : index
    %c0_77 = arith.constant 0 : index
    %43 = vector.load %arg7[%c0_75, %c0_76, %c0_77] : memref<18x16x384xf32, #tpu.memory_space<vmem>>, vector<16x16x384xf32>
    %44 = vector.shape_cast %43 : vector<16x16x384xf32> to vector<256x384xf32>
    %c1_78 = arith.constant 1 : index
    %c0_79 = arith.constant 0 : index
    %c0_80 = arith.constant 0 : index
    %c0_81 = arith.constant 0 : index
    %45 = vector.load %arg2[%c1_78, %c0_79, %c0_80, %c0_81] : memref<2x3x384x128xf32, #tpu.memory_space<vmem>>, vector<1x1x384x128xf32>
    %46 = vector.shape_cast %45 : vector<1x1x384x128xf32> to vector<384x128xf32>
    %cst_82 = arith.constant dense<0.000000e+00> : vector<256x128xf32>
    %47 = tpu.matmul %44, %46, %cst_82 {dimension_numbers = #tpu.dot_dimension_numbers<[1], [0], [0], [1], [0, 0, 1, 1], [], []>} : vector<256x384xf32>, vector<384x128xf32>, vector<256x128xf32> -> vector<256x128xf32>
    %c1_83 = arith.constant 1 : index
    %c0_84 = arith.constant 0 : index
    %c0_85 = arith.constant 0 : index
    %48 = vector.load %arg7[%c1_83, %c0_84, %c0_85] : memref<18x16x384xf32, #tpu.memory_space<vmem>>, vector<16x16x384xf32>
    %49 = vector.shape_cast %48 : vector<16x16x384xf32> to vector<256x384xf32>
    %c1_86 = arith.constant 1 : index
    %c1_87 = arith.constant 1 : index
    %c0_88 = arith.constant 0 : index
    %c0_89 = arith.constant 0 : index
    %50 = vector.load %arg2[%c1_86, %c1_87, %c0_88, %c0_89] : memref<2x3x384x128xf32, #tpu.memory_space<vmem>>, vector<1x1x384x128xf32>
    %51 = vector.shape_cast %50 : vector<1x1x384x128xf32> to vector<384x128xf32>
    %cst_90 = arith.constant dense<0.000000e+00> : vector<256x128xf32>
    %52 = tpu.matmul %49, %51, %cst_90 {dimension_numbers = #tpu.dot_dimension_numbers<[1], [0], [0], [1], [0, 0, 1, 1], [], []>} : vector<256x384xf32>, vector<384x128xf32>, vector<256x128xf32> -> vector<256x128xf32>
    %53 = arith.addf %47, %52 : vector<256x128xf32>
    %c2_91 = arith.constant 2 : index
    %c0_92 = arith.constant 0 : index
    %c0_93 = arith.constant 0 : index
    %54 = vector.load %arg7[%c2_91, %c0_92, %c0_93] : memref<18x16x384xf32, #tpu.memory_space<vmem>>, vector<16x16x384xf32>
    %55 = vector.shape_cast %54 : vector<16x16x384xf32> to vector<256x384xf32>
    %c1_94 = arith.constant 1 : index
    %c2_95 = arith.constant 2 : index
    %c0_96 = arith.constant 0 : index
    %c0_97 = arith.constant 0 : index
    %56 = vector.load %arg2[%c1_94, %c2_95, %c0_96, %c0_97] : memref<2x3x384x128xf32, #tpu.memory_space<vmem>>, vector<1x1x384x128xf32>
    %57 = vector.shape_cast %56 : vector<1x1x384x128xf32> to vector<384x128xf32>
    %cst_98 = arith.constant dense<0.000000e+00> : vector<256x128xf32>
    %58 = tpu.matmul %55, %57, %cst_98 {dimension_numbers = #tpu.dot_dimension_numbers<[1], [0], [0], [1], [0, 0, 1, 1], [], []>} : vector<256x384xf32>, vector<384x128xf32>, vector<256x128xf32> -> vector<256x128xf32>
    %59 = arith.addf %53, %58 : vector<256x128xf32>
    %c1_99 = arith.constant 1 : index
    %c0_100 = arith.constant 0 : index
    %60 = vector.load %arg3[%c1_99, %c0_100] : memref<2x128xf32, #tpu.memory_space<vmem>>, vector<1x128xf32>
    %61 = vector.broadcast %60 : vector<1x128xf32> to vector<256x128xf32>
    %62 = arith.addf %59, %61 : vector<256x128xf32>
    %cst_101 = arith.constant 0.000000e+00 : f32
    %63 = vector.broadcast %cst_101 : f32 to vector<256x128xf32>
    %64 = arith.maximumf %62, %63 : vector<256x128xf32>
    %65 = vector.shape_cast %64 : vector<256x128xf32> to vector<8x2x16x128xf32>
    %66 = vector.extract_strided_slice %65 {offsets = [0, 0, 0, 0], sizes = [8, 1, 16, 128], strides = [1, 1, 1, 1]} : vector<8x2x16x128xf32> to vector<8x1x16x128xf32>
    %67 = vector.shape_cast %66 : vector<8x1x16x128xf32> to vector<8x16x128xf32>
    %68 = vector.extract_strided_slice %65 {offsets = [0, 1, 0, 0], sizes = [8, 1, 16, 128], strides = [1, 1, 1, 1]} : vector<8x2x16x128xf32> to vector<8x1x16x128xf32>
    %69 = vector.shape_cast %68 : vector<8x1x16x128xf32> to vector<8x16x128xf32>
    %70 = arith.maximumf %67, %69 : vector<8x16x128xf32>
    %71 = vector.shape_cast %70 : vector<8x16x128xf32> to vector<8x8x2x128xf32>
    %72 = vector.extract_strided_slice %71 {offsets = [0, 0, 0, 0], sizes = [8, 8, 1, 128], strides = [1, 1, 1, 1]} : vector<8x8x2x128xf32> to vector<8x8x1x128xf32>
    %73 = vector.shape_cast %72 : vector<8x8x1x128xf32> to vector<8x8x128xf32>
    %74 = vector.extract_strided_slice %71 {offsets = [0, 0, 1, 0], sizes = [8, 8, 1, 128], strides = [1, 1, 1, 1]} : vector<8x8x2x128xf32> to vector<8x8x1x128xf32>
    %75 = vector.shape_cast %74 : vector<8x8x1x128xf32> to vector<8x8x128xf32>
    %76 = arith.maximumf %73, %75 : vector<8x8x128xf32>
    %77 = vector.shape_cast %76 : vector<8x8x128xf32> to vector<1x8x8x128xf32>
    %c0_102 = arith.constant 0 : index
    %c0_103 = arith.constant 0 : index
    %c0_104 = arith.constant 0 : index
    %c0_105 = arith.constant 0 : index
    %78 = vector.load %arg4[%c0_102, %c0_103, %c0_104, %c0_105] : memref<1x8x8x128xf32, #tpu.memory_space<vmem>>, vector<1x8x8x128xf32>
    tpu.vector_store %arg4[%c0_102, %c0_103, %c0_104, %c0_105], %77 {strides = array<i32>} : memref<1x8x8x128xf32, #tpu.memory_space<vmem>>, vector<1x8x8x128xf32>,
    return
  }
  func.func @transform_0(%arg0: i32) -> (i32, i32, i32, i32) {
    %c0_i32 = arith.constant 0 : i32
    %c0_i32_0 = arith.constant 0 : i32
    %c0_i32_1 = arith.constant 0 : i32
    %c0_i32_2 = arith.constant 0 : i32
    return %arg0, %c0_i32, %c0_i32_0, %c0_i32_1 : i32, i32, i32, i32
  }
  func.func @transform_1(%arg0: i32) -> (i32, i32, i32, i32) {
    %c0_i32 = arith.constant 0 : i32
    %c0_i32_0 = arith.constant 0 : i32
    %c0_i32_1 = arith.constant 0 : i32
    %c0_i32_2 = arith.constant 0 : i32
    %c0_i32_3 = arith.constant 0 : i32
    return %c0_i32, %c0_i32_0, %c0_i32_1, %c0_i32_2 : i32, i32, i32, i32
  }
  func.func @transform_2(%arg0: i32) -> (i32, i32) {
    %c0_i32 = arith.constant 0 : i32
    %c0_i32_0 = arith.constant 0 : i32
    %c0_i32_1 = arith.constant 0 : i32
    return %c0_i32, %c0_i32_0 : i32, i32
  }
  func.func @transform_3(%arg0: i32) -> (i32, i32, i32, i32) {
    %c0_i32 = arith.constant 0 : i32
    %c0_i32_0 = arith.constant 0 : i32
    %c0_i32_1 = arith.constant 0 : i32
    %c0_i32_2 = arith.constant 0 : i32
    return %arg0, %c0_i32, %c0_i32_0, %c0_i32_1 : i32, i32, i32, i32
  }
}

</mosaic_0001>

<bundles_post_ra>
// kernel: conv_block_forward.1
= control target key start
LH: loop header
LB: loop body
LE: loop exit
PB: predicated region body
PF: predicated region fallthrough
CT: control target
= control target key end

     0   :  { %s6920_s12 = smov 0   ;;  %s10006_s0 = inlined_call_operand.vmem [shape: f32[2,16,16,128], index: 0, kind: input, shape index: {}]   ;;  %s10007_s1 = inlined_call_operand.vmem [shape: f32[2,3,384,128], index: 1, kind: input, shape index: {}]   ;;  %s10008_s2 = inlined_call_operand.vmem [shape: f32[2,128], index: 2, kind: input, shape index: {}]   ;;  %s10009_s3 = inlined_call_operand.vmem [shape: f32[2,8,8,128], index: 3, kind: output, shape index: {}]  }
   0x1 LB: > { %s5660_s13 = sadd.s32 4294967295, %s6896_s12   ;;  %p5664_p0 = scmp.ge.s32.totalorder %s6896_s12, 1  ;;  %s6896_s12 = sphi %s6920_s12, %s13_s12  }
   0x2   : > { %p137_p1 = scmp.lt.s32.totalorder %s6896_s12, 3 }
   0x4   : > { %p138_p2 = pnand %p5664_p0, %p137_p1 }
   0x6   : > { %141 = sbr.rel (%p138_p2) target bundleno = 1064 (0x428), region = 32 }
   0xb   : > { %v6931_v0 = vld [vmem:[%s10007_s1 + $0x2f8] sm:$0xff]  ;;  %v6941_v2 = vld [vmem:[%s10007_s1 + $0x2f0] sm:$0xff]  ;;  %p6945_p3 = scmp.lt.s32.totalorder %s5660_s13, 1  ;;  %v6898_v3 = vmov 0.0   ;;  %v5714_v5 = vld [vmem:[%s10007_s1 + $0x2e8] sm:$0xff]  ;;  %vm5526_vm0 = vcmask 1041409  }
   0xc   : > { %v6936_v1 = vld [vmem:[%s10007_s1 + $0x1f8] sm:$0xff]  ;;  %850 = vmatprep.subr.mxu0 %v6898_v3  ;;  %171 = vst [vmem:[#allocation2] sm:$0xff] %v6898_v3  ;;  %172 = vst [vmem:[#allocation2 + $0x8] sm:$0xff] %v6898_v3  ;;  %6267 = vmatprep.subr.mxu1 %v6931_v0  ;;  %v5683_v4 = vld [vmem:[%s10007_s1 + $0x1f0] sm:$0xff]  ;;  %vm5528_vm1 = vcmask 1042434   ;;  %vm5530_vm2 = vcmask 1043459  }
   0xd   : > { %173 = vst [vmem:[#allocation2 + $0x10] sm:$0x3] %v6898_v3  ;;  %174 = vst [vmem:[#allocation2 + $0x18] sm:$0xff] %v6898_v3  ;;  %851 = vmatpush1.msra.mxu0 %v6936_v1  ;;  %6268 = vmatpush3.msra.mxu1 %v6931_v0  ;;  %s10142_s13 = smov (!%p6945_p3, %s5660_s13), 1  ;;  %v5682_v6 = vld [vmem:[%s10007_s1 + $0x1e8] sm:$0xff]  ;;  %v5713_v7 = vld [vmem:[%s10007_s1 + $0x2e0] sm:$0xff] }
   0xe   : > { %175 = vst [vmem:[#allocation2 + $0x20] sm:$0xff] %v6898_v3  ;;  %176 = vst [vmem:[#allocation2 + $0x28] sm:$0x3] %v6898_v3  ;;  %852 = vmatprep.subr.mxu0 %v6898_v3  ;;  %6269 = vmatprep.subr.mxu1 %v6941_v2  ;;  %s5977_s29 = sshll.u32 %s10142_s13, 8  ;;  %v5681_v8 = vld [vmem:[%s10007_s1 + $0x1e0] sm:$0xff]  ;;  %v5712_v9 = vld [vmem:[%s10007_s1 + $0x2d8] sm:$0xff] }
   0xf   : > { %177 = vst [vmem:[#allocation2 + $0x30] sm:$0xff] %v6898_v3  ;;  %178 = vst [vmem:[#allocation2 + $0x38] sm:$0xff] %v6898_v3  ;;  %853 = vmatpush1.msra.mxu0 %v5683_v4  ;;  %6270 = vmatpush3.msra.mxu1 %v6941_v2  ;;  %v5680_v10 = vld [vmem:[%s10007_s1 + $0x1d8] sm:$0xff]  ;;  %s7097_s11 = scalar_lea.vmem %s10006_s0, %s5977_s29  ;;  %v5711_v11 = vld [vmem:[%s10007_s1 + $0x2d0] sm:$0xff]  ;;  %vm5532_vm3 = vcmask 1044484   ;;  %vm5534_vm4 = vcmask 1045509  }
  0x10   : > { %179 = vst [vmem:[#allocation2 + $0x40] sm:$0x3] %v6898_v3  ;;  %180 = vst [vmem:[#allocation2 + $0x48] sm:$0xff] %v6898_v3  ;;  %854 = vmatprep.subr.mxu0 %v6898_v3  ;;  %6271 = vmatprep.subr.mxu1 %v5714_v5  ;;  %v5679_v12 = vld [vmem:[%s10007_s1 + $0x1d0] sm:$0xff]  ;;  %v5710_v13 = vld [vmem:[%s10007_s1 + $0x2c8] sm:$0xff]  ;;  %vm5536_vm5 = vcmask 1046534  }
  0x11   : > { %181 = vst [vmem:[#allocation2 + $0x50] sm:$0xff] %v6898_v3  ;;  %182 = vst [vmem:[#allocation2 + $0x58] sm:$0x3] %v6898_v3  ;;  %855 = vmatpush1.msra.mxu0 %v5682_v6  ;;  %6272 = vmatpush3.msra.mxu1 %v5714_v5  ;;  %v7110_v14 = vld [vmem:[%s7097_s11] sm:$0xff]  ;;  %v5678_v15 = vld [vmem:[%s10007_s1 + $0x1c8] sm:$0xff]  ;;  %vm5538_vm6 = vcmask 1047559  }
  0x12   : > { %183 = vst [vmem:[#allocation2 + $0x60] sm:$0xff] %v6898_v3  ;;  %184 = vst [vmem:[#allocation2 + $0x68] sm:$0xff] %v6898_v3  ;;  %856 = vmatprep.subr.mxu0 %v6898_v3  ;;  %6273 = vmatprep.subr.mxu1 %v5713_v7  ;;  %v7117_v16 = vld [vmem:[%s7097_s11 + $0x8] sm:$0xff]  ;;  %v5709_v17 = vld [vmem:[%s10007_s1 + $0x2c0] sm:$0xff]  ;;  %s5978_s26 = sshll.u32 %s10142_s13, 6 }
  0x13   : > { %185 = vst [vmem:[#allocation2 + $0x70] sm:$0x3] %v6898_v3  ;;  %186 = vst [vmem:[#allocation2 + $0x78] sm:$0xff] %v6898_v3  ;;  %857 = vmatpush1.msra.mxu0 %v5681_v8  ;;  %6274 = vmatpush3.msra.mxu1 %v5713_v7  ;;  %v7125_v18 = vld [vmem:[%s7097_s11 + $0x10] sm:$0xff]  ;;  %v7128_v19 = vld [vmem:[%s7097_s11 + $0x18] sm:$0xff]  ;;  %s9736_s28 = scalar_lea.vmem %s10009_s3, %s5978_s26 }
  0x14   : > { %187 = vst [vmem:[#allocation2 + $0x80] sm:$0xff] %v6898_v3  ;;  %188 = vst [vmem:[#allocation2 + $0x88] sm:$0x3] %v6898_v3  ;;  %858 = vmatprep.subr.mxu0 %v6898_v3  ;;  %6275 = vmatprep.subr.mxu1 %v5712_v9  ;;  %v5677_v20 = vld [vmem:[%s10007_s1 + $0x1c0] sm:$0xff]  ;;  %v5708_v21 = vld [vmem:[%s10007_s1 + $0x2b8] sm:$0xff] }
  0x15   : > { %189 = vst [vmem:[#allocation2 + $0x90] sm:$0xff] %v6898_v3  ;;  %190 = vst [vmem:[#allocation2 + $0x98] sm:$0xff] %v6898_v3  ;;  %859 = vmatpush1.msra.mxu0 %v5680_v10  ;;  %6276 = vmatpush3.msra.mxu1 %v5712_v9  ;;  %v7140_v22 = vld [vmem:[%s7097_s11 + $0x20] sm:$0xff]  ;;  %v7143_v23 = vld [vmem:[%s7097_s11 + $0x28] sm:$0xff] }
  0x16   : > { %191 = vst [vmem:[#allocation2 + $0xa0] sm:$0x3] %v6898_v3  ;;  %192 = vst [vmem:[#allocation2 + $0xa8] sm:$0xff] %v6898_v3  ;;  %860 = vmatprep.subr.mxu0 %v6898_v3  ;;  %6277 = vmatprep.subr.mxu1 %v5711_v11  ;;  %v5676_v24 = vld [vmem:[%s10007_s1 + $0x1b8] sm:$0xff]  ;;  %v5707_v25 = vld [vmem:[%s10007_s1 + $0x2b0] sm:$0xff] }
  0x17   : > { %193 = vst [vmem:[#allocation2 + $0xb0] sm:$0xff] %v6898_v3  ;;  %194 = vst [vmem:[#allocation2 + $0xb8] sm:$0x3] %v6898_v3  ;;  %861 = vmatpush1.msra.mxu0 %v5679_v12  ;;  %6278 = vmatpush3.msra.mxu1 %v5711_v11  ;;  %v7155_v26 = vld [vmem:[%s7097_s11 + $0x30] sm:$0xff]  ;;  %v7158_v27 = vld [vmem:[%s7097_s11 + $0x38] sm:$0xff] }
  0x18   : > { %195 = vst [vmem:[#allocation2 + $0xc0] sm:$0xff] %v6898_v3  ;;  %196 = vst [vmem:[#allocation2 + $0xc8] sm:$0xff] %v6898_v3  ;;  %862 = vmatprep.subr.mxu0 %v6898_v3  ;;  %6279 = vmatprep.subr.mxu1 %v5710_v13  ;;  %v5675_v28 = vld [vmem:[%s10007_s1 + $0x1b0] sm:$0xff]  ;;  %v5706_v29 = vld [vmem:[%s10007_s1 + $0x2a8] sm:$0xff] }
  0x19   : > { %197 = vst [vmem:[#allocation2 + $0xd0] sm:$0x3] %v6898_v3  ;;  %198 = vst [vmem:[#allocation2 + $0xd8] sm:$0xff] %v6898_v3  ;;  %863 = vmatpush1.msra.mxu0 %v5678_v15  ;;  %6280 = vmatpush3.msra.mxu1 %v5710_v13  ;;  %v7170_v30 = vld [vmem:[%s7097_s11 + $0x40] sm:$0xff]  ;;  %v7173_v31 = vld [vmem:[%s7097_s11 + $0x48] sm:$0xff] }
  0x1a   : > { %199 = vst [vmem:[#allocation2 + $0xe0] sm:$0xff] %v6898_v3  ;;  %200 = vst [vmem:[#allocation2 + $0xe8] sm:$0x3] %v6898_v3  ;;  %864 = vmatprep.subr.mxu0 %v6898_v3  ;;  %6281 = vmatprep.subr.mxu1 %v5709_v17  ;;  %v5674_v32 = vld [vmem:[%s10007_s1 + $0x1a8] sm:$0xff]  ;;  %v5705_v33 = vld [vmem:[%s10007_s1 + $0x2a0] sm:$0xff] }
  0x1b   : > { %201 = vst [vmem:[#allocation2 + $0xf0] sm:$0xff] %v6898_v3  ;;  %202 = vst [vmem:[#allocation2 + $0xf8] sm:$0xff] %v6898_v3  ;;  %865 = vmatpush1.msra.mxu0 %v5677_v20  ;;  %6282 = vmatpush3.msra.mxu1 %v5709_v17  ;;  %v5673_v34 = vld [vmem:[%s10007_s1 + $0x1a0] sm:$0xff]  ;;  %v7189_v35 = vld [vmem:[%s7097_s11 + $0x50] sm:$0xff] }
  0x1c   : > { %203 = vst [vmem:[#allocation2 + $0x100] sm:$0x3] %v6898_v3  ;;  %204 = vst [vmem:[#allocation2 + $0x108] sm:$0xff] %v6898_v3  ;;  %866 = vmatprep.subr.mxu0 %v6898_v3  ;;  %6283 = vmatprep.subr.mxu1 %v5708_v21  ;;  %v5704_v36 = vld [vmem:[%s10007_s1 + $0x298] sm:$0xff]  ;;  %v5703_v39 = vld [vmem:[%s10007_s1 + $0x290] sm:$0xff] }
  0x1d   : > { %205 = vst [vmem:[#allocation2 + $0x110] sm:$0xff] %v6898_v3  ;;  %206 = vst [vmem:[#allocation2 + $0x118] sm:$0x3] %v6898_v3  ;;  %867 = vmatpush1.msra.mxu0 %v5676_v24  ;;  %6284 = vmatpush3.msra.mxu1 %v5708_v21  ;;  %v7195_v37 = vld [vmem:[%s7097_s11 + $0x58] sm:$0xff]  ;;  %v5671_v40 = vld [vmem:[%s10007_s1 + $0x190] sm:$0xff] }
  0x1e   : > { %207 = vst [vmem:[#allocation2 + $0x120] sm:$0xff] %v6898_v3  ;;  %208 = vst [vmem:[#allocation2 + $0x128] sm:$0xff] %v6898_v3  ;;  %868 = vmatprep.subr.mxu0 %v6898_v3  ;;  %6285 = vmatprep.subr.mxu1 %v5707_v25  ;;  %v5672_v38 = vld [vmem:[%s10007_s1 + $0x198] sm:$0xff]  ;;  %v7211_v41 = vld [vmem:[%s7097_s11 + $0x60] sm:$0xff] }
  0x1f   : > { %209 = vst [vmem:[#allocation2 + $0x130] sm:$0x3] %v6898_v3  ;;  %210 = vst [vmem:[#allocation2 + $0x138] sm:$0xff] %v6898_v3  ;;  %869 = vmatpush1.msra.mxu0 %v5675_v28  ;;  %6286 = vmatpush3.msra.mxu1 %v5707_v25  ;;  %v7214_v42 = vld [vmem:[%s7097_s11 + $0x68] sm:$0xff]  ;;  %v7226_v45 = vld [vmem:[%s7097_s11 + $0x70] sm:$0xff] }
  0x20   : > { %211 = vst [vmem:[#allocation2 + $0x140] sm:$0xff] %v6898_v3  ;;  %212 = vst [vmem:[#allocation2 + $0x148] sm:$0x3] %v6898_v3  ;;  %870 = vmatprep.subr.mxu0 %v6898_v3  ;;  %6287 = vmatprep.subr.mxu1 %v5706_v29  ;;  %v5702_v43 = vld [vmem:[%s10007_s1 + $0x288] sm:$0xff]  ;;  %v5701_v46 = vld [vmem:[%s10007_s1 + $0x280] sm:$0xff] }
  0x21   : > { %213 = vst [vmem:[#allocation2 + $0x150] sm:$0xff] %v6898_v3  ;;  %214 = vst [vmem:[#allocation2 + $0x158] sm:$0xff] %v6898_v3  ;;  %871 = vmatpush1.msra.mxu0 %v5674_v32  ;;  %6288 = vmatpush3.msra.mxu1 %v5706_v29  ;;  %v5670_v44 = vld [vmem:[%s10007_s1 + $0x188] sm:$0xff]  ;;  %v7232_v47 = vld [vmem:[%s7097_s11 + $0x78] sm:$0xff] }
  0x22   : > { %215 = vst [vmem:[#allocation2 + $0x160] sm:$0x3] %v6898_v3  ;;  %216 = vst [vmem:[#allocation2 + $0x168] sm:$0xff] %v6898_v3  ;;  %872 = vmatprep.subr.mxu0 %v6898_v3  ;;  %6289 = vmatprep.subr.mxu1 %v5705_v33  ;;  %v5669_v48 = vld [vmem:[%s10007_s1 + $0x180] sm:$0xff]  ;;  %v7244_v51 = vld [vmem:[%s7097_s11 + $0x88] sm:$0xff] }
  0x23   : > { %217 = vst [vmem:[#allocation2 + $0x170] sm:$0xff] %v6898_v3  ;;  %218 = vst [vmem:[#allocation2 + $0x178] sm:$0x3] %v6898_v3  ;;  %873 = vmatpush1.msra.mxu0 %v5673_v34  ;;  %6290 = vmatpush3.msra.mxu1 %v5705_v33  ;;  %v7241_v49 = vld [vmem:[%s7097_s11 + $0x80] sm:$0xff]  ;;  %v5700_v53 = vld [vmem:[%s10007_s1 + $0x278] sm:$0xff] }
  0x24   : > { %219 = vst [vmem:[#allocation2 + $0x180] sm:$0xff] %v6898_v3  ;;  %220 = vst [vmem:[#allocation2 + $0x188] sm:$0xff] %v6898_v3  ;;  %874 = vmatprep.subr.mxu0 %v6898_v3  ;;  %6291 = vmatprep.subr.mxu1 %v5704_v36  ;;  %v671_v54 = vld [vmem:[%s10007_s1 + $0x78] sm:$0xff]  ;;  %v7256_v55 = vld [vmem:[%s7097_s11 + $0x90] sm:$0xff] }
  0x25   : > { %221 = vst [vmem:[#allocation2 + $0x190] sm:$0x3] %v6898_v3  ;;  %222 = vst [vmem:[#allocation2 + $0x198] sm:$0xff] %v6898_v3  ;;  %875 = vmatpush1.msra.mxu0 %v5672_v38  ;;  %6292 = vmatpush3.msra.mxu1 %v5704_v36  ;;  %v7259_v56 = vld [vmem:[%s7097_s11 + $0x98] sm:$0xff]  ;;  %v5699_v57 = vld [vmem:[%s10007_s1 + $0x270] sm:$0xff] }
  0x26   : > { %223 = vst [vmem:[#allocation2 + $0x1a0] sm:$0xff] %v6898_v3  ;;  %224 = vst [vmem:[#allocation2 + $0x1a8] sm:$0x3] %v6898_v3  ;;  %876 = vmatprep.subr.mxu0 %v6898_v3  ;;  %6293 = vmatprep.subr.mxu1 %v5703_v39  ;;  %v7269_v59 = vld [vmem:[%s7097_s11 + $0xa0] sm:$0xff]  ;;  %v670_v60 = vld [vmem:[%s10007_s1 + $0x70] sm:$0xff] }
  0x27   : > { %225 = vst [vmem:[#allocation3] sm:$0xff] %v6898_v3  ;;  %226 = vst [vmem:[#allocation3 + $0x8] sm:$0xff] %v6898_v3  ;;  %877 = vmatpush1.msra.mxu0 %v5671_v40  ;;  %6294 = vmatpush3.msra.mxu1 %v5703_v39  ;;  %v7275_v61 = vld [vmem:[%s7097_s11 + $0xa8] sm:$0xff]  ;;  %v7288_v1 = vld [vmem:[%s7097_s11 + $0xb0] sm:$0xff] }
  0x28   : > { %227 = vst [vmem:[#allocation3 + $0x10] sm:$0x3] %v6898_v3  ;;  %228 = vst [vmem:[#allocation3 + $0x18] sm:$0xff] %v6898_v3  ;;  %878 = vmatprep.subr.mxu0 %v6898_v3  ;;  %6295 = vmatprep.subr.mxu1 %v5702_v43  ;;  %v5698_v63 = vld [vmem:[%s10007_s1 + $0x268] sm:$0xff]  ;;  %v7291_v2 = vld [vmem:[%s7097_s11 + $0xb8] sm:$0xff] }
  0x29   : > { %229 = vst [vmem:[#allocation3 + $0x20] sm:$0xff] %v6898_v3  ;;  %230 = vst [vmem:[#allocation3 + $0x28] sm:$0x3] %v6898_v3  ;;  %879 = vmatpush1.msra.mxu0 %v5670_v44  ;;  %6296 = vmatpush3.msra.mxu1 %v5702_v43  ;;  %v669_v0 = vld [vmem:[%s10007_s1 + $0x68] sm:$0xff]  ;;  %v5697_v4 = vld [vmem:[%s10007_s1 + $0x260] sm:$0xff] }
  0x2a   : > { %231 = vst [vmem:[#allocation3 + $0x30] sm:$0xff] %v6898_v3  ;;  %232 = vst [vmem:[#allocation3 + $0x38] sm:$0xff] %v6898_v3  ;;  %880 = vmatprep.subr.mxu0 %v6898_v3  ;;  %6297 = vmatprep.subr.mxu1 %v5701_v46  ;;  %v7301_v6 = vld [vmem:[%s7097_s11 + $0xc0] sm:$0xff]  ;;  %v7307_v8 = vld [vmem:[%s7097_s11 + $0xc8] sm:$0xff] }
  0x2b   : > { %233 = vst [vmem:[#allocation3 + $0x40] sm:$0x3] %v6898_v3  ;;  %234 = vst [vmem:[#allocation3 + $0x48] sm:$0xff] %v6898_v3  ;;  %881 = vmatpush1.msra.mxu0 %v5669_v48  ;;  %6298 = vmatpush3.msra.mxu1 %v5701_v46  ;;  %v668_v7 = vld [vmem:[%s10007_s1 + $0x60] sm:$0xff]  ;;  %v5696_v10 = vld [vmem:[%s10007_s1 + $0x258] sm:$0xff] }
  0x2c   : > { %235 = vst [vmem:[#allocation3 + $0x50] sm:$0xff] %v6898_v3  ;;  %236 = vst [vmem:[#allocation3 + $0x58] sm:$0x3] %v6898_v3  ;;  %882 = vmatprep.subr.mxu0 %v6898_v3  ;;  %1300 = vmatprep.subr.mxu1 %v6898_v3  ;;  %v667_v11 = vld [vmem:[%s10007_s1 + $0x58] sm:$0xff]  ;;  %v7322_v12 = vld [vmem:[%s7097_s11 + $0xd0] sm:$0xff] }
  0x2d   : > { %237 = vst [vmem:[#allocation3 + $0x60] sm:$0xff] %v6898_v3  ;;  %238 = vst [vmem:[#allocation3 + $0x68] sm:$0xff] %v6898_v3  ;;  %883 = vmatpush2.msra.mxu0 %v5700_v53  ;;  %v7325_v13 = vld [vmem:[%s7097_s11 + $0xd8] sm:$0xff]  ;;  %v5695_v15 = vld [vmem:[%s10007_s1 + $0x250] sm:$0xff]  ;;  %914 = vmatprep.mubr.f32.mxu0 %v7110_v14 }
  0x2e   : > { %239 = vst [vmem:[#allocation3 + $0x70] sm:$0x3] %v6898_v3  ;;  %240 = vst [vmem:[#allocation3 + $0x78] sm:$0xff] %v6898_v3  ;;  %884 = vmatprep.subr.mxu0 %v6898_v3  ;;  %v7338_v20 = vld [vmem:[%s7097_s11 + $0xe0] sm:$0xff]  ;;  %v666_v21 = vld [vmem:[%s10007_s1 + $0x50] sm:$0xff] }
  0x2f   : > { %241 = vst [vmem:[#allocation3 + $0x80] sm:$0xff] %v6898_v3  ;;  %242 = vst [vmem:[#allocation3 + $0x88] sm:$0x3] %v6898_v3  ;;  %885 = vmatpush2.msra.mxu0 %v5699_v57  ;;  %v7344_v24 = vld [vmem:[%s7097_s11 + $0xe8] sm:$0xff]  ;;  %v7360_v32 = vld [vmem:[%s7097_s11 + $0xf0] sm:$0xff] }
  0x30   : > { %243 = vst [vmem:[#allocation3 + $0x90] sm:$0xff] %v6898_v3  ;;  %244 = vst [vmem:[#allocation3 + $0x98] sm:$0xff] %v6898_v3  ;;  %886 = vmatprep.subr.mxu0 %v6898_v3  ;;  %v5694_v28 = vld [vmem:[%s10007_s1 + $0x248] sm:$0xff]  ;;  %v7363_v33 = vld [vmem:[%s7097_s11 + $0xf8] sm:$0xff] }
  0x31   : > { %245 = vst [vmem:[#allocation3 + $0xa0] sm:$0x3] %v6898_v3  ;;  %246 = vst [vmem:[#allocation3 + $0xa8] sm:$0xff] %v6898_v3  ;;  %887 = vmatpush2.msra.mxu0 %v5698_v63  ;;  %v665_v29 = vld [vmem:[%s10007_s1 + $0x48] sm:$0xff]  ;;  %v5693_v34 = vld [vmem:[%s10007_s1 + $0x240] sm:$0xff] }
  0x32   : > { %247 = vst [vmem:[#allocation3 + $0xb0] sm:$0xff] %v6898_v3  ;;  %248 = vst [vmem:[#allocation3 + $0xb8] sm:$0x3] %v6898_v3  ;;  %888 = vmatprep.subr.mxu0 %v6898_v3  ;;  %v664_v38 = vld [vmem:[%s10007_s1 + $0x40] sm:$0xff]  ;;  %v5692_v40 = vld [vmem:[%s10007_s1 + $0x238] sm:$0xff] }
  0x33   : > { %249 = vst [vmem:[#allocation3 + $0xc0] sm:$0xff] %v6898_v3  ;;  %250 = vst [vmem:[#allocation3 + $0xc8] sm:$0xff] %v6898_v3  ;;  %889 = vmatpush2.msra.mxu0 %v5697_v4  ;;  %v663_v43 = vld [vmem:[%s10007_s1 + $0x38] sm:$0xff]  ;;  %v5691_v44 = vld [vmem:[%s10007_s1 + $0x230] sm:$0xff] }
  0x34   : > { %251 = vst [vmem:[#allocation3 + $0xd0] sm:$0x3] %v6898_v3  ;;  %252 = vst [vmem:[#allocation3 + $0xd8] sm:$0xff] %v6898_v3  ;;  %890 = vmatprep.subr.mxu0 %v6898_v3  ;;  %v662_v48 = vld [vmem:[%s10007_s1 + $0x30] sm:$0xff]  ;;  %v661_v53 = vld [vmem:[%s10007_s1 + $0x28] sm:$0xff] }
  0x35   : > { %253 = vst [vmem:[#allocation3 + $0xe0] sm:$0xff] %v6898_v3  ;;  %254 = vst [vmem:[#allocation3 + $0xe8] sm:$0x3] %v6898_v3  ;;  %891 = vmatpush2.msra.mxu0 %v5696_v10  ;;  %v659_v63 = vld [vmem:[%s10007_s1 + $0x18] sm:$0xff]  ;;  %v5686_v10 = vld [vmem:[%s10007_s1 + $0x208] sm:$0xff] }
  0x36   : > { %255 = vst [vmem:[#allocation3 + $0xf0] sm:$0xff] %v6898_v3  ;;  %256 = vst [vmem:[#allocation3 + $0xf8] sm:$0xff] %v6898_v3  ;;  %892 = vmatprep.subr.mxu0 %v6898_v3 }
  0x37   : > { %257 = vst [vmem:[#allocation3 + $0x100] sm:$0x3] %v6898_v3  ;;  %258 = vst [vmem:[#allocation3 + $0x108] sm:$0xff] %v6898_v3  ;;  %893 = vmatpush2.msra.mxu0 %v5695_v15  ;;  %v5685_v15 = vld [vmem:[%s10007_s1 + $0x200] sm:$0xff] }
  0x38   : > { %259 = vst [vmem:[#allocation3 + $0x110] sm:$0xff] %v6898_v3  ;;  %260 = vst [vmem:[#allocation3 + $0x118] sm:$0x3] %v6898_v3  ;;  %894 = vmatprep.subr.mxu0 %v6898_v3 }
  0x39   : > { %261 = vst [vmem:[#allocation3 + $0x120] sm:$0xff] %v6898_v3  ;;  %262 = vst [vmem:[#allocation3 + $0x128] sm:$0xff] %v6898_v3  ;;  %895 = vmatpush2.msra.mxu0 %v5694_v28  ;;  %v656_v28 = vld [vmem:[%s10007_s1] sm:$0xff] }
  0x3a   : > { %263 = vst [vmem:[#allocation3 + $0x130] sm:$0x3] %v6898_v3  ;;  %264 = vst [vmem:[#allocation3 + $0x138] sm:$0xff] %v6898_v3  ;;  %896 = vmatprep.subr.mxu0 %v6898_v3 }
  0x3b   : > { %265 = vst [vmem:[#allocation3 + $0x140] sm:$0xff] %v6898_v3  ;;  %266 = vst [vmem:[#allocation3 + $0x148] sm:$0x3] %v6898_v3  ;;  %897 = vmatpush2.msra.mxu0 %v5693_v34 }
  0x3c   : > { %267 = vst [vmem:[#allocation3 + $0x150] sm:$0xff] %v6898_v3  ;;  %268 = vst [vmem:[#allocation3 + $0x158] sm:$0xff] %v6898_v3  ;;  %898 = vmatprep.subr.mxu0 %v6898_v3 }
  0x3d   : > { %269 = vst [vmem:[#allocation3 + $0x160] sm:$0x3] %v6898_v3  ;;  %270 = vst [vmem:[#allocation3 + $0x168] sm:$0xff] %v6898_v3  ;;  %899 = vmatpush2.msra.mxu0 %v5692_v40  ;;  %v687_v40 = vld [vmem:[%s10007_s1 + $0xf8] sm:$0xff] }
  0x3e   : > { %271 = vst [vmem:[#allocation3 + $0x170] sm:$0xff] %v6898_v3  ;;  %272 = vst [vmem:[#allocation3 + $0x178] sm:$0x3] %v6898_v3  ;;  %900 = vmatprep.subr.mxu0 %v6898_v3 }
  0x3f   : > { %273 = vst [vmem:[#allocation3 + $0x180] sm:$0xff] %v6898_v3  ;;  %274 = vst [vmem:[#allocation3 + $0x188] sm:$0xff] %v6898_v3  ;;  %901 = vmatpush2.msra.mxu0 %v5691_v44  ;;  %v686_v44 = vld [vmem:[%s10007_s1 + $0xf0] sm:$0xff] }
  0x40   : > { %275 = vst [vmem:[#allocation3 + $0x190] sm:$0x3] %v6898_v3  ;;  %276 = vst [vmem:[#allocation3 + $0x198] sm:$0xff] %v6898_v3  ;;  %902 = vmatprep.subr.mxu0 %v6898_v3 }
  0x41   : > { %277 = vst [vmem:[#allocation3 + $0x1a0] sm:$0xff] %v6898_v3  ;;  %278 = vst [vmem:[#allocation3 + $0x1a8] sm:$0x3] %v6898_v3 }
  0x42   : > { %312 = vst [vmem:[#allocation2 + $0x19] sm:$0xff] %v7110_v14  ;;  %313 = vst [vmem:[#allocation2 + $0x21] sm:$0xff] %v7117_v16 }
  0x43   : > { %314 = vst [vmem:[#allocation2 + $0x31] sm:$0xff] %v7125_v18  ;;  %315 = vst [vmem:[#allocation2 + $0x39] sm:$0xff] %v7128_v19 }
  0x44   : > { %316 = vst [vmem:[#allocation2 + $0x49] sm:$0xff] %v7140_v22  ;;  %317 = vst [vmem:[#allocation2 + $0x51] sm:$0xff] %v7143_v23 }
  0x45   : > { %318 = vst [vmem:[#allocation2 + $0x61] sm:$0xff] %v7155_v26  ;;  %319 = vst [vmem:[#allocation2 + $0x69] sm:$0xff] %v7158_v27 }
  0x46   : > { %320 = vst [vmem:[#allocation2 + $0x79] sm:$0xff] %v7170_v30  ;;  %321 = vst [vmem:[#allocation2 + $0x81] sm:$0xff] %v7173_v31 }
  0x47   : > { %322 = vst [vmem:[#allocation2 + $0x91] sm:$0xff] %v7189_v35  ;;  %323 = vst [vmem:[#allocation2 + $0x99] sm:$0xff] %v7195_v37 }
  0x48   : > { %324 = vst [vmem:[#allocation2 + $0xa9] sm:$0xff] %v7211_v41  ;;  %325 = vst [vmem:[#allocation2 + $0xb1] sm:$0xff] %v7214_v42 }
  0x49   : > { %326 = vst [vmem:[#allocation2 + $0xc1] sm:$0xff] %v7226_v45  ;;  %327 = vst [vmem:[#allocation2 + $0xc9] sm:$0xff] %v7232_v47  ;;  %v490_v50 = vld [vmem:[#allocation2 + $0x1a] sm:$0xff]  ;;  %v491_v52 = vld [vmem:[#allocation2 + $0x22] sm:$0xff] }
  0x4a   : > { %328 = vst [vmem:[#allocation2 + $0xd9] sm:$0xff] %v7241_v49  ;;  %329 = vst [vmem:[#allocation2 + $0xe1] sm:$0xff] %v7244_v51  ;;  %6299 = vmatprep.mubr.f32.mxu1 %v490_v50  ;;  %v492_v58 = vld [vmem:[#allocation2 + $0x32] sm:$0xff]  ;;  %v493_v62 = vld [vmem:[#allocation2 + $0x3a] sm:$0xff] }
  0x4b   : > { %330 = vst [vmem:[#allocation2 + $0xf1] sm:$0xff] %v7256_v55  ;;  %331 = vst [vmem:[#allocation2 + $0xf9] sm:$0xff] %v7259_v56  ;;  %6300 = vmatmul.mubr.f32.vlgmr.msra.gmra.mxu1 %v491_v52  ;;  %v494_v5 = vld [vmem:[#allocation2 + $0x4a] sm:$0xff]  ;;  %v7312_v9 = vld [vmem:[#allocation2 + $0x52] sm:$0xff] }
  0x4c   : > { %1301 = vmatpush1.msra.mxu1 %v671_v54  ;;  %332 = vst [vmem:[#allocation2 + $0x109] sm:$0xff] %v7269_v59  ;;  %333 = vst [vmem:[#allocation2 + $0x111] sm:$0xff] %v7275_v61  ;;  %6302 = vmatprep.mubr.f32.mxu1 %v492_v58  ;;  %v7335_v17 = vld [vmem:[#allocation2 + $0x62] sm:$0xff]  ;;  %v7349_v25 = vld [vmem:[#allocation2 + $0x6a] sm:$0xff] }
  0x4d   : > { %1302 = vmatprep.subr.mxu1 %v6898_v3  ;;  %334 = vst [vmem:[#allocation2 + $0x121] sm:$0xff] %v7288_v1  ;;  %335 = vst [vmem:[#allocation2 + $0x129] sm:$0xff] %v7291_v2  ;;  %v7373_v36 = vld [vmem:[#allocation2 + $0x7a] sm:$0xff]  ;;  %v7380_v39 = vld [vmem:[#allocation2 + $0x82] sm:$0xff] }
  0x4e   : > { %1303 = vmatpush1.msra.mxu1 %v670_v60  ;;  %336 = vst [vmem:[#allocation2 + $0x139] sm:$0xff] %v7301_v6  ;;  %337 = vst [vmem:[#allocation2 + $0x141] sm:$0xff] %v7307_v8  ;;  %v7395_v46 = vld [vmem:[#allocation2 + $0x92] sm:$0xff]  ;;  %v7402_v50 = vld [vmem:[#allocation2 + $0x9a] sm:$0xff] }
  0x4f   : > { %6303 = vmatmul.mubr.f32.gmra.mxu1 %v493_v62  ;;  %1304 = vmatprep.subr.mxu1 %v6898_v3  ;;  %338 = vst [vmem:[#allocation2 + $0x151] sm:$0xff] %v7322_v12  ;;  %339 = vst [vmem:[#allocation2 + $0x159] sm:$0xff] %v7325_v13  ;;  %v5690_v52 = vld [vmem:[%s10007_s1 + $0x228] sm:$0xff]  ;;  %v5689_v54 = vld [vmem:[%s10007_s1 + $0x220] sm:$0xff] }
  0x50   : > { %1305 = vmatpush1.msra.mxu1 %v669_v0  ;;  %6305 = vmatprep.mubr.f32.mxu1 %v494_v5  ;;  %340 = vst [vmem:[#allocation2 + $0x169] sm:$0xff] %v7338_v20  ;;  %341 = vst [vmem:[#allocation2 + $0x171] sm:$0xff] %v7344_v24  ;;  %v7417_v57 = vld [vmem:[#allocation2 + $0xaa] sm:$0xff]  ;;  %v660_v58 = vld [vmem:[%s10007_s1 + $0x20] sm:$0xff] }
  0x51   : > { %1306 = vmatprep.subr.mxu1 %v6898_v3  ;;  %342 = vst [vmem:[#allocation2 + $0x181] sm:$0xff] %v7360_v32  ;;  %343 = vst [vmem:[#allocation2 + $0x189] sm:$0xff] %v7363_v33  ;;  %903 = vmatpush2.msra.mxu0 %v5690_v52  ;;  %v7424_v60 = vld [vmem:[#allocation2 + $0xb2] sm:$0xff]  ;;  %v7439_v4 = vld [vmem:[#allocation2 + $0xc2] sm:$0xff] }
  0x52   : > { %1307 = vmatpush1.msra.mxu1 %v668_v7  ;;  %904 = vmatprep.subr.mxu0 %v6898_v3  ;;  %v5688_v62 = vld [vmem:[%s10007_s1 + $0x218] sm:$0xff]  ;;  %v5687_v0 = vld [vmem:[%s10007_s1 + $0x210] sm:$0xff]  ;;  %v7470_v34 = vld [vmem:[#allocation2 + $0xe2] sm:$0xff] }
  0x53   : > { %6306 = vmatmul.mubr.f32.gmra.mxu1 %v7312_v9  ;;  %1308 = vmatprep.subr.mxu1 %v6898_v3  ;;  %v658_v5 = vld [vmem:[%s10007_s1 + $0x10] sm:$0xff]  ;;  %v7490_v52 = vld [vmem:[#allocation2 + $0xfa] sm:$0xff] }
  0x54   : > { %1309 = vmatpush1.msra.mxu1 %v667_v11  ;;  %6308 = vmatprep.mubr.f32.mxu1 %v7335_v17  ;;  %v7446_v7 = vld [vmem:[#allocation2 + $0xca] sm:$0xff] }
  0x55   : > { %1310 = vmatprep.subr.mxu1 %v6898_v3  ;;  %905 = vmatpush2.msra.mxu0 %v5689_v54  ;;  %v657_v11 = vld [vmem:[%s10007_s1 + $0x8] sm:$0xff] }
  0x56   : > { %1311 = vmatpush1.msra.mxu1 %v666_v21  ;;  %906 = vmatprep.subr.mxu0 %v6898_v3  ;;  %v7461_v21 = vld [vmem:[#allocation2 + $0xda] sm:$0xff]  ;;  %v7498_v54 = vld [vmem:[#allocation2 + $0x10a] sm:$0xff] }
  0x57   : > { %6309 = vmatmul.mubr.f32.gmra.mxu1 %v7349_v25  ;;  %1312 = vmatprep.subr.mxu1 %v6898_v3  ;;  %10053 = vst [vmem:[#allocation5_spill] sm:$0xff] %v7498_v54 }
  0x58   : > { %1313 = vmatpush1.msra.mxu1 %v665_v29  ;;  %6311 = vmatprep.mubr.f32.mxu1 %v7373_v36  ;;  %v7468_v29 = vld [vmem:[#allocation2 + $0x18] sm:$0xff] }
  0x59   : > { %1314 = vmatprep.subr.mxu1 %v6898_v3  ;;  %907 = vmatpush2.msra.mxu0 %v5688_v62  ;;  %v684_v62 = vld [vmem:[%s10007_s1 + $0xe0] sm:$0xff] }
  0x5a   : > { %1315 = vmatpush1.msra.mxu1 %v664_v38  ;;  %908 = vmatprep.subr.mxu0 %v6898_v3  ;;  %v703_v38 = vld [vmem:[%s10007_s1 + $0x178] sm:$0xff] }
  0x5b   : > { %6312 = vmatmul.mubr.f32.gmra.mxu1 %v7380_v39  ;;  %1316 = vmatprep.subr.mxu1 %v6898_v3 }
  0x5c   : > { %1317 = vmatpush1.msra.mxu1 %v663_v43  ;;  %6314 = vmatprep.mubr.f32.mxu1 %v7395_v46  ;;  %v7483_v43 = vld [vmem:[#allocation2 + $0xf2] sm:$0xff] }
  0x5d   : > { %1318 = vmatprep.subr.mxu1 %v6898_v3  ;;  %909 = vmatpush2.msra.mxu0 %v5687_v0  ;;  %v7513_v0 = vld [vmem:[#allocation2 + $0x112] sm:$0xff] }
  0x5e   : > { %1319 = vmatpush1.msra.mxu1 %v662_v48  ;;  %910 = vmatprep.subr.mxu0 %v6898_v3  ;;  %v7488_v48 = vld [vmem:[#allocation2 + $0x20] sm:$0xff]  ;;  %10054 = vst [vmem:[#allocation6_spill] sm:$0xff] %v7513_v0 }
  0x5f   : > { %6315 = vmatmul.mubr.f32.gmra.mxu1 %v7402_v50  ;;  %1320 = vmatprep.subr.mxu1 %v6898_v3 }
  0x60   : > { %1321 = vmatpush1.msra.mxu1 %v661_v53  ;;  %6317 = vmatprep.mubr.f32.mxu1 %v7417_v57  ;;  %v685_v53 = vld [vmem:[%s10007_s1 + $0xe8] sm:$0xff] }
  0x61   : > { %1322 = vmatprep.subr.mxu1 %v6898_v3  ;;  %911 = vmatpush2.msra.mxu0 %v5686_v10  ;;  %v7522_v10 = vld [vmem:[#allocation2 + $0x122] sm:$0xff] }
  0x62   : > { %1323 = vmatpush1.msra.mxu1 %v660_v58  ;;  %912 = vmatprep.subr.mxu0 %v6898_v3  ;;  %v702_v58 = vld [vmem:[%s10007_s1 + $0x170] sm:$0xff]  ;;  %10055 = vst [vmem:[#allocation7_spill] sm:$0xff] %v7522_v10 }
  0x63   : > { %6318 = vmatmul.mubr.f32.gmra.mxu1 %v7424_v60  ;;  %1324 = vmatprep.subr.mxu1 %v6898_v3 }
  0x64   : > { %1325 = vmatpush1.msra.mxu1 %v659_v63  ;;  %6320 = vmatprep.mubr.f32.mxu1 %v7439_v4  ;;  %v7510_v63 = vld [vmem:[#allocation2 + $0x30] sm:$0xff] }
  0x65   : > { %1326 = vmatprep.subr.mxu1 %v6898_v3  ;;  %913 = vmatpush2.msra.mxu0 %v5685_v15  ;;  %v7527_v15 = vld [vmem:[#allocation2 + $0x38] sm:$0xff] }
  0x66   : > { %1327 = vmatpush1.msra.mxu1 %v658_v5  ;;  %915 = vmatmul.mubr.f32.vlgmr.msra.gmra.mxu0 %v7468_v29  ;;  %v683_v5 = vld [vmem:[%s10007_s1 + $0xd8] sm:$0xff] }
  0x67   : > { %6321 = vmatmul.mubr.f32.gmra.mxu1 %v7446_v7  ;;  %1328 = vmatprep.subr.mxu1 %v6898_v3 }
  0x68   : > { %1329 = vmatpush1.msra.mxu1 %v657_v11  ;;  %6323 = vmatprep.mubr.f32.mxu1 %v7461_v21  ;;  %v682_v11 = vld [vmem:[%s10007_s1 + $0xd0] sm:$0xff] }
  0x69   : > { %1330 = vmatprep.subr.mxu1 %v6898_v3  ;;  %6347 = vmatprep.subr.mxu0 %v703_v38 }
  0x6a   : > { %1331 = vmatpush1.msra.mxu1 %v656_v28  ;;  %6348 = vmatpush3.msra.mxu0 %v703_v38  ;;  %v7529_v28 = vld [vmem:[#allocation2 + $0x12a] sm:$0xff] }
  0x6b   : > { %6324 = vmatmul.mubr.f32.gmra.mxu1 %v7470_v34  ;;  %1332 = vmatprep.subr.mxu1 %v6898_v3  ;;  %10056 = vst [vmem:[#allocation8_spill] sm:$0xff] %v7529_v28  ;;  %v681_v38 = vld [vmem:[%s10007_s1 + $0xc8] sm:$0xff] }
  0x6c   : > { %1333 = vmatpush2.msra.mxu1 %v687_v40  ;;  %919 = vmatprep.mubr.f32.mxu0 %v7117_v16  ;;  %v7537_v40 = vld [vmem:[#allocation2 + $0x13a] sm:$0xff] }
  0x6d   : > { %1334 = vmatprep.subr.mxu1 %v6898_v3  ;;  %6326 = vmatprep.mubr.f32.mxu1 %v7483_v43  ;;  %10057 = vst [vmem:[#allocation9_spill] sm:$0xff] %v7537_v40 }
  0x6e   : > { %1335 = vmatpush2.msra.mxu1 %v686_v44  ;;  %920 = vmatmul.mubr.f32.gmra.mxu0 %v7488_v48  ;;  %v701_v44 = vld [vmem:[%s10007_s1 + $0x168] sm:$0xff] }
  0x6f   : > { %6327 = vmatmul.mubr.f32.gmra.mxu1 %v7490_v52  ;;  %1336 = vmatprep.subr.mxu1 %v6898_v3 }
  0x70   : > { %924 = vmatprep.mubr.f32.mxu0 %v7125_v18  ;;  %1337 = vmatpush2.msra.mxu1 %v685_v53  ;;  %v680_v53 = vld [vmem:[%s10007_s1 + $0xc0] sm:$0xff] }
  0x71   : > { %6329 = vmatprep.mubr.f32.mxu1 %v7498_v54  ;;  %1338 = vmatprep.subr.mxu1 %v6898_v3  ;;  %v7629_v54 = vld [vmem:[#allocation2 + $0x80] sm:$0xff] }
  0x72   : > { %6349 = vmatprep.subr.mxu0 %v702_v58  ;;  %1339 = vmatpush2.msra.mxu1 %v684_v62  ;;  %v7552_v62 = vld [vmem:[#allocation2 + $0x142] sm:$0xff] }
  0x73   : > { %925 = vmatmul.mubr.f32.gmra.mxu0 %v7510_v63  ;;  %6330 = vmatmul.mubr.f32.gmra.mxu1 %v7513_v0  ;;  %10058 = vst [vmem:[#allocation10_spill] sm:$0xff] %v7552_v62  ;;  %v521_v0 = vld [vmem:[#allocation2 + $0x18a] sm:$0xff] }
  0x74   : > { %1340 = vmatprep.subr.mxu1 %v6898_v3  ;;  %6350 = vmatpush3.msra.mxu0 %v702_v58  ;;  %v7549_v58 = vld [vmem:[#allocation2 + $0x48] sm:$0xff] }
  0x75   : > { %1341 = vmatpush2.msra.mxu1 %v683_v5  ;;  %929 = vmatprep.mubr.f32.mxu0 %v7128_v19  ;;  %v679_v5 = vld [vmem:[%s10007_s1 + $0xb8] sm:$0xff] }
  0x76   : > { %1342 = vmatprep.subr.mxu1 %v6898_v3  ;;  %6332 = vmatprep.mubr.f32.mxu1 %v7522_v10  ;;  %v520_v10 = vld [vmem:[#allocation2 + $0x182] sm:$0xff] }
  0x77   : > { %1343 = vmatpush2.msra.mxu1 %v682_v11  ;;  %930 = vmatmul.mubr.f32.gmra.mxu0 %v7527_v15  ;;  %v7561_v11 = vld [vmem:[#allocation2 + $0x152] sm:$0xff] }
  0x78   : > { %6333 = vmatmul.mubr.f32.gmra.mxu1 %v7529_v28  ;;  %1344 = vmatprep.subr.mxu1 %v6898_v3  ;;  %10059 = vst [vmem:[#allocation11_spill] sm:$0xff] %v7561_v11  ;;  %v7568_v28 = vld [vmem:[#allocation2 + $0x15a] sm:$0xff] }
  0x79   : > { %934 = vmatprep.mubr.f32.mxu0 %v7140_v22  ;;  %1345 = vmatpush2.msra.mxu1 %v681_v38  ;;  %v678_v38 = vld [vmem:[%s10007_s1 + $0xb0] sm:$0xff]  ;;  %10060 = vst [vmem:[#allocation12_spill] sm:$0xff] %v7568_v28 }
  0x7a   : > { %6335 = vmatprep.mubr.f32.mxu1 %v7537_v40  ;;  %1346 = vmatprep.subr.mxu1 %v6898_v3  ;;  %v7566_v40 = vld [vmem:[#allocation2 + $0x50] sm:$0xff] }
  0x7b   : > { %6351 = vmatprep.subr.mxu0 %v701_v44  ;;  %1347 = vmatpush2.msra.mxu1 %v680_v53  ;;  %v677_v53 = vld [vmem:[%s10007_s1 + $0xa8] sm:$0xff] }
  0x7c   : > { %935 = vmatmul.mubr.f32.gmra.mxu0 %v7549_v58  ;;  %6336 = vmatmul.mubr.f32.gmra.mxu1 %v7552_v62  ;;  %v7576_v62 = vld [vmem:[#allocation2 + $0x16a] sm:$0xff] }
  0x7d   : > { %1348 = vmatprep.subr.mxu1 %v6898_v3  ;;  %6352 = vmatpush3.msra.mxu0 %v701_v44  ;;  %10061 = vst [vmem:[#allocation13_spill] sm:$0xff] %v7576_v62  ;;  %v700_v44 = vld [vmem:[%s10007_s1 + $0x160] sm:$0xff] }
  0x7e   : > { %1349 = vmatpush2.msra.mxu1 %v679_v5  ;;  %939 = vmatprep.mubr.f32.mxu0 %v7143_v23  ;;  %v676_v5 = vld [vmem:[%s10007_s1 + $0xa0] sm:$0xff] }
  0x7f   : > { %1350 = vmatprep.subr.mxu1 %v6898_v3  ;;  %6338 = vmatprep.mubr.f32.mxu1 %v7561_v11  ;;  %v7591_v11 = vld [vmem:[#allocation2 + $0x172] sm:$0xff] }
  0x80   : > { %1351 = vmatpush2.msra.mxu1 %v678_v38  ;;  %940 = vmatmul.mubr.f32.gmra.mxu0 %v7566_v40  ;;  %v7588_v38 = vld [vmem:[#allocation2 + $0x60] sm:$0xff]  ;;  %10062 = vst [vmem:[#allocation14_spill] sm:$0xff] %v7591_v11 }
  0x81   : > { %6339 = vmatmul.mubr.f32.gmra.mxu1 %v7568_v28  ;;  %1352 = vmatprep.subr.mxu1 %v6898_v3  ;;  %v675_v28 = vld [vmem:[%s10007_s1 + $0x98] sm:$0xff] }
  0x82   : > { %944 = vmatprep.mubr.f32.mxu0 %v7155_v26  ;;  %1353 = vmatpush2.msra.mxu1 %v677_v53  ;;  %v674_v53 = vld [vmem:[%s10007_s1 + $0x90] sm:$0xff] }
  0x83   : > { %6341 = vmatprep.mubr.f32.mxu1 %v7576_v62  ;;  %1354 = vmatprep.subr.mxu1 %v6898_v3  ;;  %v7603_v62 = vld [vmem:[#allocation2 + $0x68] sm:$0xff] }
  0x84   : > { %6353 = vmatprep.subr.mxu0 %v700_v44  ;;  %1355 = vmatpush2.msra.mxu1 %v676_v5  ;;  %v673_v5 = vld [vmem:[%s10007_s1 + $0x88] sm:$0xff] }
  0x85   : > { %945 = vmatmul.mubr.f32.gmra.mxu0 %v7588_v38  ;;  %6342 = vmatmul.mubr.f32.gmra.mxu1 %v7591_v11  ;;  %v416_v11 = vld [vmem:[#allocation2 + $0x1] sm:$0xff] }
  0x86   : > { %1356 = vmatprep.subr.mxu1 %v6898_v3  ;;  %6354 = vmatpush3.msra.mxu0 %v700_v44  ;;  %v7619_v44 = vld [vmem:[#allocation2 + $0x78] sm:$0xff] }
  0x87   : > { %1357 = vmatpush2.msra.mxu1 %v675_v28  ;;  %949 = vmatprep.mubr.f32.mxu0 %v7158_v27  ;;  %v699_v28 = vld [vmem:[%s10007_s1 + $0x158] sm:$0xff] }
  0x88   : > { %1358 = vmatprep.subr.mxu1 %v6898_v3  ;;  %6344 = vmatprep.mubr.f32.mxu1 %v520_v10  ;;  %v672_v10 = vld [vmem:[%s10007_s1 + $0x80] sm:$0xff] }
  0x89   : > { %1359 = vmatpush2.msra.mxu1 %v674_v53  ;;  %950 = vmatmul.mubr.f32.gmra.mxu0 %v7603_v62  ;;  %v7621_v53 = vld [vmem:[#allocation2] sm:$0xff] }
  0x8a   : > { %6345 = vmatmul.mubr.f32.gmra.mxu1 %v521_v0  ;;  %1360 = vmatprep.subr.mxu1 %v6898_v3  ;;  %v417_v0 = vld [vmem:[#allocation2 + $0x9] sm:$0xff] }
  0x8b   : > { %954 = vmatprep.mubr.f32.mxu0 %v7170_v30  ;;  %1361 = vmatpush2.msra.mxu1 %v673_v5  ;;  %v698_v3 = vld [vmem:[%s10007_s1 + $0x150] sm:$0xff]  ;;  %v697_v5 = vld [vmem:[%s10007_s1 + $0x148] sm:$0xff] }
  0x8c   : > { %1364 = vmatprep.mubr.f32.mxu1 %v416_v11  ;;  %1362 = vmatprep.subr.mxu1 %v7621_v53  ;;  %v5732_v11 = vld [vmem:[%s10007_s1 + $0x378] sm:$0xff] }
  0x8d   : > { %6355 = vmatprep.subr.mxu0 %v699_v28  ;;  %1363 = vmatpush2.msra.mxu1 %v672_v10  ;;  %v5731_v10 = vld [vmem:[%s10007_s1 + $0x370] sm:$0xff] }
  0x8e   : > { %955 = vmatmul.mubr.f32.gmra.mxu0 %v7619_v44  ;;  %1365 = vmatmul.mubr.f32.vlgmr.msra.gmra.mxu1 %v7621_v53 }
  0x8f   : > { %6356 = vmatpush3.msra.mxu0 %v699_v28  ;;  %959 = vmatprep.mubr.f32.mxu0 %v7173_v31  ;;  %v7642_v28 = vld [vmem:[#allocation2 + $0x90] sm:$0xff] }
  0x90   : > { %1369 = vmatprep.mubr.f32.mxu1 %v417_v0  ;;  %6357 = vmatprep.subr.mxu0 %v698_v3  ;;  %v696_v0 = vld [vmem:[%s10007_s1 + $0x140] sm:$0xff] }
  0x91   : > { %1896 = vmatprep.subr.mxu1 %v7621_v53  ;;  %6358 = vmatpush3.msra.mxu0 %v698_v3  ;;  %v7668_v3 = vld [vmem:[#allocation2 + $0xa8] sm:$0xff] }
  0x92   : > { %960 = vmatmul.mubr.f32.gmra.mxu0 %v7629_v54  ;;  %1897 = vmatpush1.msra.mxu1 %v5732_v11  ;;  %v7655_v11 = vld [vmem:[#allocation2 + $0x98] sm:$0xff] }
  0x93   : > { %1370 = vmatmul.mubr.f32.gmra.mxu1 %v7621_v53  ;;  %964 = vmatprep.mubr.f32.mxu0 %v7189_v35 }
  0x94   : > { %1374 = vmatprep.mubr.f32.mxu1 %v7110_v14  ;;  %6359 = vmatprep.subr.mxu0 %v697_v5  ;;  %v5730_v14 = vld [vmem:[%s10007_s1 + $0x368] sm:$0xff] }
  0x95   : > { %1898 = vmatprep.subr.mxu1 %v7621_v53  ;;  %6360 = vmatpush3.msra.mxu0 %v697_v5  ;;  %v7681_v5 = vld [vmem:[#allocation2 + $0xb0] sm:$0xff] }
  0x96   : > { %965 = vmatmul.mubr.f32.gmra.mxu0 %v7642_v28  ;;  %1899 = vmatpush1.msra.mxu1 %v5731_v10  ;;  %v693_v10 = vld [vmem:[%s10007_s1 + $0x128] sm:$0xff] }
  0x97   : > { %1375 = vmatmul.mubr.f32.gmra.mxu1 %v7468_v29  ;;  %969 = vmatprep.mubr.f32.mxu0 %v7195_v37  ;;  %v695_v29 = vld [vmem:[%s10007_s1 + $0x138] sm:$0xff] }
  0x98   : > { %1379 = vmatprep.mubr.f32.mxu1 %v7117_v16  ;;  %6361 = vmatprep.subr.mxu0 %v696_v0  ;;  %v5729_v16 = vld [vmem:[%s10007_s1 + $0x360] sm:$0xff] }
  0x99   : > { %1900 = vmatprep.subr.mxu1 %v7621_v53  ;;  %6362 = vmatpush3.msra.mxu0 %v696_v0  ;;  %v7694_v0 = vld [vmem:[#allocation2 + $0xc0] sm:$0xff] }
  0x9a   : > { %970 = vmatmul.mubr.f32.gmra.mxu0 %v7655_v11  ;;  %1901 = vmatpush1.msra.mxu1 %v5730_v14  ;;  %v692_v14 = vld [vmem:[%s10007_s1 + $0x120] sm:$0xff] }
  0x9b   : > { %1380 = vmatmul.mubr.f32.gmra.mxu1 %v7488_v48  ;;  %974 = vmatprep.mubr.f32.mxu0 %v7211_v41  ;;  %v694_v48 = vld [vmem:[%s10007_s1 + $0x130] sm:$0xff] }
  0x9c   : > { %1384 = vmatprep.mubr.f32.mxu1 %v7125_v18  ;;  %6363 = vmatprep.subr.mxu0 %v695_v29  ;;  %v5728_v18 = vld [vmem:[%s10007_s1 + $0x358] sm:$0xff] }
  0x9d   : > { %1902 = vmatprep.subr.mxu1 %v7621_v53  ;;  %6364 = vmatpush3.msra.mxu0 %v695_v29  ;;  %v7707_v29 = vld [vmem:[#allocation2 + $0xc8] sm:$0xff] }
  0x9e   : > { %975 = vmatmul.mubr.f32.gmra.mxu0 %v7668_v3  ;;  %1903 = vmatpush1.msra.mxu1 %v5729_v16  ;;  %v5725_v16 = vld [vmem:[%s10007_s1 + $0x340] sm:$0xff] }
  0x9f   : > { %1385 = vmatmul.mubr.f32.gmra.mxu1 %v7510_v63  ;;  %979 = vmatprep.mubr.f32.mxu0 %v7214_v42 }
  0xa0   : > { %1389 = vmatprep.mubr.f32.mxu1 %v7128_v19  ;;  %6365 = vmatprep.subr.mxu0 %v694_v48  ;;  %v5727_v19 = vld [vmem:[%s10007_s1 + $0x350] sm:$0xff] }
  0xa1   : > { %1904 = vmatprep.subr.mxu1 %v7621_v53  ;;  %6366 = vmatpush3.msra.mxu0 %v694_v48  ;;  %v7720_v48 = vld [vmem:[#allocation2 + $0xd8] sm:$0xff] }
  0xa2   : > { %980 = vmatmul.mubr.f32.gmra.mxu0 %v7681_v5  ;;  %1905 = vmatpush1.msra.mxu1 %v5728_v18  ;;  %v691_v18 = vld [vmem:[%s10007_s1 + $0x118] sm:$0xff] }
  0xa3   : > { %1390 = vmatmul.mubr.f32.gmra.mxu1 %v7527_v15  ;;  %984 = vmatprep.mubr.f32.mxu0 %v7226_v45 }
  0xa4   : > { %1394 = vmatprep.mubr.f32.mxu1 %v7140_v22  ;;  %6367 = vmatprep.subr.mxu0 %v693_v10  ;;  %v5726_v22 = vld [vmem:[%s10007_s1 + $0x348] sm:$0xff] }
  0xa5   : > { %1906 = vmatprep.subr.mxu1 %v7621_v53  ;;  %6368 = vmatpush3.msra.mxu0 %v693_v10  ;;  %v5723_v10 = vld [vmem:[%s10007_s1 + $0x330] sm:$0xff] }
  0xa6   : > { %985 = vmatmul.mubr.f32.gmra.mxu0 %v7694_v0  ;;  %1907 = vmatpush1.msra.mxu1 %v5727_v19  ;;  %v690_v19 = vld [vmem:[%s10007_s1 + $0x110] sm:$0xff] }
  0xa7   : > { %1395 = vmatmul.mubr.f32.gmra.mxu1 %v7549_v58  ;;  %989 = vmatprep.mubr.f32.mxu0 %v7232_v47 }
  0xa8   : > { %1399 = vmatprep.mubr.f32.mxu1 %v7143_v23  ;;  %1908 = vmatprep.subr.mxu1 %v7621_v53  ;;  %v5724_v23 = vld [vmem:[%s10007_s1 + $0x338] sm:$0xff] }
  0xa9   : > { %6369 = vmatprep.subr.mxu0 %v692_v14  ;;  %1909 = vmatpush1.msra.mxu1 %v5726_v22  ;;  %v5721_v22 = vld [vmem:[%s10007_s1 + $0x320] sm:$0xff] }
  0xaa   : > { %990 = vmatmul.mubr.f32.gmra.mxu0 %v7707_v29  ;;  %1910 = vmatprep.subr.mxu1 %v7621_v53 }
  0xab   : > { %1400 = vmatmul.mubr.f32.gmra.mxu1 %v7566_v40  ;;  %994 = vmatprep.mubr.f32.mxu0 %v7241_v49 }
  0xac   : > { %1404 = vmatprep.mubr.f32.mxu1 %v7155_v26  ;;  %6370 = vmatpush3.msra.mxu0 %v692_v14  ;;  %v7734_v26 = vld [vmem:[#allocation2 + $0xe0] sm:$0xff]  ;;  %v7747_v14 = vld [vmem:[#allocation2 + $0xf0] sm:$0xff] }
  0xad   : > { %1911 = vmatpush1.msra.mxu1 %v5725_v16  ;;  %6371 = vmatprep.subr.mxu0 %v691_v18  ;;  %v7760_v16 = vld [vmem:[#allocation2 + $0xf8] sm:$0xff] }
  0xae   : > { %995 = vmatmul.mubr.f32.gmra.mxu0 %v7720_v48  ;;  %1912 = vmatprep.subr.mxu1 %v7621_v53 }
  0xaf   : > { %1405 = vmatmul.mubr.f32.gmra.mxu1 %v7588_v38  ;;  %999 = vmatprep.mubr.f32.mxu0 %v7244_v51 }
  0xb0   : > { %1409 = vmatprep.mubr.f32.mxu1 %v7158_v27  ;;  %1913 = vmatpush1.msra.mxu1 %v5724_v23  ;;  %v5722_v27 = vld [vmem:[%s10007_s1 + $0x328] sm:$0xff] }
  0xb1   : > { %1914 = vmatprep.subr.mxu1 %v7621_v53  ;;  %6372 = vmatpush3.msra.mxu0 %v691_v18  ;;  %v689_v23 = vld [vmem:[%s10007_s1 + $0x108] sm:$0xff]  ;;  %v5719_v18 = vld [vmem:[%s10007_s1 + $0x310] sm:$0xff] }
  0xb2   : > { %1000 = vmatmul.mubr.f32.gmra.mxu0 %v7734_v26  ;;  %1915 = vmatpush1.msra.mxu1 %v5723_v10  ;;  %v688_v10 = vld [vmem:[%s10007_s1 + $0x100] sm:$0xff] }
  0xb3   : > { %1410 = vmatmul.mubr.f32.gmra.mxu1 %v7603_v62  ;;  %1004 = vmatprep.mubr.f32.mxu0 %v7256_v55 }
  0xb4   : > { %1414 = vmatprep.mubr.f32.mxu1 %v7170_v30  ;;  %1916 = vmatprep.subr.mxu1 %v7621_v53  ;;  %v5720_v30 = vld [vmem:[%s10007_s1 + $0x318] sm:$0xff] }
  0xb5   : > { %6373 = vmatprep.subr.mxu0 %v690_v19  ;;  %1917 = vmatpush1.msra.mxu1 %v5722_v27  ;;  %v5717_v27 = vld [vmem:[%s10007_s1 + $0x300] sm:$0xff] }
  0xb6   : > { %1005 = vmatmul.mubr.f32.gmra.mxu0 %v7747_v14  ;;  %1918 = vmatprep.subr.mxu1 %v7621_v53 }
  0xb7   : > { %1415 = vmatmul.mubr.f32.gmra.mxu1 %v7619_v44  ;;  %1009 = vmatprep.mubr.f32.mxu0 %v7259_v56 }
  0xb8   : > { %1419 = vmatprep.mubr.f32.mxu1 %v7173_v31  ;;  %6374 = vmatpush3.msra.mxu0 %v690_v19  ;;  %v7774_v31 = vld [vmem:[#allocation2 + $0x108] sm:$0xff]  ;;  %v7787_v19 = vld [vmem:[#allocation2 + $0x110] sm:$0xff] }
  0xb9   : > { %1919 = vmatpush1.msra.mxu1 %v5721_v22  ;;  %6375 = vmatprep.subr.mxu0 %v689_v23  ;;  %v7800_v22 = vld [vmem:[#allocation2 + $0x120] sm:$0xff] }
  0xba   : > { %1010 = vmatmul.mubr.f32.gmra.mxu0 %v7760_v16  ;;  %1920 = vmatprep.subr.mxu1 %v7621_v53 }
  0xbb   : > { %1420 = vmatmul.mubr.f32.gmra.mxu1 %v7629_v54  ;;  %1014 = vmatprep.mubr.f32.mxu0 %v7269_v59 }
  0xbc   : > { %1424 = vmatprep.mubr.f32.mxu1 %v7189_v35  ;;  %1921 = vmatpush1.msra.mxu1 %v5720_v30  ;;  %v5718_v35 = vld [vmem:[%s10007_s1 + $0x308] sm:$0xff]  ;;  %v7812_v30 = vld [vmem:[%s10007_s1 + $0x478] sm:$0xff] }
  0xbd   : > { %1922 = vmatprep.subr.mxu1 %v7621_v53  ;;  %6376 = vmatpush3.msra.mxu0 %v689_v23  ;;  %v5747_v23 = vld [vmem:[%s10007_s1 + $0x3f0] sm:$0xff] }
  0xbe   : > { %1015 = vmatmul.mubr.f32.gmra.mxu0 %v7774_v31  ;;  %1923 = vmatpush1.msra.mxu1 %v5719_v18  ;;  %v5746_v18 = vld [vmem:[%s10007_s1 + $0x3e8] sm:$0xff] }
  0xbf   : > { %1425 = vmatmul.mubr.f32.gmra.mxu1 %v7642_v28  ;;  %1019 = vmatprep.mubr.f32.mxu0 %v7275_v61 }
  0xc0   : > { %1429 = vmatprep.mubr.f32.mxu1 %v7195_v37  ;;  %1924 = vmatprep.subr.mxu1 %v7621_v53  ;;  %v5748_v37 = vld [vmem:[%s10007_s1 + $0x3f8] sm:$0xff] }
  0xc1   : > { %6377 = vmatprep.subr.mxu0 %v688_v10  ;;  %1925 = vmatpush1.msra.mxu1 %v5718_v35  ;;  %v7841_v35 = vld [vmem:[#allocation2 + $0x140] sm:$0xff] }
  0xc2   : > { %1020 = vmatmul.mubr.f32.gmra.mxu0 %v7787_v19  ;;  %1926 = vmatprep.subr.mxu1 %v7621_v53 }
  0xc3   : > { %1430 = vmatmul.mubr.f32.gmra.mxu1 %v7655_v11  ;;  %1024 = vmatprep.mubr.f32.mxu0 %v7288_v1 }
  0xc4   : > { %1434 = vmatprep.mubr.f32.mxu1 %v7211_v41  ;;  %6378 = vmatpush3.msra.mxu0 %v688_v10  ;;  %v7816_v41 = vld [vmem:[#allocation2 + $0x128] sm:$0xff]  ;;  %v7830_v10 = vld [vmem:[#allocation2 + $0x138] sm:$0xff] }
  0xc5   : > { %1927 = vmatpush1.msra.mxu1 %v5717_v27  ;;  %6427 = vmatprep.subr.mxu0 %v7812_v30  ;;  %v5743_v27 = vld [vmem:[%s10007_s1 + $0x3d0] sm:$0xff] }
  0xc6   : > { %1025 = vmatmul.mubr.f32.gmra.mxu0 %v7800_v22  ;;  %1928 = vmatprep.subr.mxu1 %v7621_v53 }
  0xc7   : > { %1435 = vmatmul.mubr.f32.gmra.mxu1 %v7668_v3  ;;  %1029 = vmatprep.mubr.f32.mxu0 %v7291_v2 }
  0xc8   : > { %1439 = vmatprep.mubr.f32.mxu1 %v7214_v42  ;;  %1929 = vmatpush2.msra.mxu1 %v5748_v37  ;;  %v5745_v42 = vld [vmem:[%s10007_s1 + $0x3e0] sm:$0xff]  ;;  %v7854_v37 = vld [vmem:[#allocation2 + $0x150] sm:$0xff] }
  0xc9   : > { %1930 = vmatprep.subr.mxu1 %v7621_v53 }
  0xca   : > { %1030 = vmatmul.mubr.f32.gmra.mxu0 %v7816_v41  ;;  %1931 = vmatpush2.msra.mxu1 %v5747_v23  ;;  %v7865_v23 = vld [vmem:[#allocation2 + $0x158] sm:$0xff] }
  0xcb   : > { %1440 = vmatmul.mubr.f32.gmra.mxu1 %v7681_v5  ;;  %1034 = vmatprep.mubr.f32.mxu0 %v7301_v6 }
  0xcc   : > { %1444 = vmatprep.mubr.f32.mxu1 %v7226_v45  ;;  %1932 = vmatprep.subr.mxu1 %v7621_v53  ;;  %v5744_v45 = vld [vmem:[%s10007_s1 + $0x3d8] sm:$0xff] }
  0xcd   : > { %1933 = vmatpush2.msra.mxu1 %v5746_v18  ;;  %v5740_v18 = vld [vmem:[%s10007_s1 + $0x3b8] sm:$0xff] }
  0xce   : > { %1035 = vmatmul.mubr.f32.gmra.mxu0 %v7830_v10  ;;  %1934 = vmatprep.subr.mxu1 %v7621_v53 }
  0xcf   : > { %1445 = vmatmul.mubr.f32.gmra.mxu1 %v7694_v0  ;;  %1039 = vmatprep.mubr.f32.mxu0 %v7307_v8 }
  0xd0   : > { %1449 = vmatprep.mubr.f32.mxu1 %v7232_v47  ;;  %1935 = vmatpush2.msra.mxu1 %v5745_v42  ;;  %v5742_v47 = vld [vmem:[%s10007_s1 + $0x3c8] sm:$0xff] }
  0xd1   : > { %1936 = vmatprep.subr.mxu1 %v7621_v53  ;;  %v7878_v42 = vld [vmem:[#allocation2 + $0x168] sm:$0xff] }
  0xd2   : > { %1040 = vmatmul.mubr.f32.gmra.mxu0 %v7841_v35  ;;  %1937 = vmatpush2.msra.mxu1 %v5744_v45  ;;  %v7889_v45 = vld [vmem:[#allocation2 + $0x170] sm:$0xff] }
  0xd3   : > { %1450 = vmatmul.mubr.f32.gmra.mxu1 %v7707_v29  ;;  %1044 = vmatprep.mubr.f32.mxu0 %v7322_v12 }
  0xd4   : > { %1454 = vmatprep.mubr.f32.mxu1 %v7241_v49  ;;  %1938 = vmatprep.subr.mxu1 %v7621_v53  ;;  %v5741_v49 = vld [vmem:[%s10007_s1 + $0x3c0] sm:$0xff] }
  0xd5   : > { %1939 = vmatpush2.msra.mxu1 %v5743_v27  ;;  %v5737_v27 = vld [vmem:[%s10007_s1 + $0x3a0] sm:$0xff] }
  0xd6   : > { %1045 = vmatmul.mubr.f32.gmra.mxu0 %v7854_v37  ;;  %1940 = vmatprep.subr.mxu1 %v7621_v53 }
  0xd7   : > { %1455 = vmatmul.mubr.f32.gmra.mxu1 %v7720_v48  ;;  %1049 = vmatprep.mubr.f32.mxu0 %v7325_v13 }
  0xd8   : > { %1459 = vmatprep.mubr.f32.mxu1 %v7244_v51  ;;  %1941 = vmatpush2.msra.mxu1 %v5742_v47  ;;  %v5739_v51 = vld [vmem:[%s10007_s1 + $0x3b0] sm:$0xff]  ;;  %v7902_v47 = vld [vmem:[#allocation2 + $0x180] sm:$0xff] }
  0xd9   : > { %1942 = vmatprep.subr.mxu1 %v7621_v53 }
  0xda   : > { %1050 = vmatmul.mubr.f32.gmra.mxu0 %v7865_v23  ;;  %1943 = vmatpush2.msra.mxu1 %v5741_v49  ;;  %v488_v49 = vld [vmem:[#allocation2 + $0x2] sm:$0xff] }
  0xdb   : > { %1460 = vmatmul.mubr.f32.gmra.mxu1 %v7734_v26  ;;  %1054 = vmatprep.mubr.f32.mxu0 %v7338_v20 }
  0xdc   : > { %1464 = vmatprep.mubr.f32.mxu1 %v7256_v55  ;;  %1944 = vmatprep.subr.mxu1 %v7621_v53  ;;  %v5738_v55 = vld [vmem:[%s10007_s1 + $0x3a8] sm:$0xff] }
  0xdd   : > { %1945 = vmatpush2.msra.mxu1 %v5740_v18  ;;  %v5734_v18 = vld [vmem:[%s10007_s1 + $0x388] sm:$0xff] }
  0xde   : > { %1055 = vmatmul.mubr.f32.gmra.mxu0 %v7878_v42  ;;  %1946 = vmatprep.subr.mxu1 %v7621_v53 }
  0xdf   : > { %1465 = vmatmul.mubr.f32.gmra.mxu1 %v7747_v14  ;;  %1059 = vmatprep.mubr.f32.mxu0 %v7344_v24 }
  0xe0   : > { %1469 = vmatprep.mubr.f32.mxu1 %v7259_v56  ;;  %1947 = vmatpush2.msra.mxu1 %v5739_v51  ;;  %v5736_v56 = vld [vmem:[%s10007_s1 + $0x398] sm:$0xff]  ;;  %v5733_v51 = vld [vmem:[%s10007_s1 + $0x380] sm:$0xff] }
  0xe1   : > { %1948 = vmatprep.subr.mxu1 %v7621_v53 }
  0xe2   : > { %1060 = vmatmul.mubr.f32.gmra.mxu0 %v7889_v45  ;;  %1949 = vmatpush2.msra.mxu1 %v5738_v55  ;;  %v6759_v55 = vld [vmem:[#allocation2 + $0x22] sm:$0xff] }
  0xe3   : > { %1470 = vmatmul.mubr.f32.gmra.mxu1 %v7760_v16  ;;  %1064 = vmatprep.mubr.f32.mxu0 %v7360_v32  ;;  %v7913_v32 = vld [vmem:[#allocation2 + $0x188] sm:$0xff] }
  0xe4   : > { %1474 = vmatprep.mubr.f32.mxu1 %v7269_v59  ;;  %1950 = vmatprep.subr.mxu1 %v7621_v53  ;;  %v5735_v59 = vld [vmem:[%s10007_s1 + $0x390] sm:$0xff] }
  0xe5   : > { %1951 = vmatpush2.msra.mxu1 %v5737_v27  ;;  %v5762_v27 = vld [vmem:[%s10007_s1 + $0x468] sm:$0xff] }
  0xe6   : > { %1065 = vmatmul.mubr.f32.gmra.mxu0 %v7902_v47  ;;  %1952 = vmatprep.subr.mxu1 %v7621_v53 }
  0xe7   : > { %1475 = vmatmul.mubr.f32.gmra.mxu1 %v7774_v31  ;;  %1069 = vmatprep.mubr.f32.mxu0 %v7363_v33  ;;  %v489_v33 = vld [vmem:[#allocation2 + $0xa] sm:$0xff] }
  0xe8   : > { %1479 = vmatprep.mubr.f32.mxu1 %v7275_v61  ;;  %1953 = vmatpush2.msra.mxu1 %v5736_v56  ;;  %v5763_v61 = vld [vmem:[%s10007_s1 + $0x470] sm:$0xff] }
  0xe9   : > { %1954 = vmatprep.subr.mxu1 %v7621_v53  ;;  %v7942_v56 = vld [vmem:[#allocation2 + $0x32] sm:$0xff] }
  0xea   : > { %1070 = vmatmul.mubr.f32.gmra.mxu0 %v7913_v32  ;;  %1955 = vmatpush2.msra.mxu1 %v5735_v59  ;;  %v7953_v59 = vld [vmem:[#allocation2 + $0x4a] sm:$0xff] }
  0xeb   : > { %1480 = vmatmul.mubr.f32.gmra.mxu1 %v7787_v19  ;;  %6379 = vmatprep.mubr.f32.mxu0 %v488_v49  ;;  %v6766_v49 = vld [vmem:[#allocation2 + $0x51] sm:$0xff] }
  0xec   : > { %1484 = vmatprep.mubr.f32.mxu1 %v7288_v1  ;;  %1956 = vmatprep.subr.mxu1 %v7621_v53  ;;  %v6758_v1 = vld [vmem:[#allocation2 + $0x1a] sm:$0xff] }
  0xed   : > { %1957 = vmatpush2.msra.mxu1 %v5734_v18 }
  0xee   : > { %6380 = vmatmul.mubr.f32.vlgmr.msra.gmra.mxu0 %v489_v33  ;;  %1958 = vmatprep.subr.mxu1 %v7621_v53 }
  0xef   : > { %1485 = vmatmul.mubr.f32.gmra.mxu1 %v7800_v22  ;;  %6428 = vmatpush3.msra.mxu0 %v7812_v30  ;;  %v5761_v30 = vld [vmem:[%s10007_s1 + $0x460] sm:$0xff] }
  0xf0   : > { %1489 = vmatprep.mubr.f32.mxu1 %v7291_v2  ;;  %6382 = vmatprep.mubr.f32.mxu0 %v6758_v1  ;;  %v7945_v2 = vld [vmem:[#allocation2 + $0x3a] sm:$0xff] }
  0xf1   : > { %6429 = vmatprep.subr.mxu0 %v5763_v61  ;;  %1959 = vmatpush2.msra.mxu1 %v5733_v51  ;;  %v10066_v1 = vld [vmem:[#allocation8_spill] sm:$0xff] }
  0xf2   : > { %6383 = vmatmul.mubr.f32.gmra.mxu0 %v6759_v55  ;;  %v5751_v55 = vld [vmem:[%s10007_s1 + $0x410] sm:$0xff] }
  0xf3   : > { %1490 = vmatmul.mubr.f32.gmra.mxu1 %v7816_v41  ;;  %6430 = vmatpush3.msra.mxu0 %v5763_v61  ;;  %v6767_v61 = vld [vmem:[#allocation2 + $0x61] sm:$0xff] }
  0xf4   : > { %1494 = vmatprep.mubr.f32.mxu1 %v7301_v6  ;;  %6385 = vmatprep.mubr.f32.mxu0 %v7942_v56  ;;  %v5760_v6 = vld [vmem:[%s10007_s1 + $0x458] sm:$0xff] }
  0xf5   : > { %6431 = vmatprep.subr.mxu0 %v5762_v27 }
  0xf6   : > { %6386 = vmatmul.mubr.f32.gmra.mxu0 %v7945_v2 }
  0xf7   : > { %1495 = vmatmul.mubr.f32.gmra.mxu1 %v7830_v10  ;;  %6432 = vmatpush3.msra.mxu0 %v5762_v27  ;;  %v6768_v27 = vld [vmem:[#allocation2 + $0x69] sm:$0xff] }
  0xf8   : > { %1499 = vmatprep.mubr.f32.mxu1 %v7307_v8  ;;  %6388 = vmatprep.mubr.f32.mxu0 %v7953_v59  ;;  %v5759_v8 = vld [vmem:[%s10007_s1 + $0x450] sm:$0xff] }
  0xf9   : > { %6433 = vmatprep.subr.mxu0 %v5761_v30 }
  0xfa   : > { %6389 = vmatmul.mubr.f32.gmra.mxu0 %v7312_v9  ;;  %v5758_v9 = vld [vmem:[%s10007_s1 + $0x448] sm:$0xff] }
  0xfb   : > { %1500 = vmatmul.mubr.f32.gmra.mxu1 %v7841_v35  ;;  %6434 = vmatpush3.msra.mxu0 %v5761_v30 }
  0xfc   : > { %1504 = vmatprep.mubr.f32.mxu1 %v7322_v12  ;;  %6391 = vmatprep.mubr.f32.mxu0 %v7335_v17 }
  0xfd   : > { %6435 = vmatprep.subr.mxu0 %v5760_v6 }
  0xfe   : > { %6392 = vmatmul.mubr.f32.gmra.mxu0 %v7349_v25 }
  0xff   : > { %1505 = vmatmul.mubr.f32.gmra.mxu1 %v7854_v37  ;;  %6436 = vmatpush3.msra.mxu0 %v5760_v6  ;;  %v10068_v6 = vld [vmem:[#allocation10_spill] sm:$0xff] }
 0x100   : > { %1509 = vmatprep.mubr.f32.mxu1 %v7325_v13  ;;  %6394 = vmatprep.mubr.f32.mxu0 %v7373_v36  ;;  %v5757_v13 = vld [vmem:[%s10007_s1 + $0x440] sm:$0xff]  ;;  %v5756_v36 = vld [vmem:[%s10007_s1 + $0x438] sm:$0xff] }
 0x101   : > { %6437 = vmatprep.subr.mxu0 %v5759_v8 }
 0x102   : > { %6395 = vmatmul.mubr.f32.gmra.mxu0 %v7380_v39  ;;  %v6763_v39 = vld [vmem:[#allocation2 + $0x31] sm:$0xff] }
 0x103   : > { %1510 = vmatmul.mubr.f32.gmra.mxu1 %v7865_v23  ;;  %6438 = vmatpush3.msra.mxu0 %v5759_v8  ;;  %v5750_v8 = vld [vmem:[%s10007_s1 + $0x408] sm:$0xff] }
 0x104   : > { %1514 = vmatprep.mubr.f32.mxu1 %v7338_v20  ;;  %6397 = vmatprep.mubr.f32.mxu0 %v7395_v46 }
 0x105   : > { %6439 = vmatprep.subr.mxu0 %v5758_v9 }
 0x106   : > { %6398 = vmatmul.mubr.f32.gmra.mxu0 %v7402_v50 }
 0x107   : > { %1515 = vmatmul.mubr.f32.gmra.mxu1 %v7878_v42  ;;  %6440 = vmatpush3.msra.mxu0 %v5758_v9 }
 0x108   : > { %1519 = vmatprep.mubr.f32.mxu1 %v7344_v24  ;;  %6400 = vmatprep.mubr.f32.mxu0 %v7417_v57  ;;  %v5755_v24 = vld [vmem:[%s10007_s1 + $0x430] sm:$0xff]  ;;  %v6764_v57 = vld [vmem:[#allocation2 + $0x39] sm:$0xff] }
 0x109   : > { %6441 = vmatprep.subr.mxu0 %v5757_v13 }
 0x10a   : > { %6401 = vmatmul.mubr.f32.gmra.mxu0 %v7424_v60 }
 0x10b   : > { %v7974_v12 = vpop.f32.mrf.mxu1  ;;  %1520 = vmatmul.mubr.f32.gmra.mxu1 %v7889_v45  ;;  %6442 = vmatpush3.msra.mxu0 %v5757_v13  ;;  %v6769_v13 = vld [vmem:[#allocation2 + $0x79] sm:$0xff] }
 0x10c   : > { %6403 = vmatprep.mubr.f32.mxu0 %v7439_v4  ;;  %1960 = vmatprep.mubr.f32.mxu1 %v6763_v39  ;;  %v5754_v4 = vld [vmem:[%s10007_s1 + $0x428] sm:$0xff]  ;;  %v10070_v39 = vld [vmem:[#allocation12_spill] sm:$0xff] }
 0x10d   : > { %v7979_v17 = vpop.f32.mrf.mxu1  ;;  %6443 = vmatprep.subr.mxu0 %v5756_v36 }
 0x10e   : > { %6404 = vmatmul.mubr.f32.gmra.mxu0 %v7446_v7 }
 0x10f   : > { %v7986_v25 = vpop.f32.mrf.mxu1  ;;  %1961 = vmatmul.mubr.f32.vlgmr.msra.gmra.mxu1 %v7510_v63  ;;  %6444 = vmatpush3.msra.mxu0 %v5756_v36  ;;  %v6765_v63 = vld [vmem:[#allocation2 + $0x49] sm:$0xff] }
 0x110   : > { %6406 = vmatprep.mubr.f32.mxu0 %v7461_v21  ;;  %1965 = vmatprep.mubr.f32.mxu1 %v6764_v57  ;;  %v5753_v21 = vld [vmem:[%s10007_s1 + $0x420] sm:$0xff] }
 0x111   : > { %v7990_v20 = vpop.f32.mrf.mxu1  ;;  %6445 = vmatprep.subr.mxu0 %v5755_v24 }
 0x112   : > { %6407 = vmatmul.mubr.f32.gmra.mxu0 %v7470_v34 }
 0x113   : > { %v7998_v46 = vpop.f32.mrf.mxu1  ;;  %1966 = vmatmul.mubr.f32.gmra.mxu1 %v7527_v15  ;;  %6446 = vmatpush3.msra.mxu0 %v5755_v24  ;;  %v10063_v15 = vld [vmem:[#allocation5_spill] sm:$0xff] }
 0x114   : > { %6409 = vmatprep.mubr.f32.mxu0 %v7483_v43  ;;  %1970 = vmatprep.mubr.f32.mxu1 %v6765_v63  ;;  %v10064_v43 = vld [vmem:[#allocation6_spill] sm:$0xff]  ;;  %v5749_v24 = vld [vmem:[%s10007_s1 + $0x400] sm:$0xff] }
 0x115   : > { %v8004_v50 = vpop.f32.mrf.mxu1  ;;  %6447 = vmatprep.subr.mxu0 %v5754_v4  ;;  %v10072_v63 = vld [vmem:[#allocation14_spill] sm:$0xff] }
 0x116   : > { %6410 = vmatmul.mubr.f32.gmra.mxu0 %v7490_v52  ;;  %v5752_v52 = vld [vmem:[%s10007_s1 + $0x418] sm:$0xff] }
 0x117   : > { %v8008_v60 = vpop.f32.mrf.mxu1  ;;  %1971 = vmatmul.mubr.f32.gmra.mxu1 %v7549_v58  ;;  %6448 = vmatpush3.msra.mxu0 %v5754_v4  ;;  %v10065_v58 = vld [vmem:[#allocation7_spill] sm:$0xff]  ;;  %v6770_v4 = vld [vmem:[#allocation2 + $0x81] sm:$0xff] }
 0x118   : > { %6412 = vmatprep.mubr.f32.mxu0 %v10063_v15  ;;  %1975 = vmatprep.mubr.f32.mxu1 %v6766_v49 }
 0x119   : > { %v8015_v7 = vpop.f32.mrf.mxu1  ;;  %6449 = vmatprep.subr.mxu0 %v5753_v21 }
 0x11a   : > { %6413 = vmatmul.mubr.f32.gmra.mxu0 %v10064_v43 }
 0x11b   : > { %v8022_v34 = vpop.f32.mrf.mxu1  ;;  %1976 = vmatmul.mubr.f32.gmra.mxu1 %v7566_v40  ;;  %6450 = vmatpush3.msra.mxu0 %v5753_v21  ;;  %v10067_v40 = vld [vmem:[#allocation9_spill] sm:$0xff] }
 0x11c   : > { %6415 = vmatprep.mubr.f32.mxu0 %v10065_v58  ;;  %1980 = vmatprep.mubr.f32.mxu1 %v6767_v61 }
 0x11d   : > { %v8026_v18 = vpop.f32.mrf.mxu1  ;;  %6451 = vmatprep.subr.mxu0 %v5752_v52 }
 0x11e   : > { %6416 = vmatmul.mubr.f32.gmra.mxu0 %v10066_v1 }
 0x11f   : > { %v8033_v33 = vpop.f32.mrf.mxu1  ;;  %1981 = vmatmul.mubr.f32.gmra.mxu1 %v7588_v38  ;;  %6452 = vmatpush3.msra.mxu0 %v5752_v52  ;;  %v10069_v38 = vld [vmem:[#allocation11_spill] sm:$0xff] }
 0x120   : > { %6418 = vmatprep.mubr.f32.mxu0 %v10067_v40  ;;  %1985 = vmatprep.mubr.f32.mxu1 %v6768_v27  ;;  %v6775_v40 = vld [vmem:[#allocation2 + $0xa9] sm:$0xff] }
 0x121   : > { %v8036_v51 = vpop.f32.mrf.mxu1  ;;  %6453 = vmatprep.subr.mxu0 %v5751_v55 }
 0x122   : > { %6419 = vmatmul.mubr.f32.gmra.mxu0 %v10068_v6 }
 0x123   : > { %v8044_v30 = vpop.f32.mrf.mxu1  ;;  %1986 = vmatmul.mubr.f32.gmra.mxu1 %v7603_v62  ;;  %6454 = vmatpush3.msra.mxu0 %v5751_v55  ;;  %v10071_v62 = vld [vmem:[#allocation13_spill] sm:$0xff]  ;;  %v6773_v55 = vld [vmem:[#allocation2 + $0x52] sm:$0xff] }
 0x124   : > { %6421 = vmatprep.mubr.f32.mxu0 %v10069_v38  ;;  %1990 = vmatprep.mubr.f32.mxu1 %v6769_v13  ;;  %v6777_v38 = vld [vmem:[#allocation2 + $0x7a] sm:$0xff] }
 0x125   : > { %v8050_v9 = vpop.f32.mrf.mxu1  ;;  %6455 = vmatprep.subr.mxu0 %v5750_v8 }
 0x126   : > { %6422 = vmatmul.mubr.f32.gmra.mxu0 %v10070_v39  ;;  %v916_v21 = vpop.f32.mrf.mxu0 }
 0x127   : > { %v8054_v36 = vpop.f32.mrf.mxu1  ;;  %1991 = vmatmul.mubr.f32.gmra.mxu1 %v7619_v44  ;;  %6456 = vmatpush3.msra.mxu0 %v5750_v8  ;;  %v8069_v49 = vadd.f32 %v7979_v17, %v916_v21  ;;  %v6771_v44 = vld [vmem:[#allocation2 + $0x91] sm:$0xff]  ;;  %v6772_v17 = vld [vmem:[#allocation2 + $0x99] sm:$0xff] }
 0x128   : > { %6424 = vmatprep.mubr.f32.mxu0 %v10071_v62  ;;  %1995 = vmatprep.mubr.f32.mxu1 %v6770_v4  ;;  %v918_v43 = vpop.f32.mrf.mxu0 }
 0x129   : > { %v8061_v57 = vpop.f32.mrf.mxu1  ;;  %6457 = vmatprep.subr.mxu0 %v5749_v24 }
 0x12a   : > { %6425 = vmatmul.mubr.f32.gmra.mxu0 %v10072_v63  ;;  %v6780_v63 = vld [vmem:[#allocation2 + $0x92] sm:$0xff] }
 0x12b   : > { %v8065_v15 = vpop.f32.mrf.mxu1  ;;  %1996 = vmatmul.mubr.f32.gmra.mxu1 %v7629_v54  ;;  %6458 = vmatpush3.msra.mxu0 %v5749_v24 }
 0x12c   : > { %2000 = vmatprep.mubr.f32.mxu1 %v6771_v44  ;;  %6459 = vmatprep.mubr.f32.mxu0 %v7942_v56 }
 0x12d   : > { %v8072_v52 = vpop.f32.mrf.mxu1  ;;  %2986 = vmatprep.subr.mxu0 %v7621_v53 }
 0x12e   : > { %6460 = vmatmul.mubr.f32.vlgmr.msra.gmra.mxu0 %v7945_v2  ;;  %v921_v54 = vpop.f32.mrf.mxu0  ;;  %v6774_v2 = vld [vmem:[#allocation2 + $0x62] sm:$0xff] }
 0x12f   : > { %2001 = vmatmul.mubr.f32.gmra.mxu1 %v7642_v28  ;;  %6462 = vmatprep.mubr.f32.mxu0 %v7953_v59  ;;  %v8078_v58 = vpop.f32.mrf.mxu1  ;;  %v8081_v61 = vadd.f32 %v7974_v12, %v921_v54  ;;  %v6776_v12 = vld [vmem:[#allocation2 + $0x6a] sm:$0xff]  ;;  %v6782_v54 = vld [vmem:[#allocation2 + $0x9a] sm:$0xff] }
 0x130   : > { %2005 = vmatprep.mubr.f32.mxu1 %v6772_v17  ;;  %v923_v56 = vpop.f32.mrf.mxu0 }
 0x131   : > { %v8083_v1 = vpop.f32.mrf.mxu1  ;;  %v6783_v56 = vld [vmem:[#allocation2 + $0xaa] sm:$0xff] }
 0x132   : > { %6463 = vmatmul.mubr.f32.gmra.mxu0 %v6773_v55  ;;  %v6784_v55 = vld [vmem:[#allocation2 + $0xc9] sm:$0xff] }
 0x133   : > { %2006 = vmatmul.mubr.f32.gmra.mxu1 %v7655_v11  ;;  %6465 = vmatprep.mubr.f32.mxu0 %v6774_v2  ;;  %v926_v28 = vpop.f32.mrf.mxu0  ;;  %v8089_v27 = vpop.f32.mrf.mxu1  ;;  %v6778_v11 = vld [vmem:[#allocation2 + $0xb1] sm:$0xff] }
 0x134   : > { %2010 = vmatprep.mubr.f32.mxu1 %v6775_v40  ;;  %v8087_v59 = vadd.f32 %v7990_v20, %v926_v28  ;;  %v6779_v20 = vld [vmem:[#allocation2 + $0x82] sm:$0xff]  ;;  %v6785_v40 = vld [vmem:[#allocation2 + $0xb2] sm:$0xff] }
 0x135   : > { %v928_v6 = vpop.f32.mrf.mxu0  ;;  %v8091_v8 = vpop.f32.mrf.mxu1 }
 0x136   : > { %6466 = vmatmul.mubr.f32.gmra.mxu0 %v6776_v12  ;;  %v5829_v6 = vld [vmem:[%s10007_s1 + $0x678] sm:$0xff] }
 0x137   : > { %2011 = vmatmul.mubr.f32.gmra.mxu1 %v7668_v3  ;;  %6468 = vmatprep.mubr.f32.mxu0 %v6777_v38  ;;  %v931_v13 = vpop.f32.mrf.mxu0  ;;  %v6781_v3 = vld [vmem:[#allocation2 + $0xc1] sm:$0xff] }
 0x138   : > { %2015 = vmatprep.mubr.f32.mxu1 %v6778_v11  ;;  %v8094_v39 = vpop.f32.mrf.mxu1  ;;  %v8097_v24 = vadd.f32 %v7986_v25, %v931_v13  ;;  %v5861_v25 = vld [vmem:[%s10007_s1 + $0x778] sm:$0xff]  ;;  %v6786_v38 = vld [vmem:[#allocation2 + $0xc2] sm:$0xff]  ;;  %2987 = vmatpush1.msra.mxu0 %v5829_v6 }
 0x139   : > { %v933_v62 = vpop.f32.mrf.mxu0  ;;  %6507 = vmatprep.subr.mxu1 %v5861_v25  ;;  %v6787_v11 = vld [vmem:[#allocation2 + $0xd9] sm:$0xff]  ;;  %2988 = vmatprep.subr.mxu0 %v7621_v53 }
 0x13a   : > { %6469 = vmatmul.mubr.f32.gmra.mxu0 %v6779_v20  ;;  %v8099_v4 = vpop.f32.mrf.mxu1  ;;  %6508 = vmatpush3.msra.mxu1 %v5861_v25  ;;  %v5828_v20 = vld [vmem:[%s10007_s1 + $0x670] sm:$0xff] }
 0x13b   : > { %2016 = vmatmul.mubr.f32.gmra.mxu1 %v7681_v5  ;;  %6471 = vmatprep.mubr.f32.mxu0 %v6780_v63  ;;  %v6788_v63 = vld [vmem:[#allocation2 + $0xca] sm:$0xff] }
 0x13c   : > { %2020 = vmatprep.mubr.f32.mxu1 %v6781_v3  ;;  %v936_v21 = vpop.f32.mrf.mxu0  ;;  %v8105_v43 = vpop.f32.mrf.mxu1  ;;  %2989 = vmatpush1.msra.mxu0 %v5828_v20  ;;  %v6795_v20 = vld [vmem:[#allocation2 + $0x10a] sm:$0xff] }
 0x13d   : > { %v8103_v44 = vadd.f32 %v8004_v50, %v936_v21  ;;  %v6789_v21 = vld [vmem:[#allocation2 + $0xda] sm:$0xff]  ;;  %2990 = vmatprep.subr.mxu0 %v7621_v53 }
 0x13e   : > { %6472 = vmatmul.mubr.f32.gmra.mxu0 %v6782_v54  ;;  %v938_v17 = vpop.f32.mrf.mxu0  ;;  %v8111_v5 = vpop.f32.mrf.mxu1  ;;  %v6790_v54 = vld [vmem:[#allocation2 + $0xe1] sm:$0xff] }
 0x13f   : > { %2021 = vmatmul.mubr.f32.gmra.mxu1 %v7694_v0  ;;  %6474 = vmatprep.mubr.f32.mxu0 %v6783_v56 }
 0x140   : > { %2025 = vmatprep.mubr.f32.mxu1 %v6784_v55  ;;  %v941_v50 = vpop.f32.mrf.mxu0  ;;  %v6791_v55 = vld [vmem:[#allocation2 + $0xe2] sm:$0xff] }
 0x141   : > { %v8113_v2 = vpop.f32.mrf.mxu1  ;;  %v8116_v28 = vadd.f32 %v7998_v46, %v941_v50  ;;  %v5860_v46 = vld [vmem:[%s10007_s1 + $0x770] sm:$0xff] }
 0x142   : > { %6475 = vmatmul.mubr.f32.gmra.mxu0 %v6785_v40  ;;  %v943_v0 = vpop.f32.mrf.mxu0  ;;  %6509 = vmatprep.subr.mxu1 %v5860_v46  ;;  %v6792_v50 = vld [vmem:[#allocation2 + $0xf2] sm:$0xff] }
 0x143   : > { %2026 = vmatmul.mubr.f32.gmra.mxu1 %v7707_v29  ;;  %v8122_v12 = vpop.f32.mrf.mxu1  ;;  %6477 = vmatprep.mubr.f32.mxu0 %v6786_v38  ;;  %v6793_v0 = vld [vmem:[#allocation2 + $0xf1] sm:$0xff]  ;;  %v5826_v38 = vld [vmem:[%s10007_s1 + $0x660] sm:$0xff] }
 0x144   : > { %2030 = vmatprep.mubr.f32.mxu1 %v6787_v11  ;;  %6510 = vmatpush3.msra.mxu1 %v5860_v46 }
 0x145   : > { %v946_v13 = vpop.f32.mrf.mxu0  ;;  %v8134_v62 = vpop.f32.mrf.mxu1 }
 0x146   : > { %v8132_v29 = vadd.f32 %v8015_v7, %v946_v13  ;;  %6478 = vmatmul.mubr.f32.gmra.mxu0 %v6788_v63  ;;  %v5827_v7 = vld [vmem:[%s10007_s1 + $0x668] sm:$0xff] }
 0x147   : > { %2031 = vmatmul.mubr.f32.gmra.mxu1 %v7720_v48  ;;  %v948_v3 = vpop.f32.mrf.mxu0  ;;  %6480 = vmatprep.mubr.f32.mxu0 %v6789_v21  ;;  %v8137_v25 = vpop.f32.mrf.mxu1  ;;  %v6796_v21 = vld [vmem:[#allocation2 + $0xf9] sm:$0xff] }
 0x148   : > { %2035 = vmatprep.mubr.f32.mxu1 %v6790_v54  ;;  %2991 = vmatpush1.msra.mxu0 %v5827_v7 }
 0x149   : > { %v951_v17 = vpop.f32.mrf.mxu0  ;;  %2992 = vmatprep.subr.mxu0 %v7621_v53 }
 0x14a   : > { %v8143_v56 = vpop.f32.mrf.mxu1  ;;  %6481 = vmatmul.mubr.f32.gmra.mxu0 %v6791_v55  ;;  %v8146_v48 = vadd.f32 %v8008_v60, %v951_v17  ;;  %v5859_v60 = vld [vmem:[%s10007_s1 + $0x768] sm:$0xff]  ;;  %v6797_v17 = vld [vmem:[#allocation2 + $0x112] sm:$0xff] }
 0x14b   : > { %2036 = vmatmul.mubr.f32.gmra.mxu1 %v7734_v26  ;;  %6483 = vmatprep.mubr.f32.mxu0 %v6792_v50  ;;  %v953_v40 = vpop.f32.mrf.mxu0  ;;  %v6794_v26 = vld [vmem:[#allocation2 + $0xfa] sm:$0xff]  ;;  %v6798_v55 = vld [vmem:[#allocation2 + $0x122] sm:$0xff] }
 0x14c   : > { %v8149_v6 = vpop.f32.mrf.mxu1  ;;  %2040 = vmatprep.mubr.f32.mxu1 %v6793_v0  ;;  %6511 = vmatprep.subr.mxu1 %v5859_v60  ;;  %v6799_v0 = vld [vmem:[#allocation2 + $0x109] sm:$0xff] }
 0x14d   : > { %2993 = vmatpush1.msra.mxu0 %v5826_v38  ;;  %6512 = vmatpush3.msra.mxu1 %v5859_v60 }
 0x14e   : > { %v956_v11 = vpop.f32.mrf.mxu0  ;;  %6484 = vmatmul.mubr.f32.gmra.mxu0 %v6794_v26  ;;  %v1366_v46 = vpop.f32.mrf.mxu1  ;;  %2994 = vmatprep.subr.mxu0 %v7621_v53 }
 0x14f   : > { %v8159_v13 = vadd.f32 %v8026_v18, %v956_v11  ;;  %2041 = vmatmul.mubr.f32.gmra.mxu1 %v7747_v14  ;;  %6486 = vmatprep.mubr.f32.mxu0 %v6795_v20  ;;  %v8163_v63 = vadd.f32 %v1366_v46, %v8069_v49  ;;  %v5825_v18 = vld [vmem:[%s10007_s1 + $0x658] sm:$0xff]  ;;  %v6800_v11 = vld [vmem:[#allocation2 + $0x12a] sm:$0xff] }
 0x150   : > { %v958_v3 = vpop.f32.mrf.mxu0  ;;  %2045 = vmatprep.mubr.f32.mxu1 %v6796_v21  ;;  %v1368_v54 = vpop.f32.mrf.mxu1  ;;  %2995 = vmatpush1.msra.mxu0 %v5825_v18  ;;  %v6801_v46 = vld [vmem:[#allocation2 + $0x13a] sm:$0xff]  ;;  %v6804_v18 = vld [vmem:[#allocation2 + $0x142] sm:$0xff] }
 0x151   : > { %2996 = vmatprep.subr.mxu0 %v7621_v53  ;;  %v6802_v3 = vld [vmem:[#allocation2 + $0x111] sm:$0xff]  ;;  %v8190_v54 = vld [vmem:[#allocation2] sm:$0xff] }
 0x152   : > { %v961_v7 = vpop.f32.mrf.mxu0  ;;  %6487 = vmatmul.mubr.f32.gmra.mxu0 %v6797_v17  ;;  %v6805_v17 = vld [vmem:[#allocation2 + $0x152] sm:$0xff] }
 0x153   : > { %v8170_v14 = vadd.f32 %v8022_v34, %v961_v7  ;;  %v1371_v49 = vpop.f32.mrf.mxu1  ;;  %2046 = vmatmul.mubr.f32.gmra.mxu1 %v7760_v16  ;;  %6489 = vmatprep.mubr.f32.mxu0 %v6798_v55  ;;  %v5824_v34 = vld [vmem:[%s10007_s1 + $0x650] sm:$0xff]  ;;  %v5858_v16 = vld [vmem:[%s10007_s1 + $0x760] sm:$0xff] }
 0x154   : > { %v8174_v50 = vadd.f32 %v1371_v49, %v8081_v61  ;;  %v963_v40 = vpop.f32.mrf.mxu0  ;;  %2050 = vmatprep.mubr.f32.mxu1 %v6799_v0  ;;  %6513 = vmatprep.subr.mxu1 %v5858_v16 }
 0x155   : > { %v1373_v38 = vpop.f32.mrf.mxu1  ;;  %2997 = vmatpush1.msra.mxu0 %v5824_v34  ;;  %6514 = vmatpush3.msra.mxu1 %v5858_v16  ;;  %v6806_v40 = vld [vmem:[#allocation2 + $0x121] sm:$0xff] }
 0x156   : > { %v966_v60 = vpop.f32.mrf.mxu0  ;;  %6490 = vmatmul.mubr.f32.gmra.mxu0 %v6800_v11  ;;  %2998 = vmatprep.subr.mxu0 %v8190_v54  ;;  %v6807_v34 = vld [vmem:[#allocation2 + $0x15a] sm:$0xff] }
 0x157   : > { %v8184_v61 = vadd.f32 %v8036_v51, %v966_v60  ;;  %v1376_v26 = vpop.f32.mrf.mxu1  ;;  %2051 = vmatmul.mubr.f32.gmra.mxu1 %v7774_v31  ;;  %6492 = vmatprep.mubr.f32.mxu0 %v6801_v46  ;;  %v5823_v51 = vld [vmem:[%s10007_s1 + $0x648] sm:$0xff] }
 0x158   : > { %v8188_v53 = vadd.f32 %v1376_v26, %v8087_v59  ;;  %v968_v20 = vpop.f32.mrf.mxu0  ;;  %2055 = vmatprep.mubr.f32.mxu1 %v6802_v3  ;;  %2999 = vmatpush1.msra.mxu0 %v5823_v51  ;;  %v6808_v60 = vld [vmem:[#allocation2 + $0x16a] sm:$0xff] }
 0x159   : > { %v1378_v21 = vpop.f32.mrf.mxu1  ;;  %3000 = vmatprep.subr.mxu0 %v8190_v54  ;;  %v6809_v46 = vld [vmem:[#allocation2 + $0x129] sm:$0xff] }
 0x15a   : > { %v971_v31 = vpop.f32.mrf.mxu0  ;;  %6493 = vmatmul.mubr.f32.gmra.mxu0 %v6804_v18  ;;  %v6812_v18 = vld [vmem:[#allocation2 + $0x139] sm:$0xff] }
 0x15b   : > { %v8197_v59 = vadd.f32 %v8033_v33, %v971_v31  ;;  %v1381_v7 = vpop.f32.mrf.mxu1  ;;  %2056 = vmatmul.mubr.f32.gmra.mxu1 %v7787_v19  ;;  %6495 = vmatprep.mubr.f32.mxu0 %v6805_v17  ;;  %v5822_v33 = vld [vmem:[%s10007_s1 + $0x640] sm:$0xff]  ;;  %v5857_v19 = vld [vmem:[%s10007_s1 + $0x758] sm:$0xff] }
 0x15c   : > { %v8201_v49 = vadd.f32 %v1381_v7, %v8097_v24  ;;  %v973_v55 = vpop.f32.mrf.mxu0  ;;  %2060 = vmatprep.mubr.f32.mxu1 %v6806_v40  ;;  %6515 = vmatprep.subr.mxu1 %v5857_v19  ;;  %v522_v7 = vld [vmem:[#allocation2 + $0x19a] sm:$0xff] }
 0x15d   : > { %v1383_v0 = vpop.f32.mrf.mxu1  ;;  %3001 = vmatpush1.msra.mxu0 %v5822_v33  ;;  %6516 = vmatpush3.msra.mxu1 %v5857_v19  ;;  %v5820_v55 = vld [vmem:[%s10007_s1 + $0x630] sm:$0xff]  ;;  %v523_v19 = vld [vmem:[#allocation2 + $0x1a2] sm:$0xff] }
 0x15e   : > { %v976_v38 = vpop.f32.mrf.mxu0  ;;  %6496 = vmatmul.mubr.f32.gmra.mxu0 %v6807_v34  ;;  %3002 = vmatprep.subr.mxu0 %v8190_v54  ;;  %v6813_v0 = vld [vmem:[#allocation2 + $0x18a] sm:$0xff] }
 0x15f   : > { %v8211_v24 = vadd.f32 %v8050_v9, %v976_v38  ;;  %v1386_v16 = vpop.f32.mrf.mxu1  ;;  %2061 = vmatmul.mubr.f32.gmra.mxu1 %v7800_v22  ;;  %6498 = vmatprep.mubr.f32.mxu0 %v6808_v60  ;;  %v5821_v9 = vld [vmem:[%s10007_s1 + $0x638] sm:$0xff]  ;;  %v5819_v60 = vld [vmem:[%s10007_s1 + $0x628] sm:$0xff] }
 0x160   : > { %v8215_v11 = vadd.f32 %v1386_v16, %v8103_v44  ;;  %v978_v26 = vpop.f32.mrf.mxu0  ;;  %2065 = vmatprep.mubr.f32.mxu1 %v6809_v46  ;;  %v6810_v22 = vld [vmem:[#allocation2 + $0x172] sm:$0xff]  ;;  %v6811_v44 = vld [vmem:[#allocation2 + $0x182] sm:$0xff]  ;;  %3003 = vmatpush1.msra.mxu0 %v5821_v9 }
 0x161   : > { %v1388_v20 = vpop.f32.mrf.mxu1  ;;  %3004 = vmatprep.subr.mxu0 %v8190_v54  ;;  %v6814_v16 = vld [vmem:[#allocation2 + $0x141] sm:$0xff]  ;;  %v6815_v9 = vld [vmem:[#allocation2 + $0x151] sm:$0xff] }
 0x162   : > { %v8221_v3 = vpop.f32.mrf.mxu0  ;;  %6499 = vmatmul.mubr.f32.gmra.mxu0 %v6810_v22  ;;  %v5817_v22 = vld [vmem:[%s10007_s1 + $0x618] sm:$0xff] }
 0x163   : > { %v1391_v21 = vpop.f32.mrf.mxu1  ;;  %2066 = vmatmul.mubr.f32.gmra.mxu1 %v7816_v41  ;;  %6501 = vmatprep.mubr.f32.mxu0 %v6811_v44  ;;  %v5856_v41 = vld [vmem:[%s10007_s1 + $0x750] sm:$0xff]  ;;  %v5855_v44 = vld [vmem:[%s10007_s1 + $0x748] sm:$0xff] }
 0x164   : > { %v8225_v51 = vadd.f32 %v1391_v21, %v8116_v28  ;;  %v983_v31 = vpop.f32.mrf.mxu0  ;;  %2070 = vmatprep.mubr.f32.mxu1 %v6812_v18  ;;  %6517 = vmatprep.subr.mxu1 %v5856_v41 }
 0x165   : > { %v1393_v17 = vpop.f32.mrf.mxu1  ;;  %3005 = vmatpush1.msra.mxu0 %v5820_v55  ;;  %6518 = vmatpush3.msra.mxu1 %v5856_v41  ;;  %v6816_v55 = vld [vmem:[#allocation2 + $0x159] sm:$0xff]  ;;  %v5815_v41 = vld [vmem:[%s10007_s1 + $0x608] sm:$0xff] }
 0x166   : > { %v986_v40 = vpop.f32.mrf.mxu0  ;;  %6502 = vmatmul.mubr.f32.gmra.mxu0 %v6813_v0  ;;  %3006 = vmatprep.subr.mxu0 %v8190_v54 }
 0x167   : > { %v8235_v28 = vadd.f32 %v8061_v57, %v986_v40  ;;  %v1396_v33 = vpop.f32.mrf.mxu1  ;;  %2071 = vmatmul.mubr.f32.gmra.mxu1 %v7830_v10  ;;  %6504 = vmatprep.mubr.f32.mxu0 %v522_v7  ;;  %v5818_v10 = vld [vmem:[%s10007_s1 + $0x620] sm:$0xff] }
 0x168   : > { %v8239_v38 = vadd.f32 %v1396_v33, %v8132_v29  ;;  %v988_v34 = vpop.f32.mrf.mxu0  ;;  %2075 = vmatprep.mubr.f32.mxu1 %v6814_v16  ;;  %3007 = vmatpush1.msra.mxu0 %v5819_v60  ;;  %v5853_v33 = vld [vmem:[%s10007_s1 + $0x738] sm:$0xff]  ;;  %v6817_v16 = vld [vmem:[#allocation2 + $0x169] sm:$0xff] }
 0x169   : > { %v1398_v26 = vpop.f32.mrf.mxu1  ;;  %3008 = vmatprep.subr.mxu0 %v8190_v54  ;;  %6519 = vmatprep.subr.mxu1 %v5855_v44  ;;  %v5845_v60 = vld [vmem:[%s10007_s1 + $0x6f8] sm:$0xff] }
 0x16a   : > { %v8245_v57 = vpop.f32.mrf.mxu0  ;;  %6505 = vmatmul.mubr.f32.gmra.mxu0 %v523_v19  ;;  %6520 = vmatpush3.msra.mxu1 %v5855_v44 }
 0x16b   : > { %v1401_v29 = vpop.f32.mrf.mxu1  ;;  %2076 = vmatmul.mubr.f32.gmra.mxu1 %v7841_v35  ;;  %3009 = vmatpush1.msra.mxu0 %v5818_v10 }
 0x16c   : > { %v8252_v46 = vadd.f32 %v1401_v29, %v8146_v48  ;;  %v993_v20 = vpop.f32.mrf.mxu0  ;;  %2080 = vmatprep.mubr.f32.mxu1 %v6815_v9  ;;  %3010 = vmatprep.subr.mxu0 %v8190_v54  ;;  %v5816_v48 = vld [vmem:[%s10007_s1 + $0x610] sm:$0xff] }
 0x16d   : > { %v1403_v21 = vpop.f32.mrf.mxu1  ;;  %3011 = vmatpush1.msra.mxu0 %v5817_v22  ;;  %v5852_v29 = vld [vmem:[%s10007_s1 + $0x730] sm:$0xff] }
 0x16e   : > { %v996_v35 = vpop.f32.mrf.mxu0  ;;  %3012 = vmatprep.subr.mxu0 %v8190_v54  ;;  %v6818_v22 = vld [vmem:[#allocation2 + $0x171] sm:$0xff]  ;;  %v5843_v21 = vld [vmem:[%s10007_s1 + $0x6e8] sm:$0xff] }
 0x16f   : > { %v8266_v31 = vadd.f32 %v8072_v52, %v996_v35  ;;  %v1406_v18 = vpop.f32.mrf.mxu1  ;;  %2081 = vmatmul.mubr.f32.gmra.mxu1 %v7854_v37  ;;  %v5854_v52 = vld [vmem:[%s10007_s1 + $0x740] sm:$0xff]  ;;  %3013 = vmatpush1.msra.mxu0 %v5816_v48  ;;  %v5851_v48 = vld [vmem:[%s10007_s1 + $0x728] sm:$0xff] }
 0x170   : > { %v8270_v7 = vadd.f32 %v1406_v18, %v8159_v13  ;;  %v998_v17 = vpop.f32.mrf.mxu0  ;;  %2085 = vmatprep.mubr.f32.mxu1 %v6816_v55  ;;  %3014 = vmatprep.subr.mxu0 %v8190_v54  ;;  %v5814_v13 = vld [vmem:[%s10007_s1 + $0x600] sm:$0xff] }
 0x171   : > { %v1408_v40 = vpop.f32.mrf.mxu1  ;;  %6521 = vmatprep.subr.mxu1 %v5854_v52  ;;  %3015 = vmatpush1.msra.mxu0 %v5815_v41  ;;  %v6819_v55 = vld [vmem:[#allocation2 + $0x181] sm:$0xff]  ;;  %v5841_v41 = vld [vmem:[%s10007_s1 + $0x6d8] sm:$0xff] }
 0x172   : > { %v8279_v37 = vpop.f32.mrf.mxu0  ;;  %3016 = vmatprep.subr.mxu0 %v8190_v54  ;;  %6522 = vmatpush3.msra.mxu1 %v5854_v52 }
 0x173   : > { %v1411_v0 = vpop.f32.mrf.mxu1  ;;  %2086 = vmatmul.mubr.f32.gmra.mxu1 %v7865_v23  ;;  %3017 = vmatpush1.msra.mxu0 %v5814_v13  ;;  %v5850_v13 = vld [vmem:[%s10007_s1 + $0x720] sm:$0xff] }
 0x174   : > { %v8290_v19 = vadd.f32 %v1411_v0, %v8170_v14  ;;  %v1003_v34 = vpop.f32.mrf.mxu0  ;;  %2090 = vmatprep.mubr.f32.mxu1 %v6817_v16  ;;  %3018 = vmatprep.subr.mxu0 %v8190_v54  ;;  %v5844_v14 = vld [vmem:[%s10007_s1 + $0x6f0] sm:$0xff]  ;;  %v5839_v16 = vld [vmem:[%s10007_s1 + $0x6c8] sm:$0xff] }
 0x175   : > { %v1413_v26 = vpop.f32.mrf.mxu1  ;;  %6523 = vmatprep.subr.mxu1 %v5853_v33  ;;  %3019 = vmatpush2.msra.mxu0 %v5845_v60  ;;  %v6820_v34 = vld [vmem:[#allocation2 + $0x189] sm:$0xff] }
 0x176   : > { %v8296_v23 = vpop.f32.mrf.mxu0  ;;  %3020 = vmatprep.subr.mxu0 %v8190_v54  ;;  %6524 = vmatpush3.msra.mxu1 %v5853_v33  ;;  %v450_v26 = vld [vmem:[#allocation2 + $0x199] sm:$0xff] }
 0x177   : > { %v1416_v10 = vpop.f32.mrf.mxu1  ;;  %2091 = vmatmul.mubr.f32.gmra.mxu1 %v7878_v42  ;;  %3021 = vmatpush2.msra.mxu0 %v5844_v14 }
 0x178   : > { %v8307_v20 = vadd.f32 %v1416_v10, %v8184_v61  ;;  %v1008_v9 = vpop.f32.mrf.mxu0  ;;  %2095 = vmatprep.mubr.f32.mxu1 %v6818_v22  ;;  %3022 = vmatprep.subr.mxu0 %v8190_v54  ;;  %v5842_v61 = vld [vmem:[%s10007_s1 + $0x6e0] sm:$0xff] }
 0x179   : > { %v1418_v44 = vpop.f32.mrf.mxu1  ;;  %6525 = vmatprep.subr.mxu1 %v5852_v29  ;;  %3023 = vmatpush2.msra.mxu0 %v5843_v21  ;;  %v451_v21 = vld [vmem:[#allocation2 + $0x1a1] sm:$0xff] }
 0x17a   : > { %v8313_v42 = vpop.f32.mrf.mxu0  ;;  %3024 = vmatprep.subr.mxu0 %v8190_v54  ;;  %6526 = vmatpush3.msra.mxu1 %v5852_v29  ;;  %v5849_v29 = vld [vmem:[%s10007_s1 + $0x718] sm:$0xff]  ;;  %v5836_v44 = vld [vmem:[%s10007_s1 + $0x6b0] sm:$0xff] }
 0x17b   : > { %v1421_v35 = vpop.f32.mrf.mxu1  ;;  %2096 = vmatmul.mubr.f32.gmra.mxu1 %v7889_v45  ;;  %3025 = vmatpush2.msra.mxu0 %v5842_v61 }
 0x17c   : > { %v8324_v18 = vadd.f32 %v1421_v35, %v8197_v59  ;;  %v1013_v17 = vpop.f32.mrf.mxu0  ;;  %2100 = vmatprep.mubr.f32.mxu1 %v6819_v55  ;;  %3026 = vmatprep.subr.mxu0 %v8190_v54  ;;  %v5840_v59 = vld [vmem:[%s10007_s1 + $0x6d0] sm:$0xff]  ;;  %v5835_v55 = vld [vmem:[%s10007_s1 + $0x6a8] sm:$0xff] }
 0x17d   : > { %v1423_v52 = vpop.f32.mrf.mxu1  ;;  %6527 = vmatprep.subr.mxu1 %v5851_v48  ;;  %3027 = vmatpush2.msra.mxu0 %v5841_v41  ;;  %v5848_v35 = vld [vmem:[%s10007_s1 + $0x710] sm:$0xff] }
 0x17e   : > { %v8330_v45 = vpop.f32.mrf.mxu0  ;;  %3028 = vmatprep.subr.mxu0 %v8190_v54  ;;  %6528 = vmatpush3.msra.mxu1 %v5851_v48  ;;  %v1217_v52 = vadd.f32 %v8054_v36, %v8245_v57  ;;  %v5833_v57 = vld [vmem:[%s10007_s1 + $0x698] sm:$0xff] }
 0x17f   : > { %v1426_v40 = vpop.f32.mrf.mxu1  ;;  %2101 = vmatmul.mubr.f32.gmra.mxu1 %v7902_v47  ;;  %3029 = vmatpush2.msra.mxu0 %v5840_v59  ;;  %v1207_v47 = vadd.f32 %v8044_v30, %v8221_v3  ;;  %v5837_v3 = vld [vmem:[%s10007_s1 + $0x6b8] sm:$0xff] }
 0x180   : > { %v8341_v0 = vadd.f32 %v1426_v40, %v8211_v24  ;;  %v1018_v33 = vpop.f32.mrf.mxu0  ;;  %2105 = vmatprep.mubr.f32.mxu1 %v6820_v34  ;;  %3030 = vmatprep.subr.mxu0 %v8190_v54  ;;  %v5838_v24 = vld [vmem:[%s10007_s1 + $0x6c0] sm:$0xff]  ;;  %v5847_v40 = vld [vmem:[%s10007_s1 + $0x708] sm:$0xff] }
 0x181   : > { %v1428_v60 = vpop.f32.mrf.mxu1  ;;  %6529 = vmatprep.subr.mxu1 %v5850_v13  ;;  %3031 = vmatpush2.msra.mxu0 %v5839_v16  ;;  %v5846_v34 = vld [vmem:[%s10007_s1 + $0x700] sm:$0xff] }
 0x182   : > { %v8349_v14 = vpop.f32.mrf.mxu0  ;;  %3032 = vmatprep.subr.mxu0 %v8190_v54  ;;  %6530 = vmatpush3.msra.mxu1 %v5850_v13 }
 0x183   : > { %v1431_v10 = vpop.f32.mrf.mxu1  ;;  %2106 = vmatmul.mubr.f32.gmra.mxu1 %v7913_v32  ;;  %3033 = vmatpush2.msra.mxu0 %v5838_v24 }
 0x184   : > { %v8359_v9 = vadd.f32 %v1431_v10, %v1207_v47  ;;  %v1023_v30 = vpop.f32.mrf.mxu0  ;;  %2110 = vmatprep.mubr.f32.mxu1 %v450_v26  ;;  %3034 = vmatprep.subr.mxu0 %v8190_v54  ;;  %v5832_v26 = vld [vmem:[%s10007_s1 + $0x690] sm:$0xff] }
 0x185   : > { %v1433_v22 = vpop.f32.mrf.mxu1  ;;  %6531 = vmatprep.subr.mxu1 %v5849_v29  ;;  %3035 = vmatpush2.msra.mxu0 %v5837_v3  ;;  %v1227_v3 = vadd.f32 %v8065_v15, %v8279_v37  ;;  %v1232_v37 = vadd.f32 %v8083_v1, %v8296_v23  ;;  %v1242_v1 = vadd.f32 %v8091_v8, %v8330_v45 }
 0x186   : > { %v8365_v32 = vpop.f32.mrf.mxu0  ;;  %3036 = vmatprep.subr.mxu0 %v8190_v54  ;;  %6532 = vmatpush3.msra.mxu1 %v5849_v29  ;;  %v5831_v29 = vld [vmem:[%s10007_s1 + $0x688] sm:$0xff] }
 0x187   : > { %v1436_v61 = vpop.f32.mrf.mxu1  ;;  %2111 = vmatmul.mubr.f32.gmra.mxu1 %v8190_v54  ;;  %3037 = vmatpush2.msra.mxu0 %v5836_v44  ;;  %v8426_v44 = vld [vmem:[%s10007_s1 + $0x5f8] sm:$0xff] }
 0x188   : > { %v8376_v48 = vadd.f32 %v1436_v61, %v8235_v28  ;;  %v1028_v17 = vpop.f32.mrf.mxu0  ;;  %2115 = vmatprep.mubr.f32.mxu1 %v451_v21  ;;  %3038 = vmatprep.subr.mxu0 %v8190_v54  ;;  %v5834_v28 = vld [vmem:[%s10007_s1 + $0x6a0] sm:$0xff] }
 0x189   : > { %v1438_v41 = vpop.f32.mrf.mxu1  ;;  %6533 = vmatprep.subr.mxu1 %v5848_v35  ;;  %3039 = vmatpush2.msra.mxu0 %v5835_v55 }
 0x18a   : > { %v8384_v59 = vpop.f32.mrf.mxu0  ;;  %3040 = vmatprep.subr.mxu0 %v8190_v54  ;;  %6534 = vmatpush3.msra.mxu1 %v5848_v35 }
 0x18b   : > { %v1441_v13 = vpop.f32.mrf.mxu1  ;;  %2116 = vmatmul.mubr.f32.gmra.mxu1 %v8190_v54  ;;  %3041 = vmatpush2.msra.mxu0 %v5834_v28 }
 0x18c   : > { %v8394_v33 = vadd.f32 %v1441_v13, %v1217_v52  ;;  %v1033_v36 = vpop.f32.mrf.mxu0  ;;  %6535 = vmatprep.subr.mxu1 %v5847_v40  ;;  %3042 = vmatprep.subr.mxu0 %v8190_v54 }
 0x18d   : > { %v1443_v16 = vpop.f32.mrf.mxu1  ;;  %6536 = vmatpush3.msra.mxu1 %v5847_v40  ;;  %3043 = vmatpush2.msra.mxu0 %v5833_v57  ;;  %v1237_v40 = vadd.f32 %v8078_v58, %v8313_v42 }
 0x18e   : > { %v8403_v60 = vpop.f32.mrf.mxu0  ;;  %6537 = vmatprep.subr.mxu1 %v5846_v34  ;;  %3044 = vmatprep.subr.mxu0 %v8190_v54 }
 0x18f   : > { %v1446_v47 = vpop.f32.mrf.mxu1  ;;  %6538 = vmatpush3.msra.mxu1 %v5846_v34  ;;  %3045 = vmatpush2.msra.mxu0 %v5832_v26 }
 0x190   : > { %v8410_v24 = vadd.f32 %v1446_v47, %v8266_v31  ;;  %v1038_v10 = vpop.f32.mrf.mxu0  ;;  %3436 = vmatprep.subr.mxu1 %v8190_v54  ;;  %3046 = vmatprep.subr.mxu0 %v8190_v54  ;;  %v5830_v31 = vld [vmem:[%s10007_s1 + $0x680] sm:$0xff] }
 0x191   : > { %v1448_v30 = vpop.f32.mrf.mxu1  ;;  %3047 = vmatpush2.msra.mxu0 %v5831_v29 }
 0x192   : > { %v1041_v22 = vpop.f32.mrf.mxu0  ;;  %3048 = vmatprep.subr.mxu0 %v8190_v54  ;;  %v1247_v30 = vadd.f32 %v8089_v27, %v8349_v14 }
 0x193   : > { %v1451_v21 = vpop.f32.mrf.mxu1  ;;  %3049 = vmatpush2.msra.mxu0 %v5830_v31 }
 0x194   : > { %v8428_v61 = vadd.f32 %v1451_v21, %v1227_v3  ;;  %v1043_v35 = vpop.f32.mrf.mxu0  ;;  %6587 = vmatprep.subr.mxu0 %v8426_v44 }
 0x195   : > { %v1453_v15 = vpop.f32.mrf.mxu1  ;;  %v1252_v35 = vadd.f32 %v8099_v4, %v8365_v32 }
 0x196   : > { %v1046_v17 = vpop.f32.mrf.mxu0 }
 0x197   : > { %v1456_v55 = vpop.f32.mrf.mxu1 }
 0x198   : > { %v8434_v41 = vadd.f32 %v1456_v55, %v1232_v37  ;;  %v1048_v52 = vpop.f32.mrf.mxu0 }
 0x199   : > { %v1458_v28 = vpop.f32.mrf.mxu1  ;;  %v1257_v52 = vadd.f32 %v8094_v39, %v8384_v59  ;;  %v1267_v39 = vadd.f32 %v8105_v43, %v1041_v22 }
 0x19a   : > { %v1051_v13 = vpop.f32.mrf.mxu0 }
 0x19b   : > { %v1461_v36 = vpop.f32.mrf.mxu1 }
 0x19c   : > { %v8438_v57 = vadd.f32 %v1461_v36, %v1237_v40  ;;  %v1053_v34 = vpop.f32.mrf.mxu0 }
 0x19d   : > { %v1463_v16 = vpop.f32.mrf.mxu1  ;;  %v1262_v34 = vadd.f32 %v8111_v5, %v8403_v60 }
 0x19e   : > { %v1056_v23 = vpop.f32.mrf.mxu0 }
 0x19f   : > { %v1466_v26 = vpop.f32.mrf.mxu1 }
 0x1a0   : > { %v8442_v47 = vadd.f32 %v1466_v26, %v1242_v1  ;;  %v1058_v10 = vpop.f32.mrf.mxu0 }
 0x1a1   : > { %v1468_v29 = vpop.f32.mrf.mxu1 }
 0x1a2   : > { %v1061_v3 = vpop.f32.mrf.mxu0 }
 0x1a3   : > { %v1471_v58 = vpop.f32.mrf.mxu1 }
 0x1a4   : > { %v8446_v42 = vadd.f32 %v1471_v58, %v1247_v30  ;;  %v1063_v31 = vpop.f32.mrf.mxu0 }
 0x1a5   : > { %v1473_v21 = vpop.f32.mrf.mxu1 }
 0x1a6   : > { %v1066_v15 = vpop.f32.mrf.mxu0 }
 0x1a7   : > { %v1476_v8 = vpop.f32.mrf.mxu1 }
 0x1a8   : > { %v8450_v45 = vadd.f32 %v1476_v8, %v1252_v35  ;;  %v1068_v37 = vpop.f32.mrf.mxu0 }
 0x1a9   : > { %v1478_v55 = vpop.f32.mrf.mxu1 }
 0x1aa   : > { %v1071_v28 = vpop.f32.mrf.mxu0 }
 0x1ab   : > { %v1481_v27 = vpop.f32.mrf.mxu1 }
 0x1ac   : > { %v8454_v14 = vadd.f32 %v1481_v27, %v1257_v52  ;;  %v1073_v40 = vpop.f32.mrf.mxu0 }
 0x1ad   : > { %v1483_v36 = vpop.f32.mrf.mxu1 }
 0x1ae   : > { %v6381_v16 = vpop.f32.mrf.mxu0 }
 0x1af   : > { %v1486_v4 = vpop.f32.mrf.mxu1  ;;  %v8459_v32 = vadd.f32 %v6381_v16, %v8174_v50  ;;  %v1272_v50 = vadd.f32 %v8122_v12, %v1046_v17  ;;  %v1282_v17 = vadd.f32 %v8137_v25, %v1056_v23  ;;  %v1292_v23 = vadd.f32 %v8149_v6, %v1066_v15 }
 0x1b0   : > { %v8461_v1 = vadd.f32 %v1486_v4, %v1262_v34  ;;  %v8463_v26 = vpop.f32.mrf.mxu0 }
 0x1b1   : > { %v1488_v10 = vpop.f32.mrf.mxu1 }
 0x1b2   : > { %v6384_v59 = vpop.f32.mrf.mxu0 }
 0x1b3   : > { %v1491_v29 = vpop.f32.mrf.mxu1  ;;  %v8467_v30 = vadd.f32 %v6384_v59, %v8201_v49  ;;  %v1277_v49 = vadd.f32 %v8113_v2, %v1051_v13  ;;  %v1287_v13 = vadd.f32 %v8134_v62, %v1061_v3  ;;  %v1297_v3 = vadd.f32 %v8143_v56, %v1071_v28 }
 0x1b4   : > { %v8469_v58 = vadd.f32 %v1491_v29, %v1267_v39  ;;  %v8471_v5 = vpop.f32.mrf.mxu0 }
 0x1b5   : > { %v1493_v60 = vpop.f32.mrf.mxu1 }
 0x1b6   : > { %v6387_v31 = vpop.f32.mrf.mxu0 }
 0x1b7   : > { %v1496_v21 = vpop.f32.mrf.mxu1  ;;  %v8475_v35 = vadd.f32 %v6387_v31, %v8225_v51 }
 0x1b8   : > { %v8477_v8 = vadd.f32 %v1496_v21, %v1272_v50  ;;  %v8479_v43 = vpop.f32.mrf.mxu0 }
 0x1b9   : > { %v1498_v22 = vpop.f32.mrf.mxu1 }
 0x1ba   : > { %10073 = vst [vmem:[#allocation5_spill] sm:$0xff] %v8477_v8  ;;  %v6390_v37 = vpop.f32.mrf.mxu0 }
 0x1bb   : > { %v1501_v55 = vpop.f32.mrf.mxu1  ;;  %v8483_v52 = vadd.f32 %v6390_v37, %v8252_v46 }
 0x1bc   : > { %v1502_v27 = vadd.f32 %v1501_v55, %v1277_v49  ;;  %v8485_v40 = vpop.f32.mrf.mxu0 }
 0x1bd   : > { %v1503_v12 = vpop.f32.mrf.mxu1 }
 0x1be   : > { %v6393_v51 = vpop.f32.mrf.mxu0 }
 0x1bf   : > { %v1506_v36 = vpop.f32.mrf.mxu1  ;;  %v8489_v34 = vadd.f32 %v6393_v51, %v8290_v19 }
 0x1c0   : > { %v8491_v16 = vadd.f32 %v1506_v36, %v1282_v17  ;;  %v8493_v4 = vpop.f32.mrf.mxu0 }
 0x1c1   : > { %v1508_v2 = vpop.f32.mrf.mxu1 }
 0x1c2   : > { %10074 = vst [vmem:[#allocation6_spill] sm:$0xff] %v8491_v16  ;;  %v6396_v46 = vpop.f32.mrf.mxu0 }
 0x1c3   : > { %v1511_v10 = vpop.f32.mrf.mxu1  ;;  %v8497_v39 = vadd.f32 %v6396_v46, %v8324_v18 }
 0x1c4   : > { %v1512_v59 = vadd.f32 %v1511_v10, %v1287_v13  ;;  %v8499_v29 = vpop.f32.mrf.mxu0 }
 0x1c5   : > { %v1513_v25 = vpop.f32.mrf.mxu1 }
 0x1c6   : > { %v6399_v19 = vpop.f32.mrf.mxu0 }
 0x1c7   : > { %v1516_v60 = vpop.f32.mrf.mxu1  ;;  %v8503_v50 = vadd.f32 %v6399_v19, %v8359_v9 }
 0x1c8   : > { %v8505_v31 = vadd.f32 %v1516_v60, %v1292_v23  ;;  %v8507_v21 = vpop.f32.mrf.mxu0 }
 0x1c9   : > { %v1518_v62 = vpop.f32.mrf.mxu1 }
 0x1ca   : > { %10075 = vst [vmem:[#allocation7_spill] sm:$0xff] %v8505_v31  ;;  %v6402_v18 = vpop.f32.mrf.mxu0 }
 0x1cb   : > { %v1521_v22 = vpop.f32.mrf.mxu1  ;;  %v8511_v49 = vadd.f32 %v6402_v18, %v8394_v33 }
 0x1cc   : > { %v1522_v37 = vadd.f32 %v1521_v22, %v1297_v3  ;;  %v8513_v55 = vpop.f32.mrf.mxu0 }
 0x1cd   : > { %v1523_v6 = vpop.f32.mrf.mxu1 }
 0x1ce   : > { %v6405_v15 = vpop.f32.mrf.mxu0 }
 0x1cf   : > { %v8516_v9 = vadd.f32 %v6405_v15, %v8428_v61  ;;  %v1962_v12 = vpop.f32.mrf.mxu1 }
 0x1d0   : > { %v8518_v17 = vpop.f32.mrf.mxu0 }
 0x1d1   : > { %v1964_v51 = vpop.f32.mrf.mxu1 }
 0x1d2   : > { %v6408_v36 = vpop.f32.mrf.mxu0 }
 0x1d3   : > { %v8521_v56 = vadd.f32 %v6408_v36, %v8438_v57  ;;  %v1967_v28 = vpop.f32.mrf.mxu1 }
 0x1d4   : > { %v8523_v2 = vpop.f32.mrf.mxu0 }
 0x1d5   : > { %v1969_v33 = vpop.f32.mrf.mxu1 }
 0x1d6   : > { %v6411_v13 = vpop.f32.mrf.mxu0 }
 0x1d7   : > { %v8526_v46 = vadd.f32 %v6411_v13, %v8446_v42  ;;  %v1972_v10 = vpop.f32.mrf.mxu1 }
 0x1d8   : > { %v8528_v25 = vpop.f32.mrf.mxu0 }
 0x1d9   : > { %v1974_v61 = vpop.f32.mrf.mxu1 }
 0x1da   : > { %v6414_v23 = vpop.f32.mrf.mxu0 }
 0x1db   : > { %v8531_v19 = vadd.f32 %v6414_v23, %v8454_v14  ;;  %v1977_v60 = vpop.f32.mrf.mxu1 }
 0x1dc   : > { %v8533_v62 = vpop.f32.mrf.mxu0 }
 0x1dd   : > { %v1979_v57 = vpop.f32.mrf.mxu1 }
 0x1de   : > { %v6417_v3 = vpop.f32.mrf.mxu0 }
 0x1df   : > { %v8536_v18 = vadd.f32 %v6417_v3, %v8469_v58  ;;  %v1982_v22 = vpop.f32.mrf.mxu1 }
 0x1e0   : > { %v8538_v6 = vpop.f32.mrf.mxu0 }
 0x1e1   : > { %10076 = vst [vmem:[#allocation8_spill] sm:$0xff] %v8536_v18  ;;  %v1984_v42 = vpop.f32.mrf.mxu1 }
 0x1e2   : > { %v6420_v15 = vpop.f32.mrf.mxu0 }
 0x1e3   : > { %v8540_v51 = vadd.f32 %v6420_v15, %v1502_v27  ;;  %v1987_v36 = vpop.f32.mrf.mxu1 }
 0x1e4   : > { %v8542_v33 = vpop.f32.mrf.mxu0 }
 0x1e5   : > { %10077 = vst [vmem:[#allocation9_spill] sm:$0xff] %v8540_v51  ;;  %10078 = vst [vmem:[#allocation10_spill] sm:$0xff] %v8542_v33  ;;  %v1989_v14 = vpop.f32.mrf.mxu1 }
 0x1e6   : > { %v6423_v13 = vpop.f32.mrf.mxu0 }
 0x1e7   : > { %v8544_v61 = vadd.f32 %v6423_v13, %v1512_v59  ;;  %v1992_v23 = vpop.f32.mrf.mxu1  ;;  %v8557_v59 = vld [vmem:[%s10008_s2] ss:$0 sm:$0xff] }
 0x1e8   : > { %v8546_v57 = vpop.f32.mrf.mxu0 }
 0x1e9   : > { %10079 = vst [vmem:[#allocation11_spill] sm:$0xff] %v8544_v61  ;;  %10080 = vst [vmem:[#allocation12_spill] sm:$0xff] %v8546_v57  ;;  %v1994_v31 = vpop.f32.mrf.mxu1 }
 0x1ea   : > { %v6426_v58 = vpop.f32.mrf.mxu0  ;;  %v1592_v31 = vadd.f32 %v8463_v26, %v8163_v63 }
 0x1eb   : > { %v8548_v3 = vadd.f32 %v6426_v58, %v1522_v37  ;;  %v1997_v16 = vpop.f32.mrf.mxu1 }
 0x1ec   : > { %v8550_v8 = vpop.f32.mrf.mxu0 }
 0x1ed   : > { %10081 = vst [vmem:[#allocation13_spill] sm:$0xff] %v8548_v3  ;;  %10082 = vst [vmem:[#allocation14_spill] sm:$0xff] %v8550_v8  ;;  %v1999_v42 = vpop.f32.mrf.mxu1 }
 0x1ee   : > { %v6461_v27 = vpop.f32.mrf.mxu0 }
 0x1ef   : > { %v8552_v15 = vpop.f32.mrf.mxu1  ;;  %v2193_v51 = vadd.f32 %v6461_v27, %v1967_v28  ;;  %v1602_v27 = vadd.f32 %v8471_v5, %v8188_v53  ;;  %v1612_v53 = vadd.f32 %v8479_v43, %v8215_v11 }
 0x1f0   : > { %v2187_v14 = vpop.f32.mrf.mxu0 }
 0x1f1   : > { %v2347_v37 = vadd.f32 %v2193_v51, %v8459_v32  ;;  %v2004_v13 = vpop.f32.mrf.mxu1  ;;  %v2188_v58 = vadd.f32 %v2187_v14, %v1962_v12 }
 0x1f2   : > { %v6464_v3 = vpop.f32.mrf.mxu0 }
 0x1f3   : > { %v8563_v42 = vadd.f32 %v8557_v59, %v2347_v37  ;;  %v2346_v8 = vadd.f32 %v2188_v58, %v1592_v31  ;;  %v2007_v61 = vpop.f32.mrf.mxu1  ;;  %v2203_v28 = vadd.f32 %v6464_v3, %v1977_v60 }
 0x1f4   : > { %v2197_v57 = vpop.f32.mrf.mxu0 }
 0x1f5   : > { %v2416_v33 = vmax.f32 %v8563_v42, 0.0  ;;  %v2383_v18 = vadd.f32 %v8557_v59, %v2346_v8  ;;  %v2349_v63 = vadd.f32 %v2203_v28, %v8467_v30  ;;  %v2009_v32 = vpop.f32.mrf.mxu1  ;;  %v2198_v26 = vadd.f32 %v2197_v57, %v1972_v10 }
 0x1f6   : > { %v6467_v12 = vpop.f32.mrf.mxu0  ;;  %v1622_v42 = vadd.f32 %v8485_v40, %v8239_v38 }
 0x1f7   : > { %2449 = vst [vmem:[#allocation3 + $0x21] sm:$0xff] %v2416_v33  ;;  %v2415_v51 = vmax.f32 %v2383_v18, 0.0  ;;  %v8571_v14 = vadd.f32 %v8557_v59, %v2349_v63  ;;  %v2348_v31 = vadd.f32 %v2198_v26, %v1602_v27  ;;  %v8573_v60 = vpop.f32.mrf.mxu1  ;;  %v2213_v3 = vadd.f32 %v6467_v12, %v1987_v36 }
 0x1f8   : > { %v2207_v5 = vpop.f32.mrf.mxu0 }
 0x1f9   : > { %2448 = vst [vmem:[#allocation3 + $0x19] sm:$0xff] %v2415_v51  ;;  %v2418_v8 = vmax.f32 %v8571_v14, 0.0  ;;  %v8579_v30 = vadd.f32 %v8557_v59, %v2348_v31  ;;  %v2351_v10 = vadd.f32 %v2213_v3, %v8475_v35  ;;  %v2014_v18 = vpop.f32.mrf.mxu1  ;;  %v2208_v57 = vadd.f32 %v2207_v5, %v1982_v22  ;;  %3050 = vmatprep.mubr.f32.mxu0 %v2415_v51  ;;  %v8684_v14 = vld [vmem:[#allocation2] sm:$0xff] }
 0x1fa   : > { %v6470_v37 = vpop.f32.mrf.mxu0  ;;  %v1632_v31 = vadd.f32 %v8493_v4, %v8270_v7 }
 0x1fb   : > { %2451 = vst [vmem:[#allocation3 + $0x39] sm:$0xff] %v2418_v8  ;;  %v2417_v36 = vmax.f32 %v8579_v30, 0.0  ;;  %v8586_v11 = vadd.f32 %v8557_v59, %v2351_v10  ;;  %v2350_v43 = vadd.f32 %v2208_v57, %v1612_v53  ;;  %v2017_v13 = vpop.f32.mrf.mxu1  ;;  %v2223_v58 = vadd.f32 %v6470_v37, %v1997_v16  ;;  %v5812_v57 = vld [vmem:[%s10007_s1 + $0x5f0] sm:$0xff] }
 0x1fc   : > { %v2217_v28 = vpop.f32.mrf.mxu0 }
 0x1fd   : > { %2450 = vst [vmem:[#allocation3 + $0x31] sm:$0xff] %v2417_v36  ;;  %v2420_v35 = vmax.f32 %v8586_v11, 0.0  ;;  %v8594_v22 = vadd.f32 %v8557_v59, %v2350_v43  ;;  %v2353_v27 = vadd.f32 %v2223_v58, %v8483_v52  ;;  %v2019_v63 = vpop.f32.mrf.mxu1  ;;  %v2218_v32 = vadd.f32 %v2217_v28, %v1992_v23  ;;  %v5781_v23 = vld [vmem:[%s10007_s1 + $0x4f8] sm:$0xff]  ;;  %v5776_v11 = vld [vmem:[%s10007_s1 + $0x4d0] sm:$0xff] }
 0x1fe   : > { %v6473_v26 = vpop.f32.mrf.mxu0  ;;  %v2627_v4 = vld [vmem:[#allocation3 + $0x22] sm:$0xff]  ;;  %v1642_v28 = vadd.f32 %v8499_v29, %v8307_v20 }
 0x1ff   : > { %2453 = vst [vmem:[#allocation3 + $0x51] sm:$0xff] %v2420_v35  ;;  %v2419_v16 = vmax.f32 %v8594_v22, 0.0  ;;  %v8601_v38 = vadd.f32 %v8557_v59, %v2353_v27  ;;  %v2352_v40 = vadd.f32 %v2218_v32, %v1622_v42  ;;  %v8603_v12 = vpop.f32.mrf.mxu1  ;;  %v2233_v51 = vadd.f32 %v6473_v26, %v2007_v61  ;;  %v5780_v32 = vld [vmem:[%s10007_s1 + $0x4f0] sm:$0xff]  ;;  %v5777_v22 = vld [vmem:[%s10007_s1 + $0x4d8] sm:$0xff] }
 0x200   : > { %v2227_v3 = vpop.f32.mrf.mxu0  ;;  %v2626_v52 = vld [vmem:[#allocation3 + $0x1a] sm:$0xff] }
 0x201   : > { %v8607_v53 = vld [vmem:[#allocation3 + $0x18] sm:$0xff]  ;;  %2452 = vst [vmem:[#allocation3 + $0x49] sm:$0xff] %v2419_v16  ;;  %v2422_v5 = vmax.f32 %v8601_v38, 0.0  ;;  %v2389_v10 = vadd.f32 %v8557_v59, %v2352_v40  ;;  %v2355_v61 = vadd.f32 %v2233_v51, %v8489_v34  ;;  %v2024_v18 = vpop.f32.mrf.mxu1  ;;  %v2228_v7 = vadd.f32 %v2227_v3, %v8552_v15  ;;  %6539 = vmatprep.mubr.f32.mxu1 %v2626_v52 }
 0x202   : > { %3051 = vmatmul.mubr.f32.vlgmr.msra.gmra.mxu0 %v8607_v53  ;;  %v6476_v37 = vpop.f32.mrf.mxu0  ;;  %6540 = vmatmul.mubr.f32.vlgmr.msra.gmra.mxu1 %v2627_v4  ;;  %v2629_v40 = vld [vmem:[#allocation3 + $0x3a] sm:$0xff] }
 0x203   : > { %3055 = vmatprep.mubr.f32.mxu0 %v2416_v33  ;;  %2455 = vst [vmem:[#allocation3 + $0x69] sm:$0xff] %v2422_v5  ;;  %v8624_v43 = vmax.f32 %v2389_v10, 0.0  ;;  %v8627_v34 = vadd.f32 %v8557_v59, %v2355_v61  ;;  %v2354_v15 = vadd.f32 %v2228_v7, %v1632_v31  ;;  %v2027_v58 = vpop.f32.mrf.mxu1  ;;  %v2243_v42 = vadd.f32 %v6476_v37, %v2017_v13  ;;  %v8632_v33 = vld [vmem:[#allocation3 + $0x20] sm:$0xff]  ;;  %v5811_v51 = vld [vmem:[%s10007_s1 + $0x5e8] sm:$0xff] }
 0x204   : > { %6588 = vmatpush3.msra.mxu0 %v8426_v44  ;;  %3437 = vmatpush1.msra.mxu1 %v5781_v23  ;;  %v2237_v27 = vpop.f32.mrf.mxu0  ;;  %v2628_v63 = vld [vmem:[#allocation3 + $0x32] sm:$0xff]  ;;  %v1652_v10 = vadd.f32 %v8507_v21, %v8341_v0 }
 0x205   : > { %6589 = vmatprep.subr.mxu0 %v5812_v57  ;;  %3438 = vmatprep.subr.mxu1 %v8190_v54  ;;  %2454 = vst [vmem:[#allocation3 + $0x61] sm:$0xff] %v8624_v43  ;;  %v2424_v13 = vmax.f32 %v8627_v34, 0.0  ;;  %v2391_v44 = vadd.f32 %v8557_v59, %v2354_v15  ;;  %v2357_v26 = vadd.f32 %v2243_v42, %v8497_v39  ;;  %v2029_v20 = vpop.f32.mrf.mxu1  ;;  %v8658_v30 = vld [vmem:[#allocation3 + $0x30] sm:$0xff] }
 0x206   : > { %v2238_v29 = vadd.f32 %v2237_v27, %v8573_v60  ;;  %6542 = vmatprep.mubr.f32.mxu1 %v2628_v63  ;;  %3056 = vmatmul.mubr.f32.gmra.mxu0 %v8632_v33  ;;  %v6479_v31 = vpop.f32.mrf.mxu0  ;;  %v2631_v37 = vld [vmem:[#allocation3 + $0x52] sm:$0xff] }
 0x207   : > { %6543 = vmatmul.mubr.f32.gmra.mxu1 %v2629_v40  ;;  %3060 = vmatprep.mubr.f32.mxu0 %v2417_v36  ;;  %2457 = vst [vmem:[#allocation3 + $0x81] sm:$0xff] %v2424_v13  ;;  %v8651_v39 = vmax.f32 %v2391_v44, 0.0  ;;  %v8654_v60 = vadd.f32 %v8557_v59, %v2357_v26  ;;  %v2032_v52 = vpop.f32.mrf.mxu1  ;;  %v2253_v23 = vadd.f32 %v6479_v31, %v2027_v58  ;;  %v5779_v36 = vld [vmem:[%s10007_s1 + $0x4e8] sm:$0xff]  ;;  %v5809_v31 = vld [vmem:[%s10007_s1 + $0x5d8] sm:$0xff] }
 0x208   : > { %v2356_v3 = vadd.f32 %v2238_v29, %v1642_v28  ;;  %6590 = vmatpush3.msra.mxu0 %v5812_v57  ;;  %3439 = vmatpush1.msra.mxu1 %v5780_v32  ;;  %v2247_v61 = vpop.f32.mrf.mxu0  ;;  %v2630_v18 = vld [vmem:[#allocation3 + $0x4a] sm:$0xff]  ;;  %v8682_v32 = vld [vmem:[#allocation3 + $0x38] sm:$0xff]  ;;  %v1662_v44 = vadd.f32 %v8513_v55, %v8376_v48 }
 0x209   : > { %6591 = vmatprep.subr.mxu0 %v5811_v51  ;;  %3440 = vmatprep.subr.mxu1 %v8190_v54  ;;  %2456 = vst [vmem:[#allocation3 + $0x79] sm:$0xff] %v8651_v39  ;;  %v2426_v7 = vmax.f32 %v8654_v60, 0.0  ;;  %v2359_v57 = vadd.f32 %v2253_v23, %v8503_v50  ;;  %v2034_v0 = vpop.f32.mrf.mxu1  ;;  %v2248_v21 = vadd.f32 %v2247_v61, %v8603_v12  ;;  %v5810_v54 = vld [vmem:[%s10007_s1 + $0x5e0] sm:$0xff]  ;;  %v5767_v60 = vld [vmem:[%s10007_s1 + $0x488] sm:$0xff] }
 0x20a   : > { %v2393_v4 = vadd.f32 %v8557_v59, %v2356_v3  ;;  %6545 = vmatprep.mubr.f32.mxu1 %v2630_v18  ;;  %3061 = vmatmul.mubr.f32.gmra.mxu0 %v8658_v30  ;;  %v6482_v15 = vpop.f32.mrf.mxu0 }
 0x20b   : > { %6546 = vmatmul.mubr.f32.gmra.mxu1 %v2631_v37  ;;  %3065 = vmatprep.mubr.f32.mxu0 %v2418_v8  ;;  %2459 = vst [vmem:[#allocation3 + $0x99] sm:$0xff] %v2426_v7  ;;  %v2396_v12 = vadd.f32 %v8557_v59, %v2359_v57  ;;  %v2358_v58 = vadd.f32 %v2248_v21, %v1652_v10  ;;  %v2037_v42 = vpop.f32.mrf.mxu1  ;;  %v5778_v8 = vld [vmem:[%s10007_s1 + $0x4e0] sm:$0xff]  ;;  %v5808_v21 = vld [vmem:[%s10007_s1 + $0x5d0] sm:$0xff] }
 0x20c   : > { %v8677_v50 = vmax.f32 %v2393_v4, 0.0  ;;  %6592 = vmatpush3.msra.mxu0 %v5811_v51  ;;  %3441 = vmatpush1.msra.mxu1 %v5779_v36  ;;  %v2263_v28 = vadd.f32 %v6482_v15, %v2037_v42  ;;  %v2257_v27 = vpop.f32.mrf.mxu0  ;;  %v8680_v63 = vld [vmem:[#allocation3 + $0x62] sm:$0xff]  ;;  %v8698_v51 = vld [vmem:[#allocation3 + $0x6a] sm:$0xff] }
 0x20d   : > { %6593 = vmatprep.subr.mxu0 %v5810_v54  ;;  %3442 = vmatprep.subr.mxu1 %v8684_v14  ;;  %v8693_v26 = vmax.f32 %v2396_v12, 0.0  ;;  %v2395_v20 = vadd.f32 %v8557_v59, %v2358_v58  ;;  %v2039_v29 = vpop.f32.mrf.mxu1  ;;  %v2258_v40 = vadd.f32 %v2257_v27, %v2032_v52  ;;  %v8740_v42 = vld [vmem:[#allocation3 + $0x50] sm:$0xff] }
 0x20e   : > { %2458 = vst [vmem:[#allocation3 + $0x91] sm:$0xff] %v8677_v50  ;;  %6548 = vmatprep.mubr.f32.mxu1 %v8680_v63  ;;  %3066 = vmatmul.mubr.f32.gmra.mxu0 %v8682_v32  ;;  %v2361_v48 = vadd.f32 %v2263_v28, %v8511_v49  ;;  %v6485_v55 = vpop.f32.mrf.mxu0  ;;  %v8713_v49 = vld [vmem:[#allocation3 + $0x48] sm:$0xff] }
 0x20f   : > { %6549 = vmatmul.mubr.f32.gmra.mxu1 %v8698_v51  ;;  %3070 = vmatprep.mubr.f32.mxu0 %v2419_v16  ;;  %2461 = vst [vmem:[#allocation3 + $0xb1] sm:$0xff] %v8693_v26  ;;  %v8708_v3 = vmax.f32 %v2395_v20, 0.0  ;;  %v2360_v52 = vadd.f32 %v2258_v40, %v1662_v44  ;;  %v2042_v23 = vpop.f32.mrf.mxu1  ;;  %v1672_v16 = vadd.f32 %v8518_v17, %v8410_v24  ;;  %v8725_v0 = vld [vmem:[#allocation3 + $0x82] sm:$0xff]  ;;  %v5807_v44 = vld [vmem:[%s10007_s1 + $0x5c8] sm:$0xff] }
 0x210   : > { %6594 = vmatpush3.msra.mxu0 %v5810_v54  ;;  %3443 = vmatpush1.msra.mxu1 %v5778_v8  ;;  %v2398_v10 = vadd.f32 %v8557_v59, %v2361_v48  ;;  %v2267_v61 = vpop.f32.mrf.mxu0  ;;  %v8711_v18 = vld [vmem:[#allocation3 + $0x7a] sm:$0xff] }
 0x211   : > { %6595 = vmatprep.subr.mxu0 %v5809_v31  ;;  %3444 = vmatprep.subr.mxu1 %v8684_v14  ;;  %2460 = vst [vmem:[#allocation3 + $0xa9] sm:$0xff] %v8708_v3  ;;  %v2397_v36 = vadd.f32 %v8557_v59, %v2360_v52  ;;  %v2044_v4 = vpop.f32.mrf.mxu1  ;;  %v2268_v57 = vadd.f32 %v2267_v61, %v2042_v23  ;;  %v8765_v23 = vld [vmem:[#allocation3 + $0x60] sm:$0xff]  ;;  %v5806_v61 = vld [vmem:[%s10007_s1 + $0x5c0] sm:$0xff] }
 0x212   : > { %6551 = vmatprep.mubr.f32.mxu1 %v8711_v18  ;;  %3071 = vmatmul.mubr.f32.gmra.mxu0 %v8713_v49  ;;  %v8730_v37 = vmax.f32 %v2398_v10, 0.0  ;;  %v6488_v24 = vpop.f32.mrf.mxu0  ;;  %v8750_v8 = vld [vmem:[#allocation3 + $0x9a] sm:$0xff] }
 0x213   : > { %6552 = vmatmul.mubr.f32.gmra.mxu1 %v8725_v0  ;;  %3075 = vmatprep.mubr.f32.mxu0 %v2420_v35  ;;  %v8735_v17 = vmax.f32 %v2397_v36, 0.0  ;;  %v2362_v54 = vadd.f32 %v2268_v57, %v1672_v16  ;;  %v2047_v15 = vpop.f32.mrf.mxu1  ;;  %v8835_v34 = vld [vmem:[#allocation3 + $0x80] sm:$0xff] }
 0x214   : > { %6596 = vmatpush3.msra.mxu0 %v5809_v31  ;;  %3445 = vmatpush1.msra.mxu1 %v5777_v22  ;;  %2463 = vst [vmem:[#allocation3 + $0xc9] sm:$0xff] %v8730_v37  ;;  %v2273_v12 = vadd.f32 %v6485_v55, %v2047_v15  ;;  %v2277_v27 = vpop.f32.mrf.mxu0  ;;  %v1682_v31 = vadd.f32 %v8523_v2, %v8434_v41  ;;  %v5774_v15 = vld [vmem:[%s10007_s1 + $0x4c0] sm:$0xff] }
 0x215   : > { %v8738_v58 = vld [vmem:[#allocation3 + $0x92] sm:$0xff]  ;;  %3446 = vmatprep.subr.mxu1 %v8684_v14  ;;  %6597 = vmatprep.subr.mxu0 %v5808_v21  ;;  %2462 = vst [vmem:[#allocation3 + $0xc1] sm:$0xff] %v8735_v17  ;;  %v2399_v35 = vadd.f32 %v8557_v59, %v2362_v54  ;;  %v2049_v28 = vpop.f32.mrf.mxu1  ;;  %v8788_v54 = vld [vmem:[#allocation3 + $0x68] sm:$0xff] }
 0x216   : > { %6554 = vmatprep.mubr.f32.mxu1 %v8738_v58  ;;  %3076 = vmatmul.mubr.f32.gmra.mxu0 %v8740_v42  ;;  %v2363_v20 = vadd.f32 %v2273_v12, %v8516_v9  ;;  %v5775_v9 = vld [vmem:[%s10007_s1 + $0x4c8] sm:$0xff]  ;;  %v6491_v2 = vpop.f32.mrf.mxu0  ;;  %v5773_v28 = vld [vmem:[%s10007_s1 + $0x4b8] sm:$0xff] }
 0x217   : > { %6555 = vmatmul.mubr.f32.gmra.mxu1 %v8750_v8  ;;  %3080 = vmatprep.mubr.f32.mxu0 %v8624_v43  ;;  %v8758_v29 = vmax.f32 %v2399_v35, 0.0  ;;  %v2052_v40 = vpop.f32.mrf.mxu1  ;;  %v8774_v41 = vld [vmem:[#allocation3 + $0xb2] sm:$0xff] }
 0x218   : > { %3447 = vmatpush1.msra.mxu1 %v5776_v11  ;;  %6598 = vmatpush3.msra.mxu0 %v5808_v21  ;;  %v2400_v48 = vadd.f32 %v8557_v59, %v2363_v20  ;;  %v2278_v55 = vadd.f32 %v2277_v27, %v2052_v40  ;;  %v8763_v52 = vld [vmem:[#allocation3 + $0xaa] sm:$0xff] }
 0x219   : > { %3448 = vmatprep.subr.mxu1 %v8684_v14  ;;  %6599 = vmatprep.subr.mxu0 %v5807_v44  ;;  %2464 = vst [vmem:[#allocation3 + $0xd9] sm:$0xff] %v8758_v29  ;;  %v2054_v10 = vpop.f32.mrf.mxu1 }
 0x21a   : > { %6557 = vmatprep.mubr.f32.mxu1 %v8763_v52  ;;  %3081 = vmatmul.mubr.f32.gmra.mxu0 %v8765_v23  ;;  %v8779_v22 = vmax.f32 %v2400_v48, 0.0  ;;  %v2364_v16 = vadd.f32 %v2278_v55, %v1682_v31  ;;  %v5772_v31 = vld [vmem:[%s10007_s1 + $0x4b0] sm:$0xff] }
 0x21b   : > { %6558 = vmatmul.mubr.f32.gmra.mxu1 %v8774_v41  ;;  %3085 = vmatprep.mubr.f32.mxu0 %v2422_v5  ;;  %v2057_v36 = vpop.f32.mrf.mxu1  ;;  %v2287_v5 = vpop.f32.mrf.mxu0  ;;  %v8796_v12 = vld [vmem:[#allocation3 + $0xca] sm:$0xff] }
 0x21c   : > { %10083 = vst [vmem:[#allocation15_spill] sm:$0xff] %v8779_v22  ;;  %3449 = vmatpush1.msra.mxu1 %v5775_v9  ;;  %6600 = vmatpush3.msra.mxu0 %v5807_v44  ;;  %2465 = vst [vmem:[#allocation3 + $0xe1] sm:$0xff] %v8779_v22  ;;  %v2401_v4 = vadd.f32 %v8557_v59, %v2364_v16  ;;  %v2283_v57 = vadd.f32 %v6488_v24, %v2057_v36  ;;  %v8786_v21 = vld [vmem:[#allocation3 + $0xc2] sm:$0xff]  ;;  %v5771_v16 = vld [vmem:[%s10007_s1 + $0x4a8] sm:$0xff] }
 0x21d   : > { %3450 = vmatprep.subr.mxu1 %v8684_v14  ;;  %6601 = vmatprep.subr.mxu0 %v5806_v61  ;;  %v2059_v38 = vpop.f32.mrf.mxu1  ;;  %v5805_v24 = vld [vmem:[%s10007_s1 + $0x5b8] sm:$0xff]  ;;  %v1692_v44 = vadd.f32 %v8528_v25, %v8442_v47  ;;  %v6494_v55 = vpop.f32.mrf.mxu0 }
 0x21e   : > { %6560 = vmatprep.mubr.f32.mxu1 %v8786_v21  ;;  %3086 = vmatmul.mubr.f32.gmra.mxu0 %v8788_v54  ;;  %v8801_v11 = vmax.f32 %v2401_v4, 0.0  ;;  %v2365_v35 = vadd.f32 %v2283_v57, %v8521_v56  ;;  %v8813_v56 = vld [vmem:[#allocation3 + $0x78] sm:$0xff] }
 0x21f   : > { %6561 = vmatmul.mubr.f32.gmra.mxu1 %v8796_v12  ;;  %3090 = vmatprep.mubr.f32.mxu0 %v8651_v39  ;;  %v2062_v27 = vpop.f32.mrf.mxu1 }
 0x220   : > { %10084 = vst [vmem:[#allocation16_spill] sm:$0xff] %v8801_v11  ;;  %3451 = vmatpush1.msra.mxu1 %v5774_v15  ;;  %6602 = vmatpush3.msra.mxu0 %v5806_v61  ;;  %2466 = vst [vmem:[#allocation3 + $0xf1] sm:$0xff] %v8801_v11  ;;  %v2402_v20 = vadd.f32 %v8557_v59, %v2365_v35  ;;  %v2288_v40 = vadd.f32 %v2287_v5, %v2062_v27  ;;  %v2297_v15 = vpop.f32.mrf.mxu0  ;;  %v5769_v35 = vld [vmem:[%s10007_s1 + $0x498] sm:$0xff] }
 0x221   : > { %3452 = vmatprep.subr.mxu1 %v8684_v14  ;;  %6603 = vmatprep.subr.mxu0 %v5805_v24  ;;  %v2064_v48 = vpop.f32.mrf.mxu1 }
 0x222   : > { %3091 = vmatmul.mubr.f32.gmra.mxu0 %v8813_v56  ;;  %3453 = vmatpush1.msra.mxu1 %v5773_v28  ;;  %v8820_v47 = vmax.f32 %v2402_v20, 0.0  ;;  %v2366_v25 = vadd.f32 %v2288_v40, %v1692_v44  ;;  %v1702_v28 = vadd.f32 %v8533_v62, %v8450_v45  ;;  %v5803_v20 = vld [vmem:[%s10007_s1 + $0x5a8] sm:$0xff]  ;;  %v5768_v45 = vld [vmem:[%s10007_s1 + $0x490] sm:$0xff] }
 0x223   : > { %3095 = vmatprep.mubr.f32.mxu0 %v2424_v13  ;;  %3454 = vmatprep.subr.mxu1 %v8684_v14  ;;  %v2067_v9 = vpop.f32.mrf.mxu1  ;;  %v8825_v10 = vld [vmem:[#allocation3 + $0xda] sm:$0xff]  ;;  %v8827_v61 = vld [vmem:[#allocation3 + $0xe2] sm:$0xff] }
 0x224   : > { %3455 = vmatpush1.msra.mxu1 %v5772_v31  ;;  %6604 = vmatpush3.msra.mxu0 %v5805_v24  ;;  %2467 = vst [vmem:[#allocation3 + $0xf9] sm:$0xff] %v8820_v47  ;;  %v2403_v36 = vadd.f32 %v8557_v59, %v2366_v25  ;;  %v2293_v4 = vadd.f32 %v6491_v2, %v2067_v9  ;;  %v5804_v13 = vld [vmem:[%s10007_s1 + $0x5b0] sm:$0xff]  ;;  %v5770_v2 = vld [vmem:[%s10007_s1 + $0x4a0] sm:$0xff]  ;;  %v6497_v31 = vpop.f32.mrf.mxu0 }
 0x225   : > { %6563 = vmatprep.mubr.f32.mxu1 %v8825_v10  ;;  %3456 = vmatprep.subr.mxu1 %v8684_v14  ;;  %v2069_v57 = vpop.f32.mrf.mxu1 }
 0x226   : > { %6564 = vmatmul.mubr.f32.gmra.mxu1 %v8827_v61  ;;  %3096 = vmatmul.mubr.f32.gmra.mxu0 %v8835_v34  ;;  %v8846_v38 = vmax.f32 %v2403_v36, 0.0  ;;  %v2367_v5 = vadd.f32 %v2293_v4, %v8526_v46  ;;  %v8858_v46 = vld [vmem:[#allocation3 + $0x90] sm:$0xff]  ;;  %v2307_v57 = vpop.f32.mrf.mxu0 }
 0x227   : > { %3100 = vmatprep.mubr.f32.mxu0 %v8677_v50  ;;  %3457 = vmatpush1.msra.mxu1 %v5771_v16  ;;  %v2072_v24 = vpop.f32.mrf.mxu1 }
 0x228   : > { %3458 = vmatprep.subr.mxu1 %v8684_v14  ;;  %6605 = vmatprep.subr.mxu0 %v5804_v13  ;;  %2468 = vst [vmem:[#allocation3 + $0x109] sm:$0xff] %v8846_v38  ;;  %v2404_v27 = vadd.f32 %v8557_v59, %v2367_v5  ;;  %v2298_v44 = vadd.f32 %v2297_v15, %v2072_v24  ;;  %v5802_v15 = vld [vmem:[%s10007_s1 + $0x5a0] sm:$0xff] }
 0x229   : > { %3459 = vmatpush1.msra.mxu1 %v5770_v2  ;;  %6606 = vmatpush3.msra.mxu0 %v5804_v13  ;;  %v2074_v40 = vpop.f32.mrf.mxu1  ;;  %v8880_v13 = vld [vmem:[#allocation3 + $0x98] sm:$0xff]  ;;  %v5766_v5 = vld [vmem:[%s10007_s1 + $0x480] sm:$0xff] }
 0x22a   : > { %3101 = vmatmul.mubr.f32.gmra.mxu0 %v8858_v46  ;;  %3460 = vmatprep.subr.mxu1 %v8684_v14  ;;  %v8868_v62 = vmax.f32 %v2404_v27, 0.0  ;;  %v2368_v48 = vadd.f32 %v2298_v44, %v1702_v28  ;;  %v5797_v44 = vld [vmem:[%s10007_s1 + $0x578] sm:$0xff] }
 0x22b   : > { %3105 = vmatprep.mubr.f32.mxu0 %v2426_v7  ;;  %3461 = vmatpush1.msra.mxu1 %v5769_v35  ;;  %v2077_v25 = vpop.f32.mrf.mxu1  ;;  %v8872_v9 = vld [vmem:[#allocation3 + $0xf2] sm:$0xff]  ;;  %v8874_v16 = vld [vmem:[#allocation3 + $0xfa] sm:$0xff]  ;;  %v1712_v35 = vadd.f32 %v8538_v6, %v8461_v1 }
 0x22c   : > { %10085 = vst [vmem:[#allocation17_spill] sm:$0xff] %v8872_v9  ;;  %10086 = vst [vmem:[#allocation18_spill] sm:$0xff] %v8874_v16  ;;  %3462 = vmatprep.subr.mxu1 %v8684_v14  ;;  %6607 = vmatprep.subr.mxu0 %v5803_v20  ;;  %v2405_v36 = vadd.f32 %v8557_v59, %v2368_v48  ;;  %v2303_v4 = vadd.f32 %v6494_v55, %v2077_v25 }
 0x22d   : > { %2469 = vst [vmem:[#allocation3 + $0x111] sm:$0xff] %v8868_v62  ;;  %6566 = vmatprep.mubr.f32.mxu1 %v8872_v9  ;;  %3463 = vmatpush1.msra.mxu1 %v5768_v45  ;;  %v2079_v7 = vpop.f32.mrf.mxu1 }
 0x22e   : > { %6567 = vmatmul.mubr.f32.gmra.mxu1 %v8874_v16  ;;  %3106 = vmatmul.mubr.f32.gmra.mxu0 %v8880_v13  ;;  %v8890_v55 = vmax.f32 %v2405_v36, 0.0  ;;  %v2369_v2 = vadd.f32 %v2303_v4, %v8531_v19  ;;  %v8902_v19 = vld [vmem:[#allocation3 + $0xa8] sm:$0xff]  ;;  %v5796_v36 = vld [vmem:[%s10007_s1 + $0x570] sm:$0xff]  ;;  %v8923_v7 = vld [vmem:[#allocation3 + $0xb0] sm:$0xff] }
 0x22f   : > { %3110 = vmatprep.mubr.f32.mxu0 %v8708_v3  ;;  %3464 = vmatprep.subr.mxu1 %v8684_v14  ;;  %v2082_v24 = vpop.f32.mrf.mxu1 }
 0x230   : > { %3465 = vmatpush1.msra.mxu1 %v5767_v60  ;;  %6608 = vmatpush3.msra.mxu0 %v5803_v20  ;;  %2470 = vst [vmem:[#allocation3 + $0x121] sm:$0xff] %v8890_v55  ;;  %v2406_v28 = vadd.f32 %v8557_v59, %v2369_v2  ;;  %v2308_v27 = vadd.f32 %v2307_v57, %v2082_v24  ;;  %v6500_v20 = vpop.f32.mrf.mxu0  ;;  %v5801_v57 = vld [vmem:[%s10007_s1 + $0x598] sm:$0xff] }
 0x231   : > { %3466 = vmatprep.subr.mxu1 %v8684_v14  ;;  %6609 = vmatprep.subr.mxu0 %v5802_v15  ;;  %v2084_v40 = vpop.f32.mrf.mxu1  ;;  %v10090_v24 = vld [vmem:[#allocation8_spill] sm:$0xff] }
 0x232   : > { %3111 = vmatmul.mubr.f32.gmra.mxu0 %v8902_v19  ;;  %3467 = vmatpush1.msra.mxu1 %v5766_v5  ;;  %v8909_v1 = vmax.f32 %v2406_v28, 0.0  ;;  %v2370_v6 = vadd.f32 %v2308_v27, %v1712_v35  ;;  %v2317_v5 = vpop.f32.mrf.mxu0  ;;  %v5794_v27 = vld [vmem:[%s10007_s1 + $0x560] sm:$0xff]  ;;  %v10092_v40 = vld [vmem:[#allocation10_spill] sm:$0xff] }
 0x233   : > { %3115 = vmatprep.mubr.f32.mxu0 %v8693_v26  ;;  %3468 = vmatprep.subr.mxu1 %v8684_v14  ;;  %v2087_v45 = vpop.f32.mrf.mxu1 }
 0x234   : > { %v8913_v48 = vld [vmem:[#allocation3 + $0x10a] sm:$0xff]  ;;  %v8915_v25 = vld [vmem:[#allocation3 + $0x112] sm:$0xff]  ;;  %3469 = vmatpush2.msra.mxu1 %v5797_v44  ;;  %6610 = vmatpush3.msra.mxu0 %v5802_v15  ;;  %2471 = vst [vmem:[#allocation3 + $0x129] sm:$0xff] %v8909_v1  ;;  %v2407_v4 = vadd.f32 %v8557_v59, %v2370_v6  ;;  %v2313_v60 = vadd.f32 %v6497_v31, %v2087_v45 }
 0x235   : > { %10087 = vst [vmem:[#allocation19_spill] sm:$0xff] %v8913_v48  ;;  %10088 = vst [vmem:[#allocation20_spill] sm:$0xff] %v8915_v25  ;;  %6569 = vmatprep.mubr.f32.mxu1 %v8913_v48  ;;  %3470 = vmatprep.subr.mxu1 %v8684_v14  ;;  %v2089_v2 = vpop.f32.mrf.mxu1  ;;  %v5795_v31 = vld [vmem:[%s10007_s1 + $0x568] sm:$0xff]  ;;  %v10091_v44 = vld [vmem:[#allocation5_spill] sm:$0xff] }
 0x236   : > { %6570 = vmatmul.mubr.f32.gmra.mxu1 %v8915_v25  ;;  %3116 = vmatmul.mubr.f32.gmra.mxu0 %v8923_v7  ;;  %v8934_v15 = vmax.f32 %v2407_v4, 0.0  ;;  %v2371_v35 = vadd.f32 %v2313_v60, %v10090_v24  ;;  %v1722_v6 = vadd.f32 %v10092_v40, %v10091_v44  ;;  %v8946_v60 = vld [vmem:[#allocation3 + $0xc0] sm:$0xff]  ;;  %v6503_v24 = vpop.f32.mrf.mxu0  ;;  %v5793_v44 = vld [vmem:[%s10007_s1 + $0x558] sm:$0xff] }
 0x237   : > { %3120 = vmatprep.mubr.f32.mxu0 %v8735_v17  ;;  %3471 = vmatpush2.msra.mxu1 %v5796_v36  ;;  %v2092_v28 = vpop.f32.mrf.mxu1  ;;  %v5800_v36 = vld [vmem:[%s10007_s1 + $0x590] sm:$0xff]  ;;  %v10097_v25 = vld [vmem:[#allocation12_spill] sm:$0xff] }
 0x238   : > { %10089 = vst [vmem:[#allocation21_spill] sm:$0xff] %v8934_v15  ;;  %3472 = vmatprep.subr.mxu1 %v8684_v14  ;;  %6611 = vmatprep.subr.mxu0 %v5801_v57  ;;  %2472 = vst [vmem:[#allocation3 + $0x139] sm:$0xff] %v8934_v15  ;;  %v2408_v45 = vadd.f32 %v8557_v59, %v2371_v35  ;;  %v2318_v4 = vadd.f32 %v2317_v5, %v2092_v28 }
 0x239   : > { %3473 = vmatpush2.msra.mxu1 %v5795_v31  ;;  %6612 = vmatpush3.msra.mxu0 %v5801_v57  ;;  %v2094_v2 = vpop.f32.mrf.mxu1 }
 0x23a   : > { %3121 = vmatmul.mubr.f32.gmra.mxu0 %v8946_v60  ;;  %3474 = vmatprep.subr.mxu1 %v8684_v14  ;;  %v8956_v35 = vmax.f32 %v2408_v45, 0.0  ;;  %v2372_v5 = vadd.f32 %v2318_v4, %v1722_v6  ;;  %v8967_v45 = vld [vmem:[#allocation3 + $0xc8] sm:$0xff]  ;;  %v2327_v4 = vpop.f32.mrf.mxu0 }
 0x23b   : > { %3125 = vmatprep.mubr.f32.mxu0 %v8730_v37  ;;  %3475 = vmatpush2.msra.mxu1 %v5794_v27  ;;  %v2097_v57 = vpop.f32.mrf.mxu1  ;;  %v8959_v31 = vld [vmem:[#allocation3 + $0x122] sm:$0xff]  ;;  %v8961_v28 = vld [vmem:[#allocation3 + $0x12a] sm:$0xff] }
 0x23c   : > { %10093 = vst [vmem:[#allocation8_spill] sm:$0xff] %v8959_v31  ;;  %10094 = vst [vmem:[#allocation5_spill] sm:$0xff] %v8961_v28  ;;  %3476 = vmatprep.subr.mxu1 %v8684_v14  ;;  %6613 = vmatprep.subr.mxu0 %v5800_v36  ;;  %v2409_v40 = vadd.f32 %v8557_v59, %v2372_v5  ;;  %v2323_v2 = vadd.f32 %v6500_v20, %v2097_v57  ;;  %v5792_v27 = vld [vmem:[%s10007_s1 + $0x550] sm:$0xff]  ;;  %v5799_v5 = vld [vmem:[%s10007_s1 + $0x588] sm:$0xff] }
 0x23d   : > { %2473 = vst [vmem:[#allocation3 + $0x141] sm:$0xff] %v8956_v35  ;;  %6572 = vmatprep.mubr.f32.mxu1 %v8959_v31  ;;  %3477 = vmatpush2.msra.mxu1 %v5793_v44  ;;  %v2099_v6 = vpop.f32.mrf.mxu1  ;;  %v10095_v57 = vld [vmem:[#allocation9_spill] sm:$0xff]  ;;  %v5791_v44 = vld [vmem:[%s10007_s1 + $0x548] sm:$0xff] }
 0x23e   : > { %6573 = vmatmul.mubr.f32.gmra.mxu1 %v8961_v28  ;;  %3126 = vmatmul.mubr.f32.gmra.mxu0 %v8967_v45  ;;  %v8977_v20 = vmax.f32 %v2409_v40, 0.0  ;;  %v2373_v31 = vadd.f32 %v2323_v2, %v10095_v57  ;;  %v10096_v28 = vld [vmem:[#allocation6_spill] sm:$0xff]  ;;  %v5790_v57 = vld [vmem:[%s10007_s1 + $0x540] sm:$0xff] }
 0x23f   : > { %3130 = vmatprep.mubr.f32.mxu0 %v8758_v29  ;;  %3478 = vmatprep.subr.mxu1 %v8684_v14  ;;  %v2102_v6 = vpop.f32.mrf.mxu1  ;;  %v1732_v48 = vadd.f32 %v10097_v25, %v10096_v28  ;;  %v8989_v2 = vld [vmem:[#allocation3 + $0xd8] sm:$0xff] }
 0x240   : > { %3479 = vmatpush2.msra.mxu1 %v5792_v27  ;;  %6614 = vmatpush3.msra.mxu0 %v5800_v36  ;;  %2474 = vst [vmem:[#allocation3 + $0x151] sm:$0xff] %v8977_v20  ;;  %v2410_v40 = vadd.f32 %v8557_v59, %v2373_v31  ;;  %v2328_v16 = vadd.f32 %v2327_v4, %v2102_v6  ;;  %10098 = vst [vmem:[#allocation10_spill] sm:$0xff] %v8989_v2  ;;  %v6506_v36 = vpop.f32.mrf.mxu0  ;;  %v5798_v6 = vld [vmem:[%s10007_s1 + $0x580] sm:$0xff] }
 0x241   : > { %3480 = vmatprep.subr.mxu1 %v8684_v14  ;;  %6615 = vmatprep.subr.mxu0 %v5799_v5  ;;  %v2104_v9 = vpop.f32.mrf.mxu1 }
 0x242   : > { %3131 = vmatmul.mubr.f32.gmra.mxu0 %v8989_v2  ;;  %3481 = vmatpush2.msra.mxu1 %v5791_v44  ;;  %v8996_v25 = vmax.f32 %v2410_v40, 0.0  ;;  %v2374_v28 = vadd.f32 %v2328_v16, %v1732_v48  ;;  %v5789_v9 = vld [vmem:[%s10007_s1 + $0x538] sm:$0xff]  ;;  %v9010_v48 = vld [vmem:[#allocation3 + $0xe0] sm:$0xff] }
 0x243   : > { %3135 = vmatprep.mubr.f32.mxu0 %v8779_v22  ;;  %3482 = vmatprep.subr.mxu1 %v8684_v14  ;;  %v2107_v31 = vpop.f32.mrf.mxu1  ;;  %10101 = vst [vmem:[#allocation12_spill] sm:$0xff] %v9010_v48 }
 0x244   : > { %v9000_v27 = vld [vmem:[#allocation3 + $0x13a] sm:$0xff]  ;;  %v9002_v4 = vld [vmem:[#allocation3 + $0x142] sm:$0xff]  ;;  %3483 = vmatpush2.msra.mxu1 %v5790_v57  ;;  %6616 = vmatpush3.msra.mxu0 %v5799_v5  ;;  %2475 = vst [vmem:[#allocation3 + $0x159] sm:$0xff] %v8996_v25  ;;  %v2411_v44 = vadd.f32 %v8557_v59, %v2374_v28  ;;  %v2333_v16 = vadd.f32 %v6503_v24, %v2107_v31  ;;  %v2337_v57 = vpop.f32.mrf.mxu0 }
 0x245   : > { %10099 = vst [vmem:[#allocation9_spill] sm:$0xff] %v9000_v27  ;;  %10100 = vst [vmem:[#allocation6_spill] sm:$0xff] %v9002_v4  ;;  %6575 = vmatprep.mubr.f32.mxu1 %v9000_v27  ;;  %3484 = vmatprep.subr.mxu1 %v8684_v14  ;;  %v2109_v40 = vpop.f32.mrf.mxu1  ;;  %v5788_v24 = vld [vmem:[%s10007_s1 + $0x530] sm:$0xff] }
 0x246   : > { %6576 = vmatmul.mubr.f32.gmra.mxu1 %v9002_v4  ;;  %3136 = vmatmul.mubr.f32.gmra.mxu0 %v9010_v48  ;;  %v9021_v5 = vmax.f32 %v2411_v44, 0.0  ;;  %v10103_v28 = vld [vmem:[#allocation11_spill] sm:$0xff]  ;;  %v5787_v40 = vld [vmem:[%s10007_s1 + $0x528] sm:$0xff] }
 0x247   : > { %v2375_v31 = vadd.f32 %v2333_v16, %v10103_v28  ;;  %3140 = vmatprep.mubr.f32.mxu0 %v8801_v11  ;;  %3485 = vmatpush2.msra.mxu1 %v5789_v9  ;;  %v2112_v27 = vpop.f32.mrf.mxu1  ;;  %v10104_v4 = vld [vmem:[#allocation7_spill] sm:$0xff]  ;;  %v10105_v48 = vld [vmem:[#allocation14_spill] sm:$0xff]  ;;  %v9033_v16 = vld [vmem:[#allocation3 + $0xf0] sm:$0xff] }
 0x248   : > { %10102 = vst [vmem:[#allocation22_spill] sm:$0xff] %v9021_v5  ;;  %3486 = vmatprep.subr.mxu1 %v8684_v14  ;;  %6617 = vmatprep.subr.mxu0 %v5798_v6  ;;  %v1742_v22 = vadd.f32 %v10105_v48, %v10104_v4  ;;  %2476 = vst [vmem:[#allocation3 + $0x169] sm:$0xff] %v9021_v5  ;;  %v2338_v2 = vadd.f32 %v2337_v57, %v2112_v27  ;;  %v5786_v28 = vld [vmem:[%s10007_s1 + $0x520] sm:$0xff] }
 0x249   : > { %v2412_v44 = vadd.f32 %v8557_v59, %v2375_v31  ;;  %3487 = vmatpush2.msra.mxu1 %v5788_v24  ;;  %6618 = vmatpush3.msra.mxu0 %v5798_v6  ;;  %v2114_v9 = vpop.f32.mrf.mxu1 }
 0x24a   : > { %3141 = vmatmul.mubr.f32.gmra.mxu0 %v9033_v16  ;;  %3488 = vmatprep.subr.mxu1 %v8684_v14  ;;  %v2376_v4 = vadd.f32 %v2338_v2, %v1742_v22  ;;  %v9054_v22 = vld [vmem:[#allocation3 + $0xf8] sm:$0xff]  ;;  %v5785_v2 = vld [vmem:[%s10007_s1 + $0x518] sm:$0xff] }
 0x24b   : > { %v9040_v11 = vmax.f32 %v2412_v44, 0.0  ;;  %3145 = vmatprep.mubr.f32.mxu0 %v8820_v47  ;;  %3489 = vmatpush2.msra.mxu1 %v5787_v40  ;;  %v2117_v27 = vpop.f32.mrf.mxu1  ;;  %v9043_v48 = vld [vmem:[#allocation3 + $0x152] sm:$0xff]  ;;  %v9045_v57 = vld [vmem:[#allocation3 + $0x15a] sm:$0xff] }
 0x24c   : > { %3490 = vmatprep.subr.mxu1 %v8684_v14  ;;  %4031 = vmatprep.subr.mxu0 %v8684_v14  ;;  %v9051_v6 = vadd.f32 %v8557_v59, %v2376_v4  ;;  %v2343_v24 = vadd.f32 %v6506_v36, %v2117_v27  ;;  %v10106_v44 = vld [vmem:[#allocation13_spill] sm:$0xff]  ;;  %v5784_v36 = vld [vmem:[%s10007_s1 + $0x510] sm:$0xff]  ;;  %v9071_v4 = vld [vmem:[#allocation3 + $0x108] sm:$0xff] }
 0x24d   : > { %2477 = vst [vmem:[#allocation3 + $0x171] sm:$0xff] %v9040_v11  ;;  %6578 = vmatprep.mubr.f32.mxu1 %v9043_v48  ;;  %3491 = vmatpush2.msra.mxu1 %v5786_v28  ;;  %v2119_v31 = vpop.f32.mrf.mxu1  ;;  %v5783_v27 = vld [vmem:[%s10007_s1 + $0x508] sm:$0xff] }
 0x24e   : > { %6579 = vmatmul.mubr.f32.gmra.mxu1 %v9045_v57  ;;  %3146 = vmatmul.mubr.f32.gmra.mxu0 %v9054_v22  ;;  %v10036_v40 = vmax.f32 %v9051_v6, 0.0  ;;  %v2377_v9 = vadd.f32 %v2343_v24, %v10106_v44  ;;  %v5782_v31 = vld [vmem:[%s10007_s1 + $0x500] sm:$0xff] }
 0x24f   : > { %3150 = vmatprep.mubr.f32.mxu0 %v8846_v38  ;;  %3492 = vmatprep.subr.mxu1 %v8684_v14  ;;  %v9091_v44 = vld [vmem:[#allocation3 + $0x110] sm:$0xff] }
 0x250   : > { %3493 = vmatpush2.msra.mxu1 %v5785_v2  ;;  %2478 = vst [vmem:[#allocation3 + $0x181] sm:$0xff] %v10036_v40  ;;  %v2414_v28 = vadd.f32 %v8557_v59, %v2377_v9  ;;  %v5909_v9 = vld [vmem:[%s10007_s1 + $0x8f8] sm:$0xff] }
 0x251   : > { %3494 = vmatprep.subr.mxu1 %v8684_v14  ;;  %v2552_v40 = vld [vmem:[#allocation3 + $0x1] sm:$0xff] }
 0x252   : > { %3151 = vmatmul.mubr.f32.gmra.mxu0 %v9071_v4  ;;  %3495 = vmatpush2.msra.mxu1 %v5784_v36  ;;  %v9078_v24 = vmax.f32 %v2414_v28, 0.0  ;;  %v9100_v36 = vld [vmem:[#allocation3 + $0x120] sm:$0xff] }
 0x253   : > { %3155 = vmatprep.mubr.f32.mxu0 %v8868_v62  ;;  %3496 = vmatprep.subr.mxu1 %v8684_v14  ;;  %10108 = vst [vmem:[#allocation7_spill] sm:$0xff] %v9100_v36 }
 0x254   : > { %v9082_v2 = vld [vmem:[#allocation3 + $0x16a] sm:$0xff]  ;;  %v9084_v59 = vld [vmem:[#allocation3 + $0x172] sm:$0xff]  ;;  %3497 = vmatpush2.msra.mxu1 %v5783_v27  ;;  %2479 = vst [vmem:[#allocation3 + $0x189] sm:$0xff] %v9078_v24 }
 0x255   : > { %10107 = vst [vmem:[#allocation11_spill] sm:$0xff] %v9084_v59  ;;  %6581 = vmatprep.mubr.f32.mxu1 %v9082_v2  ;;  %3498 = vmatprep.subr.mxu1 %v8684_v14 }
 0x256   : > { %6582 = vmatmul.mubr.f32.gmra.mxu1 %v9084_v59  ;;  %3156 = vmatmul.mubr.f32.gmra.mxu0 %v9091_v44  ;;  %v9109_v59 = vld [vmem:[#allocation3 + $0x128] sm:$0xff] }
 0x257   : > { %3160 = vmatprep.mubr.f32.mxu0 %v8890_v55  ;;  %3499 = vmatpush2.msra.mxu1 %v5782_v31  ;;  %v2553_v31 = vld [vmem:[#allocation3 + $0x9] sm:$0xff] }
 0x258   : > { %6667 = vmatprep.subr.mxu1 %v5909_v9 }
 0x25a   : > { %3161 = vmatmul.mubr.f32.gmra.mxu0 %v9100_v36  ;;  %v9114_v36 = vld [vmem:[#allocation3 + $0x138] sm:$0xff] }
 0x25b   : > { %3165 = vmatprep.mubr.f32.mxu0 %v8909_v1  ;;  %v9104_v28 = vld [vmem:[#allocation3 + $0x182] sm:$0xff]  ;;  %v9106_v27 = vld [vmem:[#allocation3 + $0x18a] sm:$0xff]  ;;  %10111 = vst [vmem:[#allocation23_spill] sm:$0xff] %v9114_v36 }
 0x25c   : > { %10109 = vst [vmem:[#allocation14_spill] sm:$0xff] %v9104_v28  ;;  %10110 = vst [vmem:[#allocation13_spill] sm:$0xff] %v9106_v27  ;;  %6584 = vmatprep.mubr.f32.mxu1 %v9104_v28  ;;  %v5908_v28 = vld [vmem:[%s10007_s1 + $0x8f0] sm:$0xff] }
 0x25d   : > { %6585 = vmatmul.mubr.f32.gmra.mxu1 %v9106_v27  ;;  %v9122_v27 = vld [vmem:[#allocation3 + $0x140] sm:$0xff] }
 0x25e   : > { %3166 = vmatmul.mubr.f32.gmra.mxu0 %v9109_v59  ;;  %3500 = vmatprep.mubr.f32.mxu1 %v2552_v40  ;;  %v5907_v40 = vld [vmem:[%s10007_s1 + $0x8e8] sm:$0xff] }
 0x25f   : > { %3170 = vmatprep.mubr.f32.mxu0 %v8934_v15  ;;  %v9130_v15 = vld [vmem:[#allocation3 + $0x150] sm:$0xff] }
 0x261   : > { %3501 = vmatmul.mubr.f32.vlgmr.msra.gmra.mxu1 %v8684_v14 }
 0x262   : > { %3171 = vmatmul.mubr.f32.gmra.mxu0 %v9114_v36  ;;  %3505 = vmatprep.mubr.f32.mxu1 %v2553_v31  ;;  %v6822_v36 = vld [vmem:[#allocation3 + $0x19] sm:$0xff]  ;;  %v6823_v31 = vld [vmem:[#allocation3 + $0x21] sm:$0xff] }
 0x263   : > { %3175 = vmatprep.mubr.f32.mxu0 %v8956_v35  ;;  %6668 = vmatpush3.msra.mxu1 %v5909_v9  ;;  %v5906_v9 = vld [vmem:[%s10007_s1 + $0x8e0] sm:$0xff] }
 0x264   : > { %6669 = vmatprep.subr.mxu1 %v5908_v28 }
 0x265   : > { %3506 = vmatmul.mubr.f32.gmra.mxu1 %v8684_v14 }
 0x266   : > { %3176 = vmatmul.mubr.f32.gmra.mxu0 %v9122_v27  ;;  %3510 = vmatprep.mubr.f32.mxu1 %v6822_v36  ;;  %v9138_v36 = vld [vmem:[#allocation3 + $0x158] sm:$0xff] }
 0x267   : > { %3180 = vmatprep.mubr.f32.mxu0 %v8977_v20  ;;  %6670 = vmatpush3.msra.mxu1 %v5908_v28  ;;  %v9145_v28 = vld [vmem:[#allocation3 + $0x31] sm:$0xff] }
 0x268   : > { %6671 = vmatprep.subr.mxu1 %v5907_v40 }
 0x269   : > { %3511 = vmatmul.mubr.f32.gmra.mxu1 %v8607_v53  ;;  %v5905_v53 = vld [vmem:[%s10007_s1 + $0x8d8] sm:$0xff] }
 0x26a   : > { %3181 = vmatmul.mubr.f32.gmra.mxu0 %v9130_v15  ;;  %3515 = vmatprep.mubr.f32.mxu1 %v6823_v31  ;;  %v9149_v31 = vld [vmem:[#allocation3 + $0x168] sm:$0xff] }
 0x26b   : > { %3185 = vmatprep.mubr.f32.mxu0 %v8996_v25  ;;  %6672 = vmatpush3.msra.mxu1 %v5907_v40  ;;  %10112 = vst [vmem:[#allocation24_spill] sm:$0xff] %v9149_v31  ;;  %v9156_v40 = vld [vmem:[#allocation3 + $0x39] sm:$0xff] }
 0x26c   : > { %6673 = vmatprep.subr.mxu1 %v5906_v9 }
 0x26d   : > { %3516 = vmatmul.mubr.f32.gmra.mxu1 %v8632_v33  ;;  %v5904_v33 = vld [vmem:[%s10007_s1 + $0x8d0] sm:$0xff] }
 0x26e   : > { %3186 = vmatmul.mubr.f32.gmra.mxu0 %v9138_v36  ;;  %3520 = vmatprep.mubr.f32.mxu1 %v9145_v28 }
 0x26f   : > { %3190 = vmatprep.mubr.f32.mxu0 %v9021_v5  ;;  %6674 = vmatpush3.msra.mxu1 %v5906_v9  ;;  %v9160_v5 = vld [vmem:[#allocation3 + $0x170] sm:$0xff] }
 0x270   : > { %6675 = vmatprep.subr.mxu1 %v5905_v53  ;;  %10113 = vst [vmem:[#allocation25_spill] sm:$0xff] %v9160_v5  ;;  %v9167_v9 = vld [vmem:[#allocation3 + $0x49] sm:$0xff] }
 0x271   : > { %3521 = vmatmul.mubr.f32.gmra.mxu1 %v8658_v30  ;;  %v5903_v30 = vld [vmem:[%s10007_s1 + $0x8c8] sm:$0xff] }
 0x272   : > { %3191 = vmatmul.mubr.f32.gmra.mxu0 %v9149_v31  ;;  %3525 = vmatprep.mubr.f32.mxu1 %v9156_v40  ;;  %v10114_v31 = vmax.f32 %v9051_v6, 0.0  ;;  %v2624_v6 = vld [vmem:[#allocation3 + $0x2] sm:$0xff] }
 0x273   : > { %3195 = vmatprep.mubr.f32.mxu0 %v9040_v11  ;;  %6676 = vmatpush3.msra.mxu1 %v5905_v53  ;;  %v9172_v53 = vld [vmem:[#allocation3 + $0x180] sm:$0xff] }
 0x274   : > { %6677 = vmatprep.subr.mxu1 %v5904_v33 }
 0x275   : > { %3526 = vmatmul.mubr.f32.gmra.mxu1 %v8682_v32  ;;  %v5902_v32 = vld [vmem:[%s10007_s1 + $0x8c0] sm:$0xff] }
 0x276   : > { %3196 = vmatmul.mubr.f32.gmra.mxu0 %v9160_v5  ;;  %3530 = vmatprep.mubr.f32.mxu1 %v9167_v9  ;;  %v9179_v5 = vld [vmem:[#allocation3 + $0x51] sm:$0xff] }
 0x277   : > { %3200 = vmatprep.mubr.f32.mxu0 %v10114_v31  ;;  %6678 = vmatpush3.msra.mxu1 %v5904_v33  ;;  %v9183_v31 = vld [vmem:[#allocation3 + $0x188] sm:$0xff] }
 0x278   : > { %6679 = vmatprep.subr.mxu1 %v5903_v30  ;;  %10115 = vst [vmem:[#allocation26_spill] sm:$0xff] %v9183_v31  ;;  %v2625_v33 = vld [vmem:[#allocation3 + $0xa] sm:$0xff] }
 0x279   : > { %3531 = vmatmul.mubr.f32.gmra.mxu1 %v8713_v49  ;;  %v5901_v49 = vld [vmem:[%s10007_s1 + $0x8b8] sm:$0xff] }
 0x27a   : > { %3201 = vmatmul.mubr.f32.gmra.mxu0 %v9172_v53  ;;  %3535 = vmatprep.mubr.f32.mxu1 %v9179_v5 }
 0x27b   : > { %3205 = vmatprep.mubr.f32.mxu0 %v9078_v24  ;;  %6680 = vmatpush3.msra.mxu1 %v5903_v30  ;;  %v5877_v30 = vld [vmem:[%s10007_s1 + $0x7f8] sm:$0xff] }
 0x27c   : > { %6681 = vmatprep.subr.mxu1 %v5902_v32 }
 0x27d   : > { %3536 = vmatmul.mubr.f32.gmra.mxu1 %v8740_v42  ;;  %v5900_v42 = vld [vmem:[%s10007_s1 + $0x8b0] sm:$0xff] }
 0x27e   : > { %3206 = vmatmul.mubr.f32.gmra.mxu0 %v9183_v31  ;;  %3540 = vmatprep.mubr.f32.mxu1 %v8624_v43  ;;  %v9198_v31 = vld [vmem:[#allocation3 + $0x69] sm:$0xff]  ;;  %v6829_v43 = vld [vmem:[#allocation3 + $0x1a] sm:$0xff] }
 0x27f   : > { %6619 = vmatprep.mubr.f32.mxu0 %v2624_v6  ;;  %6682 = vmatpush3.msra.mxu1 %v5902_v32  ;;  %v5876_v32 = vld [vmem:[%s10007_s1 + $0x7f0] sm:$0xff] }
 0x280   : > { %6683 = vmatprep.subr.mxu1 %v5901_v49  ;;  %v6830_v6 = vld [vmem:[#allocation3 + $0x22] sm:$0xff] }
 0x281   : > { %3541 = vmatmul.mubr.f32.gmra.mxu1 %v8765_v23  ;;  %v5875_v23 = vld [vmem:[%s10007_s1 + $0x7e8] sm:$0xff] }
 0x282   : > { %6620 = vmatmul.mubr.f32.vlgmr.msra.gmra.mxu0 %v2625_v33  ;;  %3545 = vmatprep.mubr.f32.mxu1 %v9198_v31  ;;  %v9211_v33 = vld [vmem:[#allocation3 + $0x32] sm:$0xff] }
 0x283   : > { %6622 = vmatprep.mubr.f32.mxu0 %v6829_v43  ;;  %4032 = vmatpush1.msra.mxu0 %v5877_v30  ;;  %v9225_v30 = vld [vmem:[#allocation3 + $0x3a] sm:$0xff] }
 0x284   : > { %6684 = vmatpush3.msra.mxu1 %v5901_v49  ;;  %4033 = vmatprep.subr.mxu0 %v8684_v14  ;;  %v5874_v49 = vld [vmem:[%s10007_s1 + $0x7e0] sm:$0xff]  ;;  %v5871_v43 = vld [vmem:[%s10007_s1 + $0x7c8] sm:$0xff] }
 0x285   : > { %6685 = vmatprep.subr.mxu1 %v5900_v42  ;;  %3546 = vmatmul.mubr.f32.gmra.mxu1 %v8788_v54  ;;  %v9222_v54 = vld [vmem:[#allocation3 + $0x81] sm:$0xff] }
 0x286   : > { %4034 = vmatpush1.msra.mxu0 %v5876_v32  ;;  %3550 = vmatprep.mubr.f32.mxu1 %v8651_v39  ;;  %v5873_v39 = vld [vmem:[%s10007_s1 + $0x7d8] sm:$0xff]  ;;  %v9241_v32 = vld [vmem:[#allocation3 + $0x52] sm:$0xff] }
 0x287   : > { %6623 = vmatmul.mubr.f32.gmra.mxu0 %v6830_v6  ;;  %4035 = vmatprep.subr.mxu0 %v8684_v14  ;;  %v5867_v6 = vld [vmem:[%s10007_s1 + $0x7a8] sm:$0xff] }
 0x288   : > { %6625 = vmatprep.mubr.f32.mxu0 %v9211_v33  ;;  %4036 = vmatpush1.msra.mxu0 %v5875_v23  ;;  %v5870_v23 = vld [vmem:[%s10007_s1 + $0x7c0] sm:$0xff] }
 0x289   : > { %6686 = vmatpush3.msra.mxu1 %v5900_v42  ;;  %4037 = vmatprep.subr.mxu0 %v8684_v14  ;;  %v9232_v42 = vld [vmem:[#allocation3 + $0x4a] sm:$0xff] }
 0x28a   : > { %3551 = vmatmul.mubr.f32.gmra.mxu1 %v8813_v56  ;;  %4038 = vmatpush1.msra.mxu0 %v5874_v49  ;;  %v5872_v56 = vld [vmem:[%s10007_s1 + $0x7d0] sm:$0xff]  ;;  %v5886_v49 = vld [vmem:[%s10007_s1 + $0x840] sm:$0xff] }
 0x28b   : > { %3555 = vmatprep.mubr.f32.mxu1 %v9222_v54  ;;  %6626 = vmatmul.mubr.f32.gmra.mxu0 %v9225_v30 }
 0x28c   : > { %4039 = vmatprep.subr.mxu0 %v8684_v14  ;;  %6628 = vmatprep.mubr.f32.mxu0 %v9232_v42 }
 0x28d   : > { %4040 = vmatpush1.msra.mxu0 %v5873_v39  ;;  %v10124_v39 = vld [vmem:[#allocation8_spill] sm:$0xff] }
 0x28e   : > { %3556 = vmatmul.mubr.f32.gmra.mxu1 %v8835_v34  ;;  %4041 = vmatprep.subr.mxu0 %v8684_v14  ;;  %v9254_v34 = vld [vmem:[#allocation3 + $0x99] sm:$0xff] }
 0x28f   : > { %3560 = vmatprep.mubr.f32.mxu1 %v8677_v50  ;;  %4042 = vmatpush1.msra.mxu0 %v5872_v56  ;;  %v5869_v50 = vld [vmem:[%s10007_s1 + $0x7b8] sm:$0xff] }
 0x290   : > { %6629 = vmatmul.mubr.f32.gmra.mxu0 %v9241_v32  ;;  %4043 = vmatprep.subr.mxu0 %v8684_v14  ;;  %v5885_v56 = vld [vmem:[%s10007_s1 + $0x838] sm:$0xff] }
 0x291   : > { %6631 = vmatprep.mubr.f32.mxu0 %v8680_v63  ;;  %4044 = vmatpush1.msra.mxu0 %v5871_v43  ;;  %v5868_v63 = vld [vmem:[%s10007_s1 + $0x7b0] sm:$0xff]  ;;  %v10125_v43 = vld [vmem:[#allocation5_spill] sm:$0xff] }
 0x292   : > { %3561 = vmatmul.mubr.f32.gmra.mxu1 %v8858_v46  ;;  %4045 = vmatprep.subr.mxu0 %v8684_v14  ;;  %v9264_v46 = vld [vmem:[#allocation2] sm:$0xff] }
 0x293   : > { %3565 = vmatprep.mubr.f32.mxu1 %v9254_v34  ;;  %4046 = vmatpush1.msra.mxu0 %v5870_v23  ;;  %v5884_v23 = vld [vmem:[%s10007_s1 + $0x830] sm:$0xff] }
 0x294   : > { %6632 = vmatmul.mubr.f32.gmra.mxu0 %v8698_v51  ;;  %4047 = vmatprep.subr.mxu0 %v8684_v14  ;;  %v5866_v14 = vld [vmem:[%s10007_s1 + $0x7a0] sm:$0xff]  ;;  %v5865_v51 = vld [vmem:[%s10007_s1 + $0x798] sm:$0xff] }
 0x295   : > { %6634 = vmatprep.mubr.f32.mxu0 %v8711_v18  ;;  %4048 = vmatpush1.msra.mxu0 %v5869_v50  ;;  %v5862_v18 = vld [vmem:[%s10007_s1 + $0x780] sm:$0xff] }
 0x296   : > { %3566 = vmatmul.mubr.f32.gmra.mxu1 %v8880_v13  ;;  %4049 = vmatprep.subr.mxu0 %v9264_v46  ;;  %v5887_v13 = vld [vmem:[%s10007_s1 + $0x848] sm:$0xff]  ;;  %v10126_v50 = vld [vmem:[#allocation9_spill] sm:$0xff] }
 0x297   : > { %3570 = vmatprep.mubr.f32.mxu1 %v8708_v3  ;;  %4050 = vmatpush1.msra.mxu0 %v5868_v63  ;;  %v5864_v3 = vld [vmem:[%s10007_s1 + $0x790] sm:$0xff]  ;;  %v10127_v63 = vld [vmem:[#allocation6_spill] sm:$0xff] }
 0x298   : > { %6635 = vmatmul.mubr.f32.gmra.mxu0 %v8725_v0  ;;  %4051 = vmatprep.subr.mxu0 %v9264_v46  ;;  %v5893_v0 = vld [vmem:[%s10007_s1 + $0x878] sm:$0xff] }
 0x299   : > { %6637 = vmatprep.mubr.f32.mxu0 %v8738_v58  ;;  %4052 = vmatpush1.msra.mxu0 %v5867_v6  ;;  %v5890_v58 = vld [vmem:[%s10007_s1 + $0x860] sm:$0xff] }
 0x29a   : > { %3571 = vmatmul.mubr.f32.gmra.mxu1 %v8902_v19  ;;  %4053 = vmatprep.subr.mxu0 %v9264_v46  ;;  %v10122_v19 = vld [vmem:[#allocation16_spill] sm:$0xff]  ;;  %v5882_v6 = vld [vmem:[%s10007_s1 + $0x820] sm:$0xff] }
 0x29b   : > { %3575 = vmatprep.mubr.f32.mxu1 %v8693_v26  ;;  %4054 = vmatpush1.msra.mxu0 %v5866_v14  ;;  %v5863_v26 = vld [vmem:[%s10007_s1 + $0x788] sm:$0xff]  ;;  %v5880_v14 = vld [vmem:[%s10007_s1 + $0x810] sm:$0xff] }
 0x29c   : > { %6638 = vmatmul.mubr.f32.gmra.mxu0 %v8750_v8  ;;  %4055 = vmatprep.subr.mxu0 %v9264_v46  ;;  %v10116_v8 = vld [vmem:[#allocation17_spill] sm:$0xff] }
 0x29d   : > { %6640 = vmatprep.mubr.f32.mxu0 %v8763_v52  ;;  %4056 = vmatpush1.msra.mxu0 %v5865_v51  ;;  %v10117_v52 = vld [vmem:[#allocation10_spill] sm:$0xff]  ;;  %v10128_v51 = vld [vmem:[#allocation11_spill] sm:$0xff] }
 0x29e   : > { %3576 = vmatmul.mubr.f32.gmra.mxu1 %v8923_v7  ;;  %4057 = vmatprep.subr.mxu0 %v9264_v46  ;;  %v10123_v7 = vld [vmem:[#allocation20_spill] sm:$0xff] }
 0x29f   : > { %3580 = vmatprep.mubr.f32.mxu1 %v8735_v17  ;;  %4058 = vmatpush1.msra.mxu0 %v5864_v3  ;;  %v5892_v17 = vld [vmem:[%s10007_s1 + $0x870] sm:$0xff]  ;;  %v5878_v3 = vld [vmem:[%s10007_s1 + $0x800] sm:$0xff] }
 0x2a0   : > { %6641 = vmatmul.mubr.f32.gmra.mxu0 %v8774_v41  ;;  %4059 = vmatprep.subr.mxu0 %v9264_v46  ;;  %v10118_v41 = vld [vmem:[#allocation15_spill] sm:$0xff] }
 0x2a1   : > { %6643 = vmatprep.mubr.f32.mxu0 %v8786_v21  ;;  %4060 = vmatpush1.msra.mxu0 %v5863_v26  ;;  %v10119_v21 = vld [vmem:[#allocation18_spill] sm:$0xff] }
 0x2a2   : > { %3581 = vmatmul.mubr.f32.gmra.mxu1 %v8946_v60  ;;  %4061 = vmatprep.subr.mxu0 %v9264_v46  ;;  %v5899_v26 = vld [vmem:[%s10007_s1 + $0x8a8] sm:$0xff] }
 0x2a3   : > { %3585 = vmatprep.mubr.f32.mxu1 %v8730_v37  ;;  %4062 = vmatpush1.msra.mxu0 %v5862_v18  ;;  %v5891_v37 = vld [vmem:[%s10007_s1 + $0x868] sm:$0xff]  ;;  %v10129_v18 = vld [vmem:[#allocation7_spill] sm:$0xff] }
 0x2a4   : > { %6644 = vmatmul.mubr.f32.gmra.mxu0 %v8796_v12  ;;  %4063 = vmatprep.subr.mxu0 %v9264_v46  ;;  %v5888_v12 = vld [vmem:[%s10007_s1 + $0x850] sm:$0xff] }
 0x2a5   : > { %6646 = vmatprep.mubr.f32.mxu0 %v8825_v10  ;;  %4064 = vmatpush2.msra.mxu0 %v5893_v0  ;;  %v10120_v10 = vld [vmem:[#allocation19_spill] sm:$0xff] }
 0x2a6   : > { %3586 = vmatmul.mubr.f32.gmra.mxu1 %v8967_v45  ;;  %4065 = vmatprep.subr.mxu0 %v9264_v46 }
 0x2a7   : > { %3590 = vmatprep.mubr.f32.mxu1 %v8758_v29  ;;  %4066 = vmatpush2.msra.mxu0 %v5892_v17  ;;  %v5889_v29 = vld [vmem:[%s10007_s1 + $0x858] sm:$0xff]  ;;  %v5898_v17 = vld [vmem:[%s10007_s1 + $0x8a0] sm:$0xff] }
 0x2a8   : > { %6647 = vmatmul.mubr.f32.gmra.mxu0 %v8827_v61  ;;  %4067 = vmatprep.subr.mxu0 %v9264_v46  ;;  %v10121_v61 = vld [vmem:[#allocation12_spill] sm:$0xff] }
 0x2a9   : > { %6649 = vmatprep.mubr.f32.mxu0 %v10116_v8  ;;  %4068 = vmatpush2.msra.mxu0 %v5891_v37  ;;  %v6838_v37 = vld [vmem:[#allocation3 + $0x30] sm:$0xff]  ;;  %v5897_v8 = vld [vmem:[%s10007_s1 + $0x898] sm:$0xff] }
 0x2aa   : > { %3591 = vmatmul.mubr.f32.gmra.mxu1 %v10117_v52  ;;  %4069 = vmatprep.subr.mxu0 %v9264_v46 }
 0x2ab   : > { %3595 = vmatprep.mubr.f32.mxu1 %v10118_v41  ;;  %4070 = vmatpush2.msra.mxu0 %v5890_v58  ;;  %v10130_v41 = vld [vmem:[#allocation21_spill] sm:$0xff] }
 0x2ac   : > { %6650 = vmatmul.mubr.f32.gmra.mxu0 %v10119_v21  ;;  %4071 = vmatprep.subr.mxu0 %v9264_v46 }
 0x2ad   : > { %6652 = vmatprep.mubr.f32.mxu0 %v10120_v10  ;;  %4072 = vmatpush2.msra.mxu0 %v5889_v29  ;;  %v6839_v10 = vld [vmem:[#allocation3 + $0x38] sm:$0xff] }
 0x2ae   : > { %3596 = vmatmul.mubr.f32.gmra.mxu1 %v10121_v61  ;;  %4073 = vmatprep.subr.mxu0 %v9264_v46 }
 0x2af   : > { %3600 = vmatprep.mubr.f32.mxu1 %v10122_v19  ;;  %4074 = vmatpush2.msra.mxu0 %v5888_v12 }
 0x2b0   : > { %6653 = vmatmul.mubr.f32.gmra.mxu0 %v10123_v7  ;;  %4075 = vmatprep.subr.mxu0 %v9264_v46  ;;  %v5895_v7 = vld [vmem:[%s10007_s1 + $0x888] sm:$0xff] }
 0x2b1   : > { %6655 = vmatprep.mubr.f32.mxu0 %v10124_v39  ;;  %4076 = vmatpush2.msra.mxu0 %v5887_v13 }
 0x2b2   : > { %3601 = vmatmul.mubr.f32.gmra.mxu1 %v9033_v16  ;;  %4077 = vmatprep.subr.mxu0 %v9264_v46 }
 0x2b3   : > { %3605 = vmatprep.mubr.f32.mxu1 %v8820_v47  ;;  %4078 = vmatpush2.msra.mxu0 %v5886_v49  ;;  %v5883_v47 = vld [vmem:[%s10007_s1 + $0x828] sm:$0xff]  ;;  %v10131_v49 = vld [vmem:[#allocation23_spill] sm:$0xff] }
 0x2b4   : > { %6656 = vmatmul.mubr.f32.gmra.mxu0 %v10125_v43  ;;  %4079 = vmatprep.subr.mxu0 %v9264_v46 }
 0x2b5   : > { %6658 = vmatprep.mubr.f32.mxu0 %v10126_v50  ;;  %4080 = vmatpush2.msra.mxu0 %v5885_v56 }
 0x2b6   : > { %3606 = vmatmul.mubr.f32.gmra.mxu1 %v9054_v22  ;;  %4081 = vmatprep.subr.mxu0 %v9264_v46 }
 0x2b7   : > { %3610 = vmatprep.mubr.f32.mxu1 %v8846_v38  ;;  %4082 = vmatpush2.msra.mxu0 %v5884_v23  ;;  %v5881_v38 = vld [vmem:[%s10007_s1 + $0x818] sm:$0xff] }
 0x2b8   : > { %6659 = vmatmul.mubr.f32.gmra.mxu0 %v10127_v63  ;;  %4083 = vmatprep.subr.mxu0 %v9264_v46  ;;  %v6840_v23 = vld [vmem:[#allocation3 + $0x48] sm:$0xff] }
 0x2b9   : > { %6661 = vmatprep.mubr.f32.mxu0 %v9043_v48  ;;  %4084 = vmatpush2.msra.mxu0 %v5883_v47 }
 0x2ba   : > { %3611 = vmatmul.mubr.f32.gmra.mxu1 %v9071_v4  ;;  %4085 = vmatprep.subr.mxu0 %v9264_v46 }
 0x2bb   : > { %3615 = vmatprep.mubr.f32.mxu1 %v8868_v62  ;;  %4086 = vmatpush2.msra.mxu0 %v5882_v6  ;;  %v5879_v62 = vld [vmem:[%s10007_s1 + $0x808] sm:$0xff] }
 0x2bc   : > { %6662 = vmatmul.mubr.f32.gmra.mxu0 %v9045_v57  ;;  %4087 = vmatprep.subr.mxu0 %v9264_v46 }
 0x2bd   : > { %6664 = vmatprep.mubr.f32.mxu0 %v9082_v2  ;;  %4088 = vmatpush2.msra.mxu0 %v5881_v38 }
 0x2be   : > { %3616 = vmatmul.mubr.f32.gmra.mxu1 %v9091_v44  ;;  %4089 = vmatprep.subr.mxu0 %v9264_v46 }
 0x2bf   : > { %3620 = vmatprep.mubr.f32.mxu1 %v8890_v55  ;;  %4090 = vmatpush2.msra.mxu0 %v5880_v14 }
 0x2c0   : > { %6665 = vmatmul.mubr.f32.gmra.mxu0 %v10128_v51  ;;  %4091 = vmatprep.subr.mxu0 %v9264_v46 }
 0x2c1   : > { %4092 = vmatpush2.msra.mxu0 %v5879_v62  ;;  %4095 = vmatprep.mubr.f32.mxu0 %v9145_v28  ;;  %v6841_v62 = vld [vmem:[#allocation3 + $0x50] sm:$0xff] }
 0x2c2   : > { %3621 = vmatmul.mubr.f32.gmra.mxu1 %v10129_v18  ;;  %4093 = vmatprep.subr.mxu0 %v9264_v46  ;;  %v3052_v55 = vpop.f32.mrf.mxu0  ;;  %v6541_v0 = vpop.f32.mrf.mxu1 }
 0x2c3   : > { %3625 = vmatprep.mubr.f32.mxu1 %v8909_v1  ;;  %4094 = vmatpush2.msra.mxu0 %v5878_v3 }
 0x2c4   : > { %4096 = vmatmul.mubr.f32.vlgmr.msra.gmra.mxu0 %v6838_v37  ;;  %v3054_v28 = vpop.f32.mrf.mxu0  ;;  %6687 = vmatprep.subr.mxu1 %v5899_v26  ;;  %v3277_v58 = vpop.f32.mrf.mxu1 }
 0x2c5   : > { %4100 = vmatprep.mubr.f32.mxu0 %v9156_v40  ;;  %6688 = vmatpush3.msra.mxu1 %v5899_v26  ;;  %v9410_v29 = vadd.f32 %v3277_v58, %v3052_v55  ;;  %v5896_v40 = vld [vmem:[%s10007_s1 + $0x890] sm:$0xff]  ;;  %v10132_v58 = vld [vmem:[#allocation22_spill] sm:$0xff] }
 0x2c6   : > { %3626 = vmatmul.mubr.f32.gmra.mxu1 %v9109_v59  ;;  %v3057_v1 = vpop.f32.mrf.mxu0  ;;  %6689 = vmatprep.subr.mxu1 %v5898_v17  ;;  %v6842_v26 = vld [vmem:[#allocation3 + $0x61] sm:$0xff] }
 0x2c7   : > { %3630 = vmatprep.mubr.f32.mxu1 %v10130_v41  ;;  %v9414_v21 = vadd.f32 %v6541_v0, %v3057_v1  ;;  %v6544_v12 = vpop.f32.mrf.mxu1  ;;  %6690 = vmatpush3.msra.mxu1 %v5898_v17  ;;  %v6843_v17 = vld [vmem:[#allocation3 + $0x60] sm:$0xff]  ;;  %v6844_v1 = vld [vmem:[#allocation3 + $0x68] sm:$0xff] }
 0x2c8   : > { %4101 = vmatmul.mubr.f32.gmra.mxu0 %v6839_v10  ;;  %v3059_v13 = vpop.f32.mrf.mxu0  ;;  %6691 = vmatprep.subr.mxu1 %v5897_v8 }
 0x2c9   : > { %4105 = vmatprep.mubr.f32.mxu0 %v9167_v9  ;;  %v3287_v19 = vpop.f32.mrf.mxu1  ;;  %6692 = vmatpush3.msra.mxu1 %v5897_v8  ;;  %v5894_v9 = vld [vmem:[%s10007_s1 + $0x880] sm:$0xff]  ;;  %v6846_v13 = vld [vmem:[#allocation3 + $0x78] sm:$0xff] }
 0x2ca   : > { %3631 = vmatmul.mubr.f32.gmra.mxu1 %v10131_v49  ;;  %v3062_v39 = vpop.f32.mrf.mxu0  ;;  %6693 = vmatprep.subr.mxu1 %v5896_v40 }
 0x2cb   : > { %3635 = vmatprep.mubr.f32.mxu1 %v8956_v35  ;;  %v9425_v56 = vadd.f32 %v3287_v19, %v3062_v39  ;;  %v6547_v43 = vpop.f32.mrf.mxu1  ;;  %6694 = vmatpush3.msra.mxu1 %v5896_v40  ;;  %v10133_v40 = vld [vmem:[#allocation24_spill] sm:$0xff]  ;;  %v10134_v39 = vld [vmem:[#allocation25_spill] sm:$0xff] }
 0x2cc   : > { %4106 = vmatmul.mubr.f32.gmra.mxu0 %v6840_v23  ;;  %v3064_v47 = vpop.f32.mrf.mxu0  ;;  %6695 = vmatprep.subr.mxu1 %v5895_v7  ;;  %v6847_v23 = vld [vmem:[#allocation3 + $0x80] sm:$0xff] }
 0x2cd   : > { %4110 = vmatprep.mubr.f32.mxu0 %v9179_v5  ;;  %v3297_v6 = vpop.f32.mrf.mxu1  ;;  %6696 = vmatpush3.msra.mxu1 %v5895_v7 }
 0x2ce   : > { %3636 = vmatmul.mubr.f32.gmra.mxu1 %v9122_v27  ;;  %v3067_v38 = vpop.f32.mrf.mxu0  ;;  %6697 = vmatprep.subr.mxu1 %v5894_v9 }
 0x2cf   : > { %3640 = vmatprep.mubr.f32.mxu1 %v8977_v20  ;;  %v9433_v35 = vadd.f32 %v6544_v12, %v3067_v38  ;;  %v6550_v14 = vpop.f32.mrf.mxu1  ;;  %6698 = vmatpush3.msra.mxu1 %v5894_v9  ;;  %v6845_v12 = vld [vmem:[#allocation3 + $0x79] sm:$0xff] }
 0x2d0   : > { %4111 = vmatmul.mubr.f32.gmra.mxu0 %v6841_v62  ;;  %v3069_v3 = vpop.f32.mrf.mxu0  ;;  %v6849_v62 = vld [vmem:[#allocation3 + $0x90] sm:$0xff] }
 0x2d1   : > { %4115 = vmatprep.mubr.f32.mxu0 %v6842_v26  ;;  %v3307_v55 = vpop.f32.mrf.mxu1  ;;  %v6850_v26 = vld [vmem:[#allocation3 + $0x62] sm:$0xff] }
 0x2d2   : > { %3641 = vmatmul.mubr.f32.gmra.mxu1 %v9130_v15  ;;  %v3072_v5 = vpop.f32.mrf.mxu0 }
 0x2d3   : > { %3645 = vmatprep.mubr.f32.mxu1 %v8996_v25  ;;  %v9437_v0 = vadd.f32 %v3297_v6, %v3072_v5  ;;  %v6553_v37 = vpop.f32.mrf.mxu1  ;;  %v6848_v6 = vld [vmem:[#allocation3 + $0x91] sm:$0xff] }
 0x2d4   : > { %4116 = vmatmul.mubr.f32.gmra.mxu0 %v6843_v17  ;;  %v3074_v20 = vpop.f32.mrf.mxu0  ;;  %v6851_v5 = vld [vmem:[#allocation3 + $0x98] sm:$0xff]  ;;  %v6852_v17 = vld [vmem:[#allocation3 + $0xa9] sm:$0xff] }
 0x2d5   : > { %4120 = vmatprep.mubr.f32.mxu0 %v9198_v31  ;;  %v3317_v25 = vpop.f32.mrf.mxu1  ;;  %v6853_v20 = vld [vmem:[#allocation3 + $0x6a] sm:$0xff] }
 0x2d6   : > { %3646 = vmatmul.mubr.f32.gmra.mxu1 %v9138_v36  ;;  %v3077_v28 = vpop.f32.mrf.mxu0 }
 0x2d7   : > { %3650 = vmatprep.mubr.f32.mxu1 %v10132_v58  ;;  %v9442_v8 = vadd.f32 %v6547_v43, %v3077_v28  ;;  %v6556_v7 = vpop.f32.mrf.mxu1  ;;  %v6854_v58 = vld [vmem:[#allocation3 + $0x7a] sm:$0xff] }
 0x2d8   : > { %4121 = vmatmul.mubr.f32.gmra.mxu0 %v6844_v1  ;;  %v3079_v41 = vpop.f32.mrf.mxu0  ;;  %v6855_v1 = vld [vmem:[#allocation3 + $0xa8] sm:$0xff] }
 0x2d9   : > { %4125 = vmatprep.mubr.f32.mxu0 %v6845_v12  ;;  %v6856_v41 = vld [vmem:[#allocation3 + $0xb1] sm:$0xff]  ;;  %v6857_v12 = vld [vmem:[#allocation3 + $0x82] sm:$0xff] }
 0x2da   : > { %3651 = vmatmul.mubr.f32.gmra.mxu1 %v10133_v40  ;;  %v3082_v10 = vpop.f32.mrf.mxu0 }
 0x2db   : > { %3655 = vmatprep.mubr.f32.mxu1 %v9040_v11  ;;  %v9446_v31 = vadd.f32 %v3307_v55, %v3082_v10  ;;  %v3327_v11 = vpop.f32.mrf.mxu1  ;;  %v6858_v10 = vld [vmem:[#allocation3 + $0x92] sm:$0xff] }
 0x2dc   : > { %4126 = vmatmul.mubr.f32.gmra.mxu0 %v6846_v13  ;;  %v3084_v19 = vpop.f32.mrf.mxu0 }
 0x2dd   : > { %4130 = vmatprep.mubr.f32.mxu0 %v9222_v54  ;;  %v6859_v19 = vld [vmem:[#allocation3 + $0xb0] sm:$0xff] }
 0x2de   : > { %3656 = vmatmul.mubr.f32.gmra.mxu1 %v10134_v39  ;;  %v3087_v43 = vpop.f32.mrf.mxu0 }
 0x2df   : > { %6699 = vmatprep.mubr.f32.mxu1 %v9211_v33  ;;  %v9451_v9 = vadd.f32 %v6550_v14, %v3087_v43  ;;  %v6559_v33 = vpop.f32.mrf.mxu1 }
 0x2e0   : > { %4131 = vmatmul.mubr.f32.gmra.mxu0 %v6847_v23  ;;  %v3089_v47 = vpop.f32.mrf.mxu0  ;;  %v6860_v23 = vld [vmem:[#allocation3 + $0xc1] sm:$0xff] }
 0x2e1   : > { %4135 = vmatprep.mubr.f32.mxu0 %v6848_v6  ;;  %v6861_v6 = vld [vmem:[#allocation3 + $0x9a] sm:$0xff] }
 0x2e2   : > { %6700 = vmatmul.mubr.f32.vlgmr.msra.gmra.mxu1 %v9225_v30  ;;  %v3092_v38 = vpop.f32.mrf.mxu0 }
 0x2e3   : > { %6702 = vmatprep.mubr.f32.mxu1 %v9232_v42  ;;  %v9455_v54 = vadd.f32 %v3317_v25, %v3092_v38  ;;  %v3337_v42 = vpop.f32.mrf.mxu1  ;;  %v6862_v38 = vld [vmem:[#allocation3 + $0xaa] sm:$0xff] }
 0x2e4   : > { %4136 = vmatmul.mubr.f32.gmra.mxu0 %v6849_v62  ;;  %v3094_v3 = vpop.f32.mrf.mxu0 }
 0x2e5   : > { %4140 = vmatprep.mubr.f32.mxu0 %v9254_v34 }
 0x2e6   : > { %6703 = vmatmul.mubr.f32.gmra.mxu1 %v9241_v32  ;;  %v3097_v14 = vpop.f32.mrf.mxu0 }
 0x2e7   : > { %6705 = vmatprep.mubr.f32.mxu1 %v6850_v26  ;;  %v9459_v55 = vadd.f32 %v6553_v37, %v3097_v14  ;;  %v6562_v37 = vpop.f32.mrf.mxu1  ;;  %v6863_v26 = vld [vmem:[#allocation3 + $0xc9] sm:$0xff] }
 0x2e8   : > { %4141 = vmatmul.mubr.f32.gmra.mxu0 %v6851_v5  ;;  %v3099_v30 = vpop.f32.mrf.mxu0 }
 0x2e9   : > { %4145 = vmatprep.mubr.f32.mxu0 %v6852_v17  ;;  %v3347_v47 = vpop.f32.mrf.mxu1  ;;  %v6865_v30 = vld [vmem:[#allocation3 + $0xc2] sm:$0xff] }
 0x2ea   : > { %6706 = vmatmul.mubr.f32.gmra.mxu1 %v6853_v20  ;;  %v3102_v28 = vpop.f32.mrf.mxu0 }
 0x2eb   : > { %6708 = vmatprep.mubr.f32.mxu1 %v6854_v58  ;;  %v9461_v34 = vadd.f32 %v3327_v11, %v3102_v28  ;;  %v6565_v3 = vpop.f32.mrf.mxu1  ;;  %v6866_v58 = vld [vmem:[#allocation3 + $0xd9] sm:$0xff] }
 0x2ec   : > { %4146 = vmatmul.mubr.f32.gmra.mxu0 %v6855_v1  ;;  %v3104_v32 = vpop.f32.mrf.mxu0  ;;  %v6867_v1 = vld [vmem:[#allocation3 + $0xca] sm:$0xff] }
 0x2ed   : > { %4150 = vmatprep.mubr.f32.mxu0 %v6856_v41  ;;  %v3357_v20 = vpop.f32.mrf.mxu1  ;;  %v6868_v32 = vld [vmem:[#allocation3 + $0xda] sm:$0xff] }
 0x2ee   : > { %6709 = vmatmul.mubr.f32.gmra.mxu1 %v6857_v12  ;;  %v3107_v25 = vpop.f32.mrf.mxu0 }
 0x2ef   : > { %6711 = vmatprep.mubr.f32.mxu1 %v6858_v10  ;;  %v9463_v13 = vadd.f32 %v6556_v7, %v3107_v25  ;;  %v6864_v7 = vld [vmem:[#allocation3 + $0xb2] sm:$0xff]  ;;  %v6869_v25 = vld [vmem:[#allocation3 + $0xe1] sm:$0xff] }
 0x2f0   : > { %4151 = vmatmul.mubr.f32.gmra.mxu0 %v6859_v19  ;;  %v3109_v43 = vpop.f32.mrf.mxu0  ;;  %v6870_v10 = vld [vmem:[#allocation3 + $0xe2] sm:$0xff]  ;;  %v6871_v19 = vld [vmem:[#allocation3 + $0xf2] sm:$0xff] }
 0x2f1   : > { %4155 = vmatprep.mubr.f32.mxu0 %v6860_v23 }
 0x2f2   : > { %6712 = vmatmul.mubr.f32.gmra.mxu1 %v6861_v6  ;;  %v3112_v11 = vpop.f32.mrf.mxu0 }
 0x2f3   : > { %6714 = vmatprep.mubr.f32.mxu1 %v6862_v38  ;;  %v9465_v62 = vadd.f32 %v3337_v42, %v3112_v11  ;;  %v6568_v42 = vpop.f32.mrf.mxu1  ;;  %v6872_v11 = vld [vmem:[#allocation3 + $0xf1] sm:$0xff] }
 0x2f4   : > { %4156 = vmatmul.mubr.f32.gmra.mxu0 %v8946_v60  ;;  %v3114_v14 = vpop.f32.mrf.mxu0  ;;  %v6874_v38 = vld [vmem:[#allocation3 + $0x10a] sm:$0xff] }
 0x2f5   : > { %4160 = vmatprep.mubr.f32.mxu0 %v6863_v26 }
 0x2f6   : > { %6715 = vmatmul.mubr.f32.gmra.mxu1 %v6864_v7  ;;  %v3117_v5 = vpop.f32.mrf.mxu0 }
 0x2f7   : > { %6717 = vmatprep.mubr.f32.mxu1 %v6865_v30  ;;  %v9468_v17 = vadd.f32 %v6559_v33, %v3117_v5  ;;  %v3367_v33 = vpop.f32.mrf.mxu1  ;;  %v6875_v5 = vld [vmem:[#allocation3 + $0xf9] sm:$0xff] }
 0x2f8   : > { %4161 = vmatmul.mubr.f32.gmra.mxu0 %v8967_v45  ;;  %v3119_v28 = vpop.f32.mrf.mxu0  ;;  %v6876_v30 = vld [vmem:[#allocation3 + $0x112] sm:$0xff] }
 0x2f9   : > { %4165 = vmatprep.mubr.f32.mxu0 %v6866_v58  ;;  %v6571_v23 = vpop.f32.mrf.mxu1  ;;  %v6877_v28 = vld [vmem:[#allocation3 + $0x122] sm:$0xff] }
 0x2fa   : > { %6718 = vmatmul.mubr.f32.gmra.mxu1 %v6867_v1  ;;  %v3122_v60 = vpop.f32.mrf.mxu0 }
 0x2fb   : > { %6720 = vmatprep.mubr.f32.mxu1 %v6868_v32  ;;  %v9471_v41 = vadd.f32 %v3347_v47, %v3122_v60  ;;  %v6873_v47 = vld [vmem:[#allocation3 + $0xfa] sm:$0xff]  ;;  %v3377_v26 = vpop.f32.mrf.mxu1  ;;  %v6879_v32 = vld [vmem:[#allocation3 + $0x12a] sm:$0xff] }
 0x2fc   : > { %4166 = vmatmul.mubr.f32.gmra.mxu0 %v10117_v52  ;;  %v3124_v12 = vpop.f32.mrf.mxu0 }
 0x2fd   : > { %4170 = vmatprep.mubr.f32.mxu0 %v6869_v25 }
 0x2fe   : > { %6721 = vmatmul.mubr.f32.gmra.mxu1 %v6870_v10  ;;  %v3127_v45 = vpop.f32.mrf.mxu0 }
 0x2ff   : > { %6723 = vmatprep.mubr.f32.mxu1 %v6871_v19  ;;  %v9474_v43 = vadd.f32 %v6562_v37, %v3127_v45  ;;  %v9480_v37 = vpop.f32.mrf.mxu1 }
 0x300   : > { %4171 = vmatmul.mubr.f32.gmra.mxu0 %v10121_v61  ;;  %v3129_v6 = vpop.f32.mrf.mxu0 }
 0x301   : > { %4175 = vmatprep.mubr.f32.mxu0 %v6872_v11  ;;  %v3387_v60 = vpop.f32.mrf.mxu1 }
 0x302   : > { %6724 = vmatmul.mubr.f32.gmra.mxu1 %v6873_v47  ;;  %v3132_v52 = vpop.f32.mrf.mxu0  ;;  %v10135_v47 = vld [vmem:[#allocation14_spill] sm:$0xff] }
 0x303   : > { %6726 = vmatprep.mubr.f32.mxu1 %v6874_v38  ;;  %v9477_v14 = vadd.f32 %v3357_v20, %v3132_v52  ;;  %v6878_v20 = vld [vmem:[#allocation3 + $0x109] sm:$0xff] }
 0x304   : > { %4176 = vmatmul.mubr.f32.gmra.mxu0 %v9033_v16  ;;  %v3134_v7 = vpop.f32.mrf.mxu0 }
 0x305   : > { %4180 = vmatprep.mubr.f32.mxu0 %v6875_v5 }
 0x306   : > { %6727 = vmatmul.mubr.f32.gmra.mxu1 %v6876_v30  ;;  %v3137_v61 = vpop.f32.mrf.mxu0  ;;  %v9488_v25 = vpop.f32.mrf.mxu1 }
 0x307   : > { %6729 = vmatprep.mubr.f32.mxu1 %v6877_v28  ;;  %v9482_v58 = vadd.f32 %v6565_v3, %v3137_v61  ;;  %v6880_v3 = vld [vmem:[#allocation3 + $0x111] sm:$0xff]  ;;  %v6884_v61 = vld [vmem:[#allocation3 + $0x141] sm:$0xff] }
 0x308   : > { %4181 = vmatmul.mubr.f32.gmra.mxu0 %v9054_v22  ;;  %v3139_v1 = vpop.f32.mrf.mxu0  ;;  %v3397_v19 = vpop.f32.mrf.mxu1 }
 0x309   : > { %4185 = vmatprep.mubr.f32.mxu0 %v6878_v20 }
 0x30a   : > { %6730 = vmatmul.mubr.f32.gmra.mxu1 %v6879_v32  ;;  %v3142_v16 = vpop.f32.mrf.mxu0  ;;  %v6885_v32 = vld [vmem:[#allocation3 + $0x151] sm:$0xff] }
 0x30b   : > { %6732 = vmatprep.mubr.f32.mxu1 %v10126_v50  ;;  %v9486_v12 = vadd.f32 %v3367_v33, %v3142_v16  ;;  %v6881_v33 = vld [vmem:[#allocation3 + $0x121] sm:$0xff] }
 0x30c   : > { %4186 = vmatmul.mubr.f32.gmra.mxu0 %v9071_v4  ;;  %v3144_v10 = vpop.f32.mrf.mxu0 }
 0x30d   : > { %4190 = vmatprep.mubr.f32.mxu0 %v6880_v3 }
 0x30e   : > { %6733 = vmatmul.mubr.f32.gmra.mxu1 %v10127_v63  ;;  %v3147_v22 = vpop.f32.mrf.mxu0  ;;  %v9496_v6 = vpop.f32.mrf.mxu1  ;;  %v6882_v63 = vld [vmem:[#allocation3 + $0x129] sm:$0xff] }
 0x30f   : > { %6735 = vmatprep.mubr.f32.mxu1 %v9043_v48  ;;  %v9493_v45 = vadd.f32 %v6568_v42, %v3147_v22 }
 0x310   : > { %4191 = vmatmul.mubr.f32.gmra.mxu0 %v9091_v44  ;;  %v3149_v50 = vpop.f32.mrf.mxu0  ;;  %v3407_v42 = vpop.f32.mrf.mxu1 }
 0x311   : > { %4195 = vmatprep.mubr.f32.mxu0 %v6881_v33  ;;  %v6886_v33 = vld [vmem:[#allocation3 + $0x159] sm:$0xff] }
 0x312   : > { %6736 = vmatmul.mubr.f32.gmra.mxu1 %v9045_v57  ;;  %v3152_v4 = vpop.f32.mrf.mxu0 }
 0x313   : > { %6738 = vmatprep.mubr.f32.mxu1 %v9082_v2  ;;  %v9500_v11 = vadd.f32 %v3377_v26, %v3152_v4  ;;  %v2658_v2 = vld [vmem:[#allocation3 + $0x19a] sm:$0xff] }
 0x314   : > { %4196 = vmatmul.mubr.f32.gmra.mxu0 %v10129_v18  ;;  %v3154_v48 = vpop.f32.mrf.mxu0  ;;  %v6883_v26 = vld [vmem:[#allocation3 + $0x139] sm:$0xff]  ;;  %v10136_v18 = vld [vmem:[#allocation13_spill] sm:$0xff] }
 0x315   : > { %4200 = vmatprep.mubr.f32.mxu0 %v6882_v63 }
 0x316   : > { %6739 = vmatmul.mubr.f32.gmra.mxu1 %v10128_v51  ;;  %v3157_v44 = vpop.f32.mrf.mxu0  ;;  %v9507_v38 = vpop.f32.mrf.mxu1  ;;  %v2659_v51 = vld [vmem:[#allocation3 + $0x1a2] sm:$0xff] }
 0x317   : > { %6741 = vmatprep.mubr.f32.mxu1 %v10135_v47  ;;  %v9505_v52 = vadd.f32 %v6571_v23, %v3157_v44  ;;  %v6887_v44 = vld [vmem:[#allocation3 + $0x169] sm:$0xff] }
 0x318   : > { %4201 = vmatmul.mubr.f32.gmra.mxu0 %v9109_v59  ;;  %v3159_v57 = vpop.f32.mrf.mxu0  ;;  %v3417_v30 = vpop.f32.mrf.mxu1 }
 0x319   : > { %4205 = vmatprep.mubr.f32.mxu0 %v6883_v26  ;;  %v6888_v26 = vld [vmem:[#allocation3 + $0x171] sm:$0xff] }
 0x31a   : > { %6742 = vmatmul.mubr.f32.gmra.mxu1 %v10136_v18  ;;  %v3162_v7 = vpop.f32.mrf.mxu0 }
 0x31b   : > { %v9511_v5 = vadd.f32 %v3387_v60, %v3162_v7  ;;  %6744 = vmatprep.mubr.f32.mxu1 %v2658_v2 }
 0x31c   : > { %4206 = vmatmul.mubr.f32.gmra.mxu0 %v10131_v49  ;;  %v3164_v23 = vpop.f32.mrf.mxu0 }
 0x31d   : > { %4210 = vmatprep.mubr.f32.mxu0 %v6884_v61  ;;  %v9514_v28 = vpop.f32.mrf.mxu1  ;;  %v6889_v23 = vld [vmem:[#allocation3 + $0x181] sm:$0xff] }
 0x31e   : > { %v3167_v59 = vpop.f32.mrf.mxu0  ;;  %6745 = vmatmul.mubr.f32.gmra.mxu1 %v2659_v51 }
 0x31f   : > { %v9517_v1 = vadd.f32 %v9480_v37, %v3167_v59  ;;  %v3427_v20 = vpop.f32.mrf.mxu1 }
 0x320   : > { %4211 = vmatmul.mubr.f32.gmra.mxu0 %v9122_v27  ;;  %v3169_v60 = vpop.f32.mrf.mxu0 }
 0x321   : > { %4215 = vmatprep.mubr.f32.mxu0 %v6885_v32  ;;  %v3502_v16 = vpop.f32.mrf.mxu1 }
 0x322   : > { %v3172_v10 = vpop.f32.mrf.mxu0  ;;  %v9521_v49 = vadd.f32 %v3502_v16, %v9410_v29  ;;  %v2586_v16 = vld [vmem:[#allocation3 + $0x199] sm:$0xff] }
 0x323   : > { %v9523_v3 = vadd.f32 %v3397_v19, %v3172_v10  ;;  %v3504_v22 = vpop.f32.mrf.mxu1 }
 0x324   : > { %4216 = vmatmul.mubr.f32.gmra.mxu0 %v9130_v15  ;;  %v3174_v50 = vpop.f32.mrf.mxu0 }
 0x325   : > { %4220 = vmatprep.mubr.f32.mxu0 %v6886_v33  ;;  %v3507_v37 = vpop.f32.mrf.mxu1  ;;  %v10137_v50 = vld [vmem:[#allocation26_spill] sm:$0xff] }
 0x326   : > { %v3177_v4 = vpop.f32.mrf.mxu0  ;;  %v3508_v27 = vadd.f32 %v3507_v37, %v9414_v21  ;;  %v2587_v37 = vld [vmem:[#allocation3 + $0x1a1] sm:$0xff] }
 0x327   : > { %v9528_v48 = vadd.f32 %v9488_v25, %v3177_v4  ;;  %v3509_v63 = vpop.f32.mrf.mxu1 }
 0x328   : > { %4221 = vmatmul.mubr.f32.gmra.mxu0 %v9138_v36  ;;  %v3179_v29 = vpop.f32.mrf.mxu0 }
 0x329   : > { %4225 = vmatprep.mubr.f32.mxu0 %v6887_v44  ;;  %v3512_v19 = vpop.f32.mrf.mxu1 }
 0x32a   : > { %v3182_v47 = vpop.f32.mrf.mxu0  ;;  %v9532_v15 = vadd.f32 %v3512_v19, %v9425_v56 }
 0x32b   : > { %v9534_v57 = vadd.f32 %v3407_v42, %v3182_v47  ;;  %v3514_v2 = vpop.f32.mrf.mxu1 }
 0x32c   : > { %4226 = vmatmul.mubr.f32.gmra.mxu0 %v10133_v40  ;;  %v3184_v21 = vpop.f32.mrf.mxu0 }
 0x32d   : > { %4230 = vmatprep.mubr.f32.mxu0 %v6888_v26  ;;  %v3517_v25 = vpop.f32.mrf.mxu1 }
 0x32e   : > { %v3187_v18 = vpop.f32.mrf.mxu0  ;;  %v3518_v36 = vadd.f32 %v3517_v25, %v9433_v35 }
 0x32f   : > { %v9539_v7 = vadd.f32 %v9496_v6, %v3187_v18  ;;  %v3519_v51 = vpop.f32.mrf.mxu1 }
 0x330   : > { %4231 = vmatmul.mubr.f32.gmra.mxu0 %v10134_v39  ;;  %v3189_v56 = vpop.f32.mrf.mxu0 }
 0x331   : > { %4235 = vmatprep.mubr.f32.mxu0 %v6889_v23  ;;  %v3522_v42 = vpop.f32.mrf.mxu1 }
 0x332   : > { %v3192_v61 = vpop.f32.mrf.mxu0  ;;  %v3523_v40 = vadd.f32 %v3522_v42, %v9437_v0 }
 0x333   : > { %v9543_v59 = vadd.f32 %v3417_v30, %v3192_v61  ;;  %v3524_v60 = vpop.f32.mrf.mxu1 }
 0x334   : > { %4236 = vmatmul.mubr.f32.gmra.mxu0 %v9172_v53  ;;  %v3194_v32 = vpop.f32.mrf.mxu0 }
 0x335   : > { %4240 = vmatprep.mubr.f32.mxu0 %v9078_v24  ;;  %v3527_v35 = vpop.f32.mrf.mxu1 }
 0x336   : > { %v3197_v6 = vpop.f32.mrf.mxu0  ;;  %v3528_v39 = vadd.f32 %v3527_v35, %v9442_v8 }
 0x337   : > { %v9549_v10 = vadd.f32 %v9507_v38, %v3197_v6  ;;  %v3529_v22 = vpop.f32.mrf.mxu1 }
 0x338   : > { %4241 = vmatmul.mubr.f32.gmra.mxu0 %v10137_v50  ;;  %v3199_v0 = vpop.f32.mrf.mxu0 }
 0x339   : > { %4245 = vmatprep.mubr.f32.mxu0 %v2586_v16  ;;  %v3532_v30 = vpop.f32.mrf.mxu1 }
 0x33a   : > { %v3202_v33 = vpop.f32.mrf.mxu0  ;;  %v3533_v53 = vadd.f32 %v3532_v30, %v9446_v31 }
 0x33b   : > { %v9553_v4 = vadd.f32 %v3427_v20, %v3202_v33  ;;  %v3534_v24 = vpop.f32.mrf.mxu1 }
 0x33c   : > { %4246 = vmatmul.mubr.f32.gmra.mxu0 %v9264_v46  ;;  %v3204_v63 = vpop.f32.mrf.mxu0 }
 0x33d   : > { %4250 = vmatprep.mubr.f32.mxu0 %v2587_v37  ;;  %v3537_v8 = vpop.f32.mrf.mxu1 }
 0x33e   : > { %v3207_v38 = vpop.f32.mrf.mxu0  ;;  %v3538_v29 = vadd.f32 %v3537_v8, %v9451_v9 }
 0x33f   : > { %v9558_v44 = vadd.f32 %v9514_v28, %v3207_v38  ;;  %v3539_v19 = vpop.f32.mrf.mxu1 }
 0x340   : > { %4251 = vmatmul.mubr.f32.gmra.mxu0 %v9264_v46  ;;  %v3209_v47 = vpop.f32.mrf.mxu0 }
 0x341   : > { %v3542_v2 = vpop.f32.mrf.mxu1 }
 0x342   : > { %v6621_v31 = vpop.f32.mrf.mxu0  ;;  %v3543_v20 = vadd.f32 %v3542_v2, %v9455_v54 }
 0x343   : > { %v9562_v21 = vadd.f32 %v6621_v31, %v3508_v27  ;;  %v3544_v26 = vpop.f32.mrf.mxu1 }
 0x344   : > { %v3727_v25 = vpop.f32.mrf.mxu0 }
 0x345   : > { %v9565_v18 = vadd.f32 %v3727_v25, %v9521_v49  ;;  %v3547_v51 = vpop.f32.mrf.mxu1 }
 0x346   : > { %v3548_v9 = vadd.f32 %v3547_v51, %v9459_v55 }
 0x347   : > { %v6624_v28 = vpop.f32.mrf.mxu0  ;;  %v3549_v56 = vpop.f32.mrf.mxu1 }
 0x348   : > { %v9568_v23 = vadd.f32 %v6624_v28, %v3518_v36 }
 0x349   : > { %v3737_v46 = vpop.f32.mrf.mxu0 }
 0x34a   : > { %v3552_v42 = vpop.f32.mrf.mxu1  ;;  %v9571_v61 = vadd.f32 %v3737_v46, %v9532_v15 }
 0x34b   : > { %v3553_v54 = vadd.f32 %v3552_v42, %v9461_v34  ;;  %v6627_v60 = vpop.f32.mrf.mxu0 }
 0x34c   : > { %v3554_v27 = vpop.f32.mrf.mxu1  ;;  %v9574_v32 = vadd.f32 %v6627_v60, %v3528_v39 }
 0x34d   : > { %v3747_v35 = vpop.f32.mrf.mxu0 }
 0x34e   : > { %v3557_v49 = vpop.f32.mrf.mxu1  ;;  %v9577_v55 = vadd.f32 %v3747_v35, %v3523_v40 }
 0x34f   : > { %v3558_v6 = vadd.f32 %v3557_v49, %v9463_v13 }
 0x350   : > { %v3559_v16 = vpop.f32.mrf.mxu1  ;;  %v6630_v36 = vpop.f32.mrf.mxu0 }
 0x351   : > { %v9579_v22 = vadd.f32 %v6630_v36, %v3538_v29 }
 0x352   : > { %v3562_v50 = vpop.f32.mrf.mxu1  ;;  %v3757_v0 = vpop.f32.mrf.mxu0 }
 0x353   : > { %v3563_v15 = vadd.f32 %v3562_v50, %v9465_v62  ;;  %v9582_v30 = vadd.f32 %v3757_v0, %v3533_v53 }
 0x354   : > { %v3564_v34 = vpop.f32.mrf.mxu1  ;;  %v6633_v33 = vpop.f32.mrf.mxu0 }
 0x355   : > { %v9584_v39 = vadd.f32 %v6633_v33, %v3548_v9 }
 0x356   : > { %v3567_v37 = vpop.f32.mrf.mxu1  ;;  %v3767_v24 = vpop.f32.mrf.mxu0 }
 0x357   : > { %v3568_v13 = vadd.f32 %v3567_v37, %v9468_v17  ;;  %v9587_v40 = vadd.f32 %v3767_v24, %v3543_v20 }
 0x358   : > { %v3569_v63 = vpop.f32.mrf.mxu1  ;;  %v6636_v8 = vpop.f32.mrf.mxu0 }
 0x359   : > { %v9589_v38 = vadd.f32 %v6636_v8, %v3558_v6 }
 0x35a   : > { %v3572_v29 = vpop.f32.mrf.mxu1  ;;  %v3777_v19 = vpop.f32.mrf.mxu0 }
 0x35b   : > { %v3573_v62 = vadd.f32 %v3572_v29, %v9471_v41  ;;  %v9592_v53 = vadd.f32 %v3777_v19, %v3553_v54 }
 0x35c   : > { %v3574_v47 = vpop.f32.mrf.mxu1  ;;  %v6639_v2 = vpop.f32.mrf.mxu0 }
 0x35d   : > { %v9594_v31 = vadd.f32 %v6639_v2, %v3568_v13 }
 0x35e   : > { %v3577_v26 = vpop.f32.mrf.mxu1  ;;  %v3787_v25 = vpop.f32.mrf.mxu0 }
 0x35f   : > { %v3578_v17 = vadd.f32 %v3577_v26, %v9474_v43  ;;  %v9597_v20 = vadd.f32 %v3787_v25, %v3563_v15 }
 0x360   : > { %v3579_v51 = vpop.f32.mrf.mxu1  ;;  %v6642_v9 = vpop.f32.mrf.mxu0 }
 0x361   : > { %v9599_v28 = vadd.f32 %v6642_v9, %v3578_v17 }
 0x362   : > { %v3582_v56 = vpop.f32.mrf.mxu1  ;;  %v3797_v46 = vpop.f32.mrf.mxu0 }
 0x363   : > { %v3583_v41 = vadd.f32 %v3582_v56, %v9477_v14  ;;  %v9602_v42 = vadd.f32 %v3797_v46, %v3573_v62 }
 0x364   : > { %v3584_v54 = vpop.f32.mrf.mxu1  ;;  %v6645_v27 = vpop.f32.mrf.mxu0 }
 0x366   : > { %v3587_v60 = vpop.f32.mrf.mxu1  ;;  %v3807_v49 = vpop.f32.mrf.mxu0 }
 0x367   : > { %v3588_v35 = vadd.f32 %v3587_v60, %v9482_v58  ;;  %v9605_v6 = vadd.f32 %v3807_v49, %v3583_v41 }
 0x368   : > { %v3589_v43 = vpop.f32.mrf.mxu1  ;;  %v6648_v16 = vpop.f32.mrf.mxu0 }
 0x369   : > { %v9607_v36 = vadd.f32 %v6645_v27, %v3588_v35 }
 0x36a   : > { %v3592_v50 = vpop.f32.mrf.mxu1  ;;  %v3817_v0 = vpop.f32.mrf.mxu0 }
 0x36b   : > { %v3593_v15 = vadd.f32 %v3592_v50, %v9486_v12 }
 0x36c   : > { %v3594_v34 = vpop.f32.mrf.mxu1  ;;  %v6651_v14 = vpop.f32.mrf.mxu0 }
 0x36d   : > { %v9610_v33 = vadd.f32 %v3817_v0, %v3593_v15 }
 0x36e   : > { %v3597_v37 = vpop.f32.mrf.mxu1  ;;  %v3827_v24 = vpop.f32.mrf.mxu0 }
 0x36f   : > { %v3598_v13 = vadd.f32 %v3597_v37, %v9493_v45 }
 0x370   : > { %v3599_v63 = vpop.f32.mrf.mxu1  ;;  %v6654_v58 = vpop.f32.mrf.mxu0 }
 0x371   : > { %v9613_v8 = vadd.f32 %v6648_v16, %v3598_v13 }
 0x372   : > { %v3602_v29 = vpop.f32.mrf.mxu1  ;;  %v3837_v19 = vpop.f32.mrf.mxu0 }
 0x373   : > { %v3603_v62 = vadd.f32 %v3602_v29, %v9500_v11 }
 0x374   : > { %v3604_v47 = vpop.f32.mrf.mxu1  ;;  %v6657_v2 = vpop.f32.mrf.mxu0 }
 0x375   : > { %v9616_v26 = vadd.f32 %v3827_v24, %v3603_v62 }
 0x376   : > { %v3607_v12 = vpop.f32.mrf.mxu1  ;;  %v3847_v25 = vpop.f32.mrf.mxu0 }
 0x377   : > { %v3608_v17 = vadd.f32 %v3607_v12, %v9505_v52 }
 0x378   : > { %v3609_v51 = vpop.f32.mrf.mxu1  ;;  %v6660_v9 = vpop.f32.mrf.mxu0 }
 0x379   : > { %v9619_v56 = vadd.f32 %v6651_v14, %v3608_v17 }
 0x37a   : > { %v3612_v45 = vpop.f32.mrf.mxu1  ;;  %v3857_v46 = vpop.f32.mrf.mxu0 }
 0x37b   : > { %v3613_v41 = vadd.f32 %v3612_v45, %v9511_v5 }
 0x37c   : > { %v3614_v54 = vpop.f32.mrf.mxu1  ;;  %v6663_v27 = vpop.f32.mrf.mxu0 }
 0x37d   : > { %v9622_v60 = vadd.f32 %v3837_v19, %v3613_v41 }
 0x37e   : > { %v3617_v11 = vpop.f32.mrf.mxu1  ;;  %v3867_v49 = vpop.f32.mrf.mxu0 }
 0x37f   : > { %v3618_v35 = vadd.f32 %v3617_v11, %v9517_v1 }
 0x380   : > { %v3619_v43 = vpop.f32.mrf.mxu1  ;;  %v6666_v16 = vpop.f32.mrf.mxu0 }
 0x381   : > { %v9625_v50 = vadd.f32 %v6654_v58, %v3618_v35 }
 0x382   : > { %v3622_v52 = vpop.f32.mrf.mxu1  ;;  %v3877_v0 = vpop.f32.mrf.mxu0 }
 0x383   : > { %v3623_v15 = vadd.f32 %v3622_v52, %v9523_v3 }
 0x384   : > { %v3624_v34 = vpop.f32.mrf.mxu1  ;;  %v4097_v14 = vpop.f32.mrf.mxu0 }
 0x385   : > { %v9628_v37 = vadd.f32 %v3847_v25, %v3623_v15 }
 0x386   : > { %v3627_v5 = vpop.f32.mrf.mxu1  ;;  %v4099_v24 = vpop.f32.mrf.mxu0 }
 0x387   : > { %v3628_v13 = vadd.f32 %v3627_v5, %v9528_v48 }
 0x388   : > { %v3629_v63 = vpop.f32.mrf.mxu1  ;;  %v4102_v29 = vpop.f32.mrf.mxu0 }
 0x389   : > { %v9631_v19 = vadd.f32 %v6657_v2, %v3628_v13 }
 0x38a   : > { %v3632_v1 = vpop.f32.mrf.mxu1  ;;  %v4104_v62 = vpop.f32.mrf.mxu0 }
 0x38b   : > { %v3633_v58 = vadd.f32 %v3632_v1, %v9534_v57 }
 0x38c   : > { %v3634_v47 = vpop.f32.mrf.mxu1  ;;  %v4107_v12 = vpop.f32.mrf.mxu0 }
 0x38d   : > { %v9634_v17 = vadd.f32 %v3857_v46, %v3633_v58 }
 0x38e   : > { %v3637_v3 = vpop.f32.mrf.mxu1  ;;  %v4109_v51 = vpop.f32.mrf.mxu0 }
 0x38f   : > { %v3638_v25 = vadd.f32 %v3637_v3, %v9539_v7 }
 0x390   : > { %v3639_v45 = vpop.f32.mrf.mxu1  ;;  %v4112_v41 = vpop.f32.mrf.mxu0 }
 0x391   : > { %v9637_v54 = vadd.f32 %v6660_v9, %v3638_v25 }
 0x392   : > { %v3642_v48 = vpop.f32.mrf.mxu1  ;;  %v4114_v11 = vpop.f32.mrf.mxu0 }
 0x393   : > { %v3643_v2 = vadd.f32 %v3642_v48, %v9543_v59  ;;  %v6899_v11 = vmov 1983009808  }
 0x394   : > { %v3644_v35 = vpop.f32.mrf.mxu1  ;;  %v4117_v43 = vpop.f32.mrf.mxu0 }
 0x395   : > { %v9640_v52 = vadd.f32 %v3867_v49, %v3643_v2  ;;  %v4618_v2 = vlaneseq  ;;  %v9657_v35 = vld [vmem:[%s10008_s2 + $0x1] ss:$0 sm:$0xff] }
 0x396   : > { %v3647_v57 = vpop.f32.mrf.mxu1  ;;  %v4119_v15 = vpop.f32.mrf.mxu0 }
 0x397   : > { %v3648_v46 = vadd.f32 %v3647_v57, %v9549_v10 }
 0x398   : > { %v3649_v34 = vpop.f32.mrf.mxu1  ;;  %v4122_v5 = vpop.f32.mrf.mxu0 }
 0x399   : > { %v9643_v24 = vadd.f32 %v6663_v27, %v3648_v46 }
 0x39a   : > { %v3652_v7 = vpop.f32.mrf.mxu1  ;;  %v4124_v13 = vpop.f32.mrf.mxu0 }
 0x39b   : > { %v3653_v9 = vadd.f32 %v3652_v7, %v9553_v4  ;;  %v4616_v4 = vunpack.c.l.s4 %v6899_v11  ;;  %v4619_v7 = vshrl.u32 %v4618_v2, 7 }
 0x39c   : > { %v3654_v63 = vpop.f32.mrf.mxu1  ;;  %v4127_v1 = vpop.f32.mrf.mxu0 }
 0x39d   : > { %v9646_v62 = vadd.f32 %v3877_v0, %v3653_v9  ;;  %v4617_v34 = vunpack.c.0.s8 %v4616_v4 }
 0x39e   : > { %v3657_v59 = vpop.f32.mrf.mxu1  ;;  %v4129_v58 = vpop.f32.mrf.mxu0 }
 0x39f   : > { %v3658_v49 = vadd.f32 %v3657_v59, %v9558_v44 }
 0x3a0   : > { %v3659_v47 = vpop.f32.mrf.mxu1  ;;  %v4132_v3 = vpop.f32.mrf.mxu0 }
 0x3a1   : > { %v9649_v51 = vadd.f32 %v6666_v16, %v3658_v49 }
 0x3a2   : > { %v4134_v10 = vpop.f32.mrf.mxu0  ;;  %v6701_v25 = vpop.f32.mrf.mxu1 }
 0x3a3   : > { %10138 = vst [vmem:[#allocation17_spill] sm:$0xff] %v9649_v51  ;;  %v4328_v27 = vadd.f32 %v6701_v25, %v4102_v29  ;;  %v9667_v10 = vsub.s32 %v4617_v34, %v4619_v7 }
 0x3a4   : > { %v9651_v45 = vpop.f32.mrf.mxu0  ;;  %v4322_v48 = vpop.f32.mrf.mxu1 }
 0x3a5   : > { %v4482_v0 = vadd.f32 %v4328_v27, %v9562_v21  ;;  %v4323_v44 = vadd.f32 %v4322_v48, %v4097_v14 }
 0x3a6   : > { %v4139_v57 = vpop.f32.mrf.mxu0  ;;  %v6704_v16 = vpop.f32.mrf.mxu1 }
 0x3a7   : > { %v4481_v15 = vadd.f32 %v4323_v44, %v9565_v18  ;;  %v4338_v46 = vadd.f32 %v6704_v16, %v4112_v41  ;;  %v4519_v29 = vadd.f32 %v9657_v35, %v4482_v0 }
 0x3a8   : > { %v9661_v13 = vpop.f32.mrf.mxu0  ;;  %v4332_v9 = vpop.f32.mrf.mxu1 }
 0x3a9   : > { %v4484_v21 = vadd.f32 %v4338_v46, %v9568_v23  ;;  %v4333_v63 = vadd.f32 %v4332_v9, %v4107_v12  ;;  %v4518_v49 = vadd.f32 %v9657_v35, %v4481_v15  ;;  %v4551_v41 = vmax.f32 %v4519_v29, 0.0 }
 0x3aa   : > { %v4144_v59 = vpop.f32.mrf.mxu0  ;;  %v6707_v58 = vpop.f32.mrf.mxu1 }
 0x3ab   : > { %v4521_v14 = vadd.f32 %v9657_v35, %v4484_v21  ;;  %v4483_v47 = vadd.f32 %v4333_v63, %v9571_v61  ;;  %v4348_v18 = vadd.f32 %v6707_v58, %v4122_v5  ;;  %v4550_v0 = vmax.f32 %v4518_v49, 0.0 }
 0x3ac   : > { %v9669_v25 = vpop.f32.mrf.mxu0  ;;  %v4342_v27 = vpop.f32.mrf.mxu1  ;;  %v9678_v21 = vsub.s32 0, %v4619_v7 }
 0x3ad   : > { %v4553_v48 = vmax.f32 %v4521_v14, 0.0  ;;  %v4520_v11 = vadd.f32 %v9657_v35, %v4483_v47  ;;  %v4486_v23 = vadd.f32 %v4348_v18, %v9574_v32  ;;  %v4343_v12 = vadd.f32 %v4342_v27, %v4117_v43 }
 0x3ae   : > { %v4149_v4 = vpop.f32.mrf.mxu0  ;;  %v6710_v2 = vpop.f32.mrf.mxu1 }
 0x3af   : > { %v4583_v44 = vmax.f32 %v4551_v41, %v4553_v48  ;;  %v4552_v57 = vmax.f32 %v4520_v11, 0.0  ;;  %v4485_v61 = vadd.f32 %v4343_v12, %v9577_v55  ;;  %v4523_v5 = vadd.f32 %v9657_v35, %v4486_v23 }
 0x3b0   : > { %v4358_v16 = vadd.f32 %v6710_v2, %v4132_v3  ;;  %v9675_v15 = vpop.f32.mrf.mxu0  ;;  %v4352_v46 = vpop.f32.mrf.mxu1 }
 0x3b1   : > { %v4631_v29 = vcombine.high %v4583_v44, %v4583_v44  ;;  %v4638_v34 = vrot.slane %v4583_v44, %v9667_v10  ;;  %v4582_v9 = vmax.f32 %v4550_v0, %v4552_v57  ;;  %v9681_v32 = vadd.f32 %v9657_v35, %v4485_v61 }
 0x3b2   : > { %v4488_v43 = vadd.f32 %v4358_v16, %v9579_v22  ;;  %v4353_v63 = vadd.f32 %v4352_v46, %v4127_v1  ;;  %v4154_v59 = vpop.f32.mrf.mxu0  ;;  %v6713_v55 = vpop.f32.mrf.mxu1  ;;  %v4555_v18 = vmax.f32 %v4523_v5, 0.0 }
 0x3b3   : > { %v4645_v58 = vrot.slane %v4631_v29, %v9667_v10  ;;  %v4646_v3 = vcombine.high %v4638_v34, %v4638_v34  ;;  %v5915_v49 = vrot.slane %v4638_v34, 9  ;;  %v4614_v14 = vcombine.high %v4582_v9, %v4582_v9 }
 0x3b4   : > { %v4621_v47 = vrot.slane %v4582_v9, %v9667_v10  ;;  %v4525_v41 = vadd.f32 %v9657_v35, %v4488_v43  ;;  %v9688_v27 = vpop.f32.mrf.mxu0  ;;  %v9690_v22 = vpop.f32.mrf.mxu1  ;;  %v4487_v46 = vadd.f32 %v4353_v63, %v9582_v30 }
 0x3b5   : > { %v4647_v1 = vcombine.high %v4645_v58, %v4645_v58  ;;  %v5916_v48 = vrot.slane %v4646_v3, 9  ;;  %v5917_v11 = vrot.slane %v4645_v58, 9  ;;  %v9692_v23 = vmax.f32 %v4638_v34, %v5915_v49 }
 0x3b6   : > { %v4628_v12 = vrot.slane %v4614_v14, %v9667_v10  ;;  %v4629_v4 = vcombine.high %v4621_v47, %v4621_v47  ;;  %v5911_v2 = vrot.slane %v4621_v47, 9  ;;  %v4557_v0 = vmax.f32 %v4525_v41, 0.0  ;;  %v4159_v44 = vpop.f32.mrf.mxu0  ;;  %v9695_v57 = vpop.f32.mrf.mxu1 }
 0x3b7   : > { %v5918_v61 = vrot.slane %v4647_v1, 9  ;;  %v5147_v5 = vmax.f32 %v4646_v3, %v5916_v48  ;;  %v5148_v16 = vmax.f32 %v4645_v58, %v5917_v11  ;;  %v5289_v41 = vrot.slane %v9692_v23, %v9678_v21 }
 0x3b8   : > { %v4630_v29 = vcombine.high %v4628_v12, %v4628_v12  ;;  %v5912_v9 = vrot.slane %v4629_v4, 9  ;;  %v5913_v34 = vrot.slane %v4628_v12, 9  ;;  %v5142_v43 = vmax.f32 %v4621_v47, %v5911_v2  ;;  %v9698_v59 = vpop.f32.mrf.mxu0  ;;  %v9700_v49 = vpop.f32.mrf.mxu1 }
 0x3b9   : > { %v5149_v14 = vmax.f32 %v4647_v1, %v5918_v61  ;;  %v5293_v44 = vrot.slane %v5147_v5, %v9678_v21  ;;  %v4585_v58 = vmax.f32 %v4555_v18, %v4557_v0  ;;  %v5297_v3 = vrot.slane %v5148_v16, %v9678_v21 }
 0x3ba   : > { %v5914_v30 = vrot.slane %v4630_v29, 9  ;;  %v5143_v63 = vmax.f32 %v4629_v4, %v5912_v9  ;;  %v5144_v48 = vmax.f32 %v4628_v12, %v5913_v34  ;;  %v4164_v11 = vpop.f32.mrf.mxu0  ;;  %v5273_v47 = vrot.slane %v5142_v43, %v9678_v21  ;;  %v6719_v61 = vpop.f32.mrf.mxu1 }
 0x3bb   : > { %v4665_v2 = vcombine.high %v4585_v58, %v4585_v58  ;;  %v4672_v7 = vrot.slane %v4585_v58, %v9667_v10  ;;  %v4524_v1 = vadd.f32 %v9657_v35, %v4487_v46  ;;  %v4368_v0 = vadd.f32 %v6713_v55, %v9661_v13 }
 0x3bc   : > { %v5145_v23 = vmax.f32 %v4630_v29, %v5914_v30  ;;  %v5277_v5 = vrot.slane %v5143_v63, %v9678_v21  ;;  %v5281_v18 = vrot.slane %v5144_v48, %v9678_v21  ;;  %v9712_v16 = vpop.f32.mrf.mxu0  ;;  %v5301_v43 = vrot.slane %v5149_v14, %v9678_v21  ;;  %v4382_v11 = vpop.f32.mrf.mxu1 }
 0x3bd   : > { %v4679_v12 = vrot.slane %v4665_v2, %v9667_v10  ;;  %v4680_v4 = vcombine.high %v4672_v7, %v4672_v7  ;;  %v5923_v9 = vrot.slane %v4672_v7, 9  ;;  %v4556_v34 = vmax.f32 %v4524_v1, 0.0 }
 0x3be   : > { %v5285_v46 = vrot.slane %v5145_v23, %v9678_v21  ;;  %v5527_v58 = vsel %vm5526_vm0, %v5277_v5, %v5273_v47  ;;  %v4490_v29 = vadd.f32 %v4368_v0, %v9584_v39  ;;  %v4169_v30 = vpop.f32.mrf.mxu0  ;;  %v10139_v14 = vmax.f32 %v9681_v32, 0.0 }
 0x3bf   : > { %v5529_v63 = vsel %vm5528_vm1, %v5281_v18, %v5527_v58  ;;  %v4681_v13 = vcombine.high %v4679_v12, %v4679_v12  ;;  %v5924_v55 = vrot.slane %v4680_v4, 9  ;;  %v5925_v48 = vrot.slane %v4679_v12, 9 }
 0x3c0   : > { %v5531_v2 = vsel %vm5530_vm2, %v5285_v46, %v5529_v63  ;;  %v9722_v51 = vmax.f32 %v4672_v7, %v5923_v9  ;;  %v4584_v1 = vmax.f32 %v10139_v14, %v4556_v34  ;;  %v4363_v47 = vadd.f32 %v9690_v22, %v9651_v45  ;;  %v4172_v23 = vpop.f32.mrf.mxu0  ;;  %v6722_v46 = vpop.f32.mrf.mxu1 }
 0x3c1   : > { %v5533_v39 = vsel %vm5532_vm3, %v5289_v41, %v5531_v2  ;;  %v5926_v5 = vrot.slane %v4681_v13, 9  ;;  %v9729_v0 = vmax.f32 %v4680_v4, %v5924_v55  ;;  %v9731_v18 = vmax.f32 %v4679_v12, %v5925_v48 }
 0x3c2   : > { %v5535_v32 = vsel %vm5534_vm4, %v5293_v44, %v5533_v39  ;;  %v4648_v7 = vcombine.high %v4584_v1, %v4584_v1  ;;  %v4655_v9 = vrot.slane %v4584_v1, %v9667_v10  ;;  %v4527_v45 = vadd.f32 %v9657_v35, %v4490_v29  ;;  %v4174_v22 = vpop.f32.mrf.mxu0 }
 0x3c3   : > { %v5537_v41 = vsel %vm5536_vm5, %v5297_v3, %v5535_v32  ;;  %v9742_v4 = vmax.f32 %v4681_v13, %v5926_v5  ;;  %v5321_v12 = vrot.slane %v9722_v51, %v9678_v21  ;;  %v5325_v34 = vrot.slane %v9729_v0, %v9678_v21  ;;  %v4392_v32 = vpop.f32.mrf.mxu1 }
 0x3c4   : > { %v5539_v58 = vsel %vm5538_vm6, %v5301_v43, %v5537_v41  ;;  %v4662_v44 = vrot.slane %v4648_v7, %v9667_v10  ;;  %v4663_v30 = vcombine.high %v4655_v9, %v4655_v9  ;;  %v5919_v63 = vrot.slane %v4655_v9, 9  ;;  %v9750_v55 = vpop.f32.mrf.mxu0 }
 0x3c5   : > { %5597 = vst [vmem:[%s9736_s28] sm:$0xff] %v5539_v58  ;;  %v5329_v3 = vrot.slane %v9731_v18, %v9678_v21  ;;  %v5333_v29 = vrot.slane %v9742_v4, %v9678_v21  ;;  %v4489_v51 = vadd.f32 %v4363_v47, %v9587_v40  ;;  %v4378_v13 = vadd.f32 %v9695_v57, %v9675_v15 }
 0x3c6   : > { %v4664_v48 = vcombine.high %v4662_v44, %v4662_v44  ;;  %v5920_v43 = vrot.slane %v4663_v30, 9  ;;  %v5921_v2 = vrot.slane %v4662_v44, 9  ;;  %v5150_v14 = vmax.f32 %v4655_v9, %v5919_v63  ;;  %v4179_v1 = vpop.f32.mrf.mxu0  ;;  %v9776_v63 = vpop.f32.mrf.mxu1 }
 0x3c7   : > { %v4559_v39 = vmax.f32 %v4527_v45, 0.0  ;;  %v4492_v5 = vadd.f32 %v4378_v13, %v9589_v38  ;;  %v4373_v0 = vadd.f32 %v9700_v49, %v9669_v25  ;;  %v4388_v18 = vadd.f32 %v6719_v61, %v9698_v59 }
 0x3c8   : > { %v5922_v7 = vrot.slane %v4664_v48, 9  ;;  %v5151_v22 = vmax.f32 %v4663_v30, %v5920_v43  ;;  %v5152_v40 = vmax.f32 %v4662_v44, %v5921_v2  ;;  %v4526_v47 = vadd.f32 %v9657_v35, %v4489_v51  ;;  %v9765_v15 = vpop.f32.mrf.mxu0 }
 0x3c9   : > { %v5305_v57 = vrot.slane %v5150_v14, %v9678_v21  ;;  %v4529_v9 = vadd.f32 %v9657_v35, %v4492_v5  ;;  %v4491_v45 = vadd.f32 %v4373_v0, %v9592_v53  ;;  %v4494_v38 = vadd.f32 %v4388_v18, %v9594_v31 }
 0x3ca   : > { %v5153_v41 = vmax.f32 %v4664_v48, %v5922_v7  ;;  %v5309_v25 = vrot.slane %v5151_v22, %v9678_v21  ;;  %v5313_v59 = vrot.slane %v5152_v40, %v9678_v21  ;;  %v4383_v49 = vadd.f32 %v4382_v11, %v9688_v27  ;;  %v4184_v61 = vpop.f32.mrf.mxu0 }
 0x3cb   : > { %v4561_v4 = vmax.f32 %v4529_v9, 0.0  ;;  %v4528_v58 = vadd.f32 %v9657_v35, %v4491_v45  ;;  %v4531_v44 = vadd.f32 %v9657_v35, %v4494_v38  ;;  %v4398_v30 = vadd.f32 %v6722_v46, %v4172_v23 }
 0x3cc   : > { %v5317_v53 = vrot.slane %v5153_v41, %v9678_v21  ;;  %v5540_v31 = vsel %vm5526_vm0, %v5309_v25, %v5305_v57  ;;  %v4493_v51 = vadd.f32 %v4383_v49, %v9597_v20  ;;  %v4393_v13 = vadd.f32 %v4392_v32, %v9712_v16  ;;  %v9782_v48 = vpop.f32.mrf.mxu0  ;;  %v4402_v32 = vpop.f32.mrf.mxu1 }
 0x3cd   : > { %v5541_v27 = vsel %vm5528_vm1, %v5313_v59, %v5540_v31  ;;  %v4558_v11 = vmax.f32 %v4526_v47, 0.0  ;;  %v4587_v43 = vmax.f32 %v4559_v39, %v4561_v4  ;;  %v4560_v2 = vmax.f32 %v4528_v58, 0.0 }
 0x3ce   : > { %v5542_v14 = vsel %vm5530_vm2, %v5317_v53, %v5541_v27  ;;  %v4563_v23 = vmax.f32 %v4531_v44, 0.0  ;;  %v9787_v46 = vadd.f32 %v9657_v35, %v4493_v51  ;;  %v4496_v1 = vadd.f32 %v4398_v30, %v9599_v28  ;;  %v4189_v5 = vpop.f32.mrf.mxu0  ;;  %v9803_v4 = vpop.f32.mrf.mxu1 }
 0x3cf   : > { %v5543_v20 = vsel %vm5532_vm3, %v5321_v12, %v5542_v14  ;;  %v4699_v0 = vcombine.high %v4587_v43, %v4587_v43  ;;  %v4706_v16 = vrot.slane %v4587_v43, %v9667_v10  ;;  %v4586_v18 = vmax.f32 %v4558_v11, %v4560_v2 }
 0x3d0   : > { %v5544_v39 = vsel %vm5534_vm4, %v5325_v34, %v5543_v20  ;;  %v4562_v7 = vmax.f32 %v9787_v46, 0.0  ;;  %v4533_v22 = vadd.f32 %v9657_v35, %v4496_v1  ;;  %v4495_v40 = vadd.f32 %v4393_v13, %v9602_v42  ;;  %v9796_v47 = vpop.f32.mrf.mxu0 }
 0x3d1   : > { %v5545_v28 = vsel %vm5536_vm5, %v5329_v3, %v5544_v39  ;;  %v4713_v12 = vrot.slane %v4699_v0, %v9667_v10  ;;  %v4714_v57 = vcombine.high %v4706_v16, %v4706_v16  ;;  %v5931_v9 = vrot.slane %v4706_v16, 9  ;;  %v4412_v0 = vpop.f32.mrf.mxu1 }
 0x3d2   : > { %v5546_v45 = vsel %vm5538_vm6, %v5333_v29, %v5545_v28  ;;  %v4682_v38 = vcombine.high %v4586_v18, %v4586_v18  ;;  %v4689_v41 = vrot.slane %v4586_v18, %v9667_v10  ;;  %v4565_v34 = vmax.f32 %v4533_v22, 0.0  ;;  %v4194_v25 = vpop.f32.mrf.mxu0 }
 0x3d3   : > { %5598 = vst [vmem:[%s9736_s28 + $0x8] sm:$0xff] %v5546_v45  ;;  %v4715_v59 = vcombine.high %v4713_v12, %v4713_v12  ;;  %v5932_v49 = vrot.slane %v4714_v57, 9  ;;  %v5933_v61 = vrot.slane %v4713_v12, 9  ;;  %v5162_v42 = vmax.f32 %v4706_v16, %v5931_v9 }
 0x3d4   : > { %v4696_v3 = vrot.slane %v4682_v38, %v9667_v10  ;;  %v4697_v58 = vcombine.high %v4689_v41, %v4689_v41  ;;  %v5927_v44 = vrot.slane %v4689_v41, 9  ;;  %v4589_v30 = vmax.f32 %v4563_v23, %v4565_v34  ;;  %v9806_v53 = vpop.f32.mrf.mxu0 }
 0x3d5   : > { %v5934_v29 = vrot.slane %v4715_v59, 9  ;;  %v5163_v31 = vmax.f32 %v4714_v57, %v5932_v49  ;;  %v5164_v51 = vmax.f32 %v4713_v12, %v5933_v61  ;;  %v4532_v13 = vadd.f32 %v9657_v35, %v4495_v40 }
 0x3d6   : > { %v4698_v27 = vcombine.high %v4696_v3, %v4696_v3  ;;  %v5928_v11 = vrot.slane %v4697_v58, 9  ;;  %v5929_v43 = vrot.slane %v4696_v3, 9  ;;  %v5158_v2 = vmax.f32 %v4689_v41, %v5927_v44  ;;  %v4199_v14 = vpop.f32.mrf.mxu0 }
 0x3d7   : > { %v5165_v46 = vmax.f32 %v4715_v59, %v5934_v29  ;;  %v5353_v1 = vrot.slane %v5162_v42, %v9678_v21  ;;  %v5357_v5 = vrot.slane %v5163_v31, %v9678_v21  ;;  %v4733_v20 = vcombine.high %v4589_v30, %v4589_v30  ;;  %v6731_v42 = vpop.f32.mrf.mxu1 }
 0x3d8   : > { %v5361_v23 = vrot.slane %v5164_v51, %v9678_v21  ;;  %v5930_v16 = vrot.slane %v4698_v27, 9  ;;  %v5159_v18 = vmax.f32 %v4697_v58, %v5928_v11  ;;  %v5160_v39 = vmax.f32 %v4696_v3, %v5929_v43  ;;  %v9812_v22 = vpop.f32.mrf.mxu0 }
 0x3d9   : > { %v5337_v40 = vrot.slane %v5158_v2, %v9678_v21  ;;  %v4740_v28 = vrot.slane %v4589_v30, %v9667_v10  ;;  %v4747_v12 = vrot.slane %v4733_v20, %v9667_v10  ;;  %v4564_v57 = vmax.f32 %v4532_v13, 0.0 }
 0x3da   : > { %v5161_v9 = vmax.f32 %v4698_v27, %v5930_v16  ;;  %v5341_v45 = vrot.slane %v5159_v18, %v9678_v21  ;;  %v5345_v38 = vrot.slane %v5160_v39, %v9678_v21  ;;  %v4403_v41 = vadd.f32 %v4402_v32, %v9750_v55  ;;  %v4204_v34 = vpop.f32.mrf.mxu0  ;;  %v4422_v16 = vpop.f32.mrf.mxu1 }
 0x3db   : > { %v4748_v25 = vcombine.high %v4740_v28, %v4740_v28  ;;  %v4749_v59 = vcombine.high %v4747_v12, %v4747_v12  ;;  %v5939_v49 = vrot.slane %v4740_v28, 9  ;;  %v5941_v61 = vrot.slane %v4747_v12, 9 }
 0x3dc   : > { %v5365_v3 = vrot.slane %v5165_v46, %v9678_v21  ;;  %v5349_v58 = vrot.slane %v5161_v9, %v9678_v21  ;;  %v5547_v44 = vsel %vm5526_vm0, %v5341_v45, %v5337_v40  ;;  %v4588_v30 = vmax.f32 %v4562_v7, %v4564_v57  ;;  %v4207_v29 = vpop.f32.mrf.mxu0 }
 0x3dd   : > { %v5548_v31 = vsel %vm5528_vm1, %v5345_v38, %v5547_v44  ;;  %v5940_v51 = vrot.slane %v4748_v25, 9  ;;  %v5942_v13 = vrot.slane %v4749_v59, 9  ;;  %v9824_v27 = vmax.f32 %v4740_v28, %v5939_v49 }
 0x3de   : > { %v5549_v55 = vsel %vm5530_vm2, %v5349_v58, %v5548_v31  ;;  %v9827_v32 = vmax.f32 %v4747_v12, %v5941_v61  ;;  %v4716_v11 = vcombine.high %v4588_v30, %v4588_v30  ;;  %v4723_v43 = vrot.slane %v4588_v30, %v9667_v10  ;;  %v4209_v2 = vpop.f32.mrf.mxu0  ;;  %v6734_v61 = vpop.f32.mrf.mxu1 }
 0x3df   : > { %v5550_v14 = vsel %vm5532_vm3, %v5353_v1, %v5549_v55  ;;  %v9831_v46 = vmax.f32 %v4748_v25, %v5940_v51  ;;  %v9833_v7 = vmax.f32 %v4749_v59, %v5942_v13  ;;  %v4497_v20 = vadd.f32 %v4403_v41, %v9605_v6 }
 0x3e0   : > { %v5551_v18 = vsel %vm5534_vm4, %v5357_v5, %v5550_v14  ;;  %v5385_v39 = vrot.slane %v9824_v27, %v9678_v21  ;;  %v4730_v40 = vrot.slane %v4716_v11, %v9667_v10  ;;  %v4731_v28 = vcombine.high %v4723_v43, %v4723_v43  ;;  %v4212_v12 = vpop.f32.mrf.mxu0 }
 0x3e1   : > { %v5552_v57 = vsel %vm5536_vm5, %v5361_v23, %v5551_v18  ;;  %v5389_v1 = vrot.slane %v9831_v46, %v9678_v21  ;;  %v5393_v9 = vrot.slane %v9827_v32, %v9678_v21  ;;  %v5935_v6 = vrot.slane %v4723_v43, 9 }
 0x3e2   : > { %v5553_v45 = vsel %vm5538_vm6, %v5365_v3, %v5552_v57  ;;  %v4732_v38 = vcombine.high %v4730_v40, %v4730_v40  ;;  %v5936_v5 = vrot.slane %v4731_v28, 9  ;;  %v5937_v41 = vrot.slane %v4730_v40, 9  ;;  %v4214_v34 = vpop.f32.mrf.mxu0 }
 0x3e3   : > { %5599 = vst [vmem:[%s9736_s28 + $0x10] sm:$0xff] %v5553_v45  ;;  %v5166_v25 = vmax.f32 %v4723_v43, %v5935_v6  ;;  %v4534_v59 = vadd.f32 %v9657_v35, %v4497_v20  ;;  %v4408_v23 = vadd.f32 %v9776_v63, %v9765_v15  ;;  %v4413_v49 = vadd.f32 %v4412_v0, %v9782_v48 }
 0x3e4   : > { %v5938_v58 = vrot.slane %v4732_v38, 9  ;;  %v5167_v44 = vmax.f32 %v4731_v28, %v5936_v5  ;;  %v5168_v30 = vmax.f32 %v4730_v40, %v5937_v41  ;;  %v4418_v3 = vadd.f32 %v9803_v4, %v9796_v47  ;;  %v9853_v31 = vpop.f32.mrf.mxu0  ;;  %v4432_v4 = vpop.f32.mrf.mxu1 }
 0x3e5   : > { %v5369_v51 = vrot.slane %v5166_v25, %v9678_v21  ;;  %v4566_v13 = vmax.f32 %v4534_v59, 0.0  ;;  %v4498_v27 = vadd.f32 %v4408_v23, %v9607_v36  ;;  %v4499_v55 = vadd.f32 %v4413_v49, %v9610_v33 }
 0x3e6   : > { %v5169_v32 = vmax.f32 %v4732_v38, %v5938_v58  ;;  %v5373_v15 = vrot.slane %v5167_v44, %v9678_v21  ;;  %v5377_v63 = vrot.slane %v5168_v30, %v9678_v21  ;;  %v4500_v48 = vadd.f32 %v4418_v3, %v9613_v8  ;;  %v4219_v0 = vpop.f32.mrf.mxu0  ;;  %v9880_v41 = vpop.f32.mrf.mxu1 }
 0x3e7   : > { %v4535_v11 = vadd.f32 %v9657_v35, %v4498_v27  ;;  %v4536_v47 = vadd.f32 %v9657_v35, %v4499_v55  ;;  %v4423_v43 = vadd.f32 %v4422_v16, %v9806_v53  ;;  %v4428_v2 = vadd.f32 %v6731_v42, %v9812_v22 }
 0x3e8   : > { %v5381_v36 = vrot.slane %v5169_v32, %v9678_v21  ;;  %v5554_v33 = vsel %vm5526_vm0, %v5373_v15, %v5369_v51  ;;  %v4537_v14 = vadd.f32 %v9657_v35, %v4500_v48  ;;  %v4433_v46 = vadd.f32 %v4432_v4, %v4207_v29  ;;  %v9868_v20 = vpop.f32.mrf.mxu0  ;;  %v4442_v27 = vpop.f32.mrf.mxu1 }
 0x3e9   : > { %v5555_v8 = vsel %vm5528_vm1, %v5377_v63, %v5554_v33  ;;  %v4567_v18 = vmax.f32 %v4535_v11, 0.0  ;;  %v4568_v40 = vmax.f32 %v4536_v47, 0.0  ;;  %v4501_v28 = vadd.f32 %v4423_v43, %v9616_v26 }
 0x3ea   : > { %v5556_v57 = vsel %vm5530_vm2, %v5381_v36, %v5555_v8  ;;  %v4569_v53 = vmax.f32 %v4537_v14, 0.0  ;;  %v4502_v22 = vadd.f32 %v4428_v2, %v9619_v56  ;;  %v4503_v42 = vadd.f32 %v4433_v46, %v9622_v60  ;;  %v4224_v16 = vpop.f32.mrf.mxu0 }
 0x3eb   : > { %v5397_v6 = vrot.slane %v9833_v7, %v9678_v21  ;;  %v5557_v29 = vsel %vm5532_vm3, %v5385_v39, %v5556_v57  ;;  %v4590_v45 = vmax.f32 %v4566_v13, %v4568_v40  ;;  %v4538_v38 = vadd.f32 %v9657_v35, %v4501_v28  ;;  %v9897_v28 = vpop.f32.mrf.mxu1 }
 0x3ec   : > { %v5558_v5 = vsel %vm5534_vm4, %v5389_v1, %v5557_v29  ;;  %v4591_v26 = vmax.f32 %v4567_v18, %v4569_v53  ;;  %v4540_v34 = vadd.f32 %v9657_v35, %v4503_v42  ;;  %v4438_v56 = vadd.f32 %v6734_v61, %v4212_v12  ;;  %v9883_v25 = vpop.f32.mrf.mxu0 }
 0x3ed   : > { %v5559_v60 = vsel %vm5536_vm5, %v5393_v9, %v5558_v5  ;;  %v4750_v59 = vcombine.high %v4590_v45, %v4590_v45  ;;  %v4757_v7 = vrot.slane %v4590_v45, %v9667_v10  ;;  %v4539_v39 = vadd.f32 %v9657_v35, %v4502_v22 }
 0x3ee   : > { %v5560_v23 = vsel %vm5538_vm6, %v5397_v6, %v5559_v60  ;;  %v4767_v49 = vcombine.high %v4591_v26, %v4591_v26  ;;  %v4774_v1 = vrot.slane %v4591_v26, %v9667_v10  ;;  %v4570_v58 = vmax.f32 %v4538_v38, 0.0  ;;  %v4229_v44 = vpop.f32.mrf.mxu0 }
 0x3ef   : > { %5600 = vst [vmem:[%s9736_s28 + $0x18] sm:$0xff] %v5560_v23  ;;  %v4764_v30 = vrot.slane %v4750_v59, %v9667_v10  ;;  %v4765_v12 = vcombine.high %v4757_v7, %v4757_v7  ;;  %v5943_v61 = vrot.slane %v4757_v7, 9  ;;  %v4572_v3 = vmax.f32 %v4540_v34, 0.0  ;;  %v4452_v23 = vpop.f32.mrf.mxu1 }
 0x3f0   : > { %v4781_v9 = vrot.slane %v4767_v49, %v9667_v10  ;;  %v4782_v51 = vcombine.high %v4774_v1, %v4774_v1  ;;  %v5947_v13 = vrot.slane %v4774_v1, 9  ;;  %v4504_v55 = vadd.f32 %v4438_v56, %v9625_v50  ;;  %v9894_v32 = vpop.f32.mrf.mxu0 }
 0x3f1   : > { %v4766_v15 = vcombine.high %v4764_v30, %v4764_v30  ;;  %v5944_v63 = vrot.slane %v4765_v12, 9  ;;  %v5945_v48 = vrot.slane %v4764_v30, 9  ;;  %v5174_v0 = vmax.f32 %v4757_v7, %v5943_v61 }
 0x3f2   : > { %v4783_v11 = vcombine.high %v4781_v9, %v4781_v9  ;;  %v5948_v47 = vrot.slane %v4782_v51, 9  ;;  %v5949_v4 = vrot.slane %v4781_v9, 9  ;;  %v5178_v43 = vmax.f32 %v4774_v1, %v5947_v13  ;;  %v4234_v2 = vpop.f32.mrf.mxu0 }
 0x3f3   : > { %v5946_v36 = vrot.slane %v4766_v15, 9  ;;  %v5175_v33 = vmax.f32 %v4765_v12, %v5944_v63  ;;  %v5176_v14 = vmax.f32 %v4764_v30, %v5945_v48  ;;  %v4571_v46 = vmax.f32 %v4539_v39, 0.0 }
 0x3f4   : > { %v5401_v8 = vrot.slane %v5174_v0, %v9678_v21  ;;  %v5950_v18 = vrot.slane %v4783_v11, 9  ;;  %v5179_v40 = vmax.f32 %v4782_v51, %v5948_v47  ;;  %v5180_v50 = vmax.f32 %v4781_v9, %v5949_v4  ;;  %v9899_v57 = vpop.f32.mrf.mxu0 }
 0x3f5   : > { %v5177_v53 = vmax.f32 %v4766_v15, %v5946_v36  ;;  %v5405_v22 = vrot.slane %v5175_v33, %v9678_v21  ;;  %v5409_v42 = vrot.slane %v5176_v14, %v9678_v21  ;;  %v4592_v16 = vmax.f32 %v4570_v58, %v4572_v3 }
 0x3f6   : > { %v5181_v6 = vmax.f32 %v4783_v11, %v5950_v18  ;;  %v5417_v29 = vrot.slane %v5178_v43, %v9678_v21  ;;  %v5421_v45 = vrot.slane %v5179_v40, %v9678_v21  ;;  %v4541_v38 = vadd.f32 %v9657_v35, %v4504_v55  ;;  %v4239_v5 = vpop.f32.mrf.mxu0  ;;  %v6743_v11 = vpop.f32.mrf.mxu1 }
 0x3f7   : > { %v5413_v26 = vrot.slane %v5177_v53, %v9678_v21  ;;  %v5561_v34 = vsel %vm5526_vm0, %v5405_v22, %v5401_v8  ;;  %v4784_v56 = vcombine.high %v4592_v16, %v4592_v16  ;;  %v4791_v60 = vrot.slane %v4592_v16, %v9667_v10 }
 0x3f8   : > { %v5562_v59 = vsel %vm5528_vm1, %v5409_v42, %v5561_v34  ;;  %v5425_v7 = vrot.slane %v5180_v50, %v9678_v21  ;;  %v5429_v39 = vrot.slane %v5181_v6, %v9678_v21  ;;  %v4573_v49 = vmax.f32 %v4541_v38, 0.0  ;;  %v9912_v1 = vpop.f32.mrf.mxu0  ;;  %v4462_v22 = vpop.f32.mrf.mxu1 }
 0x3f9   : > { %v5563_v58 = vsel %vm5530_vm2, %v5413_v26, %v5562_v59  ;;  %v4798_v44 = vrot.slane %v4784_v56, %v9667_v10  ;;  %v4799_v30 = vcombine.high %v4791_v60, %v4791_v60  ;;  %v5951_v12 = vrot.slane %v4791_v60, 9 }
 0x3fa   : > { %v5564_v61 = vsel %vm5532_vm3, %v5417_v29, %v5563_v58  ;;  %v4593_v3 = vmax.f32 %v4571_v46, %v4573_v49  ;;  %v4443_v9 = vadd.f32 %v4442_v27, %v9853_v31  ;;  %v4448_v51 = vadd.f32 %v9880_v41, %v9868_v20  ;;  %v4244_v13 = vpop.f32.mrf.mxu0  ;;  %v6746_v59 = vpop.f32.mrf.mxu1 }
 0x3fb   : > { %v5565_v55 = vsel %vm5534_vm4, %v5421_v45, %v5564_v61  ;;  %v4800_v15 = vcombine.high %v4798_v44, %v4798_v44  ;;  %v5952_v63 = vrot.slane %v4799_v30, 9  ;;  %v5953_v48 = vrot.slane %v4798_v44, 9 }
 0x3fc   : > { %v5566_v0 = vsel %vm5536_vm5, %v5425_v7, %v5565_v55  ;;  %v5182_v47 = vmax.f32 %v4791_v60, %v5951_v12  ;;  %v4801_v4 = vcombine.high %v4593_v3, %v4593_v3  ;;  %v4808_v43 = vrot.slane %v4593_v3, %v9667_v10  ;;  %v4247_v2 = vpop.f32.mrf.mxu0 }
 0x3fd   : > { %v5567_v31 = vsel %vm5538_vm6, %v5429_v39, %v5566_v0  ;;  %v5954_v27 = vrot.slane %v4800_v15, 9  ;;  %v5183_v36 = vmax.f32 %v4799_v30, %v5952_v63  ;;  %v5184_v20 = vmax.f32 %v4798_v44, %v5953_v48  ;;  %v4472_v63 = vpop.f32.mrf.mxu1 }
 0x3fe   : > { %5601 = vst [vmem:[%s9736_s28 + $0x20] sm:$0xff] %v5567_v31  ;;  %v4815_v41 = vrot.slane %v4801_v4, %v9667_v10  ;;  %v4816_v33 = vcombine.high %v4808_v43, %v4808_v43  ;;  %v5955_v14 = vrot.slane %v4808_v43, 9  ;;  %v4505_v46 = vadd.f32 %v4443_v9, %v9628_v37  ;;  %v4249_v8 = vpop.f32.mrf.mxu0 }
 0x3ff   : > { %v5185_v18 = vmax.f32 %v4800_v15, %v5954_v27  ;;  %v5433_v40 = vrot.slane %v5182_v47, %v9678_v21  ;;  %v5437_v50 = vrot.slane %v5183_v36, %v9678_v21  ;;  %v5441_v53 = vrot.slane %v5184_v20, %v9678_v21 }
 0x400   : > { %v4817_v42 = vcombine.high %v4815_v41, %v4815_v41  ;;  %v5956_v16 = vrot.slane %v4816_v33, 9  ;;  %v5957_v6 = vrot.slane %v4815_v41, 9  ;;  %v5186_v29 = vmax.f32 %v4808_v43, %v5955_v14  ;;  %v4252_v45 = vpop.f32.mrf.mxu0 }
 0x401   : > { %v5445_v38 = vrot.slane %v5185_v18, %v9678_v21  ;;  %v5568_v5 = vsel %vm5526_vm0, %v5437_v50, %v5433_v40  ;;  %v4506_v37 = vadd.f32 %v4448_v51, %v9631_v19  ;;  %v4542_v58 = vadd.f32 %v9657_v35, %v4505_v46 }
 0x402   : > { %v5569_v26 = vsel %vm5528_vm1, %v5441_v53, %v5568_v5  ;;  %v5958_v34 = vrot.slane %v4817_v42, 9  ;;  %v5187_v56 = vmax.f32 %v4816_v33, %v5956_v16  ;;  %v5188_v60 = vmax.f32 %v4815_v41, %v5957_v6  ;;  %v4254_v7 = vpop.f32.mrf.mxu0 }
 0x403   : > { %v5449_v39 = vrot.slane %v5186_v29, %v9678_v21  ;;  %v5570_v49 = vsel %vm5530_vm2, %v5445_v38, %v5569_v26  ;;  %v4453_v44 = vadd.f32 %v4452_v23, %v9883_v25  ;;  %v4458_v61 = vadd.f32 %v9897_v28, %v9894_v32 }
 0x404   : > { %v5189_v30 = vmax.f32 %v4817_v42, %v5958_v34  ;;  %v5453_v12 = vrot.slane %v5187_v56, %v9678_v21  ;;  %v5457_v19 = vrot.slane %v5188_v60, %v9678_v21  ;;  %v4543_v9 = vadd.f32 %v9657_v35, %v4506_v37 }
 0x405   : > { %v5571_v3 = vsel %vm5532_vm3, %v5449_v39, %v5570_v49  ;;  %v4507_v51 = vadd.f32 %v4453_v44, %v9634_v17  ;;  %v4463_v13 = vadd.f32 %v4462_v22, %v9899_v57  ;;  %v4508_v23 = vadd.f32 %v4458_v61, %v9637_v54 }
 0x406   : > { %v5461_v55 = vrot.slane %v5189_v30, %v9678_v21  ;;  %v5572_v25 = vsel %vm5534_vm4, %v5453_v12, %v5571_v3  ;;  %v4468_v15 = vadd.f32 %v6743_v11, %v9912_v1  ;;  %v4473_v0 = vadd.f32 %v4472_v63, %v4247_v2 }
 0x407   : > { %v5573_v32 = vsel %vm5536_vm5, %v5457_v19, %v5572_v25  ;;  %v4544_v28 = vadd.f32 %v9657_v35, %v4507_v51  ;;  %v4509_v48 = vadd.f32 %v4463_v13, %v9640_v52  ;;  %v4545_v57 = vadd.f32 %v9657_v35, %v4508_v23  ;;  %v10140_v52 = vld [vmem:[#allocation17_spill] sm:$0xff] }
 0x408   : > { %v5574_v17 = vsel %vm5538_vm6, %v5461_v55, %v5573_v32  ;;  %v4510_v47 = vadd.f32 %v4468_v15, %v9643_v24  ;;  %v4478_v4 = vadd.f32 %v6746_v59, %v4252_v45  ;;  %v4574_v43 = vmax.f32 %v4542_v58, 0.0 }
 0x409   : > { %5602 = vst [vmem:[%s9736_s28 + $0x28] sm:$0xff] %v5574_v17  ;;  %v4576_v54 = vmax.f32 %v4544_v28, 0.0  ;;  %v4546_v1 = vadd.f32 %v9657_v35, %v4509_v48  ;;  %v4511_v11 = vadd.f32 %v4473_v0, %v9646_v62  ;;  %v4575_v31 = vmax.f32 %v4543_v9, 0.0 }
 0x40a   : > { %v4577_v27 = vmax.f32 %v4545_v57, 0.0  ;;  %v4547_v36 = vadd.f32 %v9657_v35, %v4510_v47  ;;  %v4512_v2 = vadd.f32 %v4478_v4, %v10140_v52 }
 0x40b   : > { %v4594_v20 = vmax.f32 %v4574_v43, %v4576_v54  ;;  %v4548_v41 = vadd.f32 %v9657_v35, %v4511_v11  ;;  %v4578_v8 = vmax.f32 %v4546_v1, 0.0 }
 0x40c   : > { %v4595_v33 = vmax.f32 %v4575_v31, %v4577_v27  ;;  %v4549_v24 = vadd.f32 %v9657_v35, %v4512_v2  ;;  %v4579_v50 = vmax.f32 %v4547_v36, 0.0 }
 0x40d   : > { %v4818_v14 = vcombine.high %v4594_v20, %v4594_v20  ;;  %v4825_v46 = vrot.slane %v4594_v20, %v9667_v10  ;;  %v4580_v18 = vmax.f32 %v4548_v41, 0.0 }
 0x40e   : > { %v4835_v40 = vcombine.high %v4595_v33, %v4595_v33  ;;  %v4842_v62 = vrot.slane %v4595_v33, %v9667_v10  ;;  %v4581_v53 = vmax.f32 %v4549_v24, 0.0 }
 0x40f   : > { %v4832_v22 = vrot.slane %v4818_v14, %v9667_v10  ;;  %v4833_v42 = vcombine.high %v4825_v46, %v4825_v46  ;;  %v5959_v16 = vrot.slane %v4825_v46, 9  ;;  %v4596_v6 = vmax.f32 %v4578_v8, %v4580_v18 }
 0x410   : > { %v4849_v29 = vrot.slane %v4835_v40, %v9667_v10  ;;  %v4850_v45 = vcombine.high %v4842_v62, %v4842_v62  ;;  %v5963_v38 = vrot.slane %v4842_v62, 9  ;;  %v4597_v35 = vmax.f32 %v4579_v50, %v4581_v53 }
 0x411   : > { %v4834_v5 = vcombine.high %v4832_v22, %v4832_v22  ;;  %v5960_v37 = vrot.slane %v4833_v42, 9  ;;  %v5961_v26 = vrot.slane %v4832_v22, 9  ;;  %v5190_v34 = vmax.f32 %v4825_v46, %v5959_v16 }
 0x412   : > { %v4851_v56 = vcombine.high %v4849_v29, %v4849_v29  ;;  %v5964_v60 = vrot.slane %v4850_v45, 9  ;;  %v5965_v59 = vrot.slane %v4849_v29, 9  ;;  %v5194_v7 = vmax.f32 %v4842_v62, %v5963_v38 }
 0x413   : > { %v5962_v39 = vrot.slane %v4834_v5, 9  ;;  %v5191_v49 = vmax.f32 %v4833_v42, %v5960_v37  ;;  %v5192_v58 = vmax.f32 %v4832_v22, %v5961_v26  ;;  %v5465_v44 = vrot.slane %v5190_v34, %v9678_v21 }
 0x414   : > { %v5966_v30 = vrot.slane %v4851_v56, 9  ;;  %v5195_v12 = vmax.f32 %v4850_v45, %v5964_v60  ;;  %v5196_v19 = vmax.f32 %v4849_v29, %v5965_v59  ;;  %v5481_v61 = vrot.slane %v5194_v7, %v9678_v21 }
 0x415   : > { %v5193_v3 = vmax.f32 %v4834_v5, %v5962_v39  ;;  %v5469_v9 = vrot.slane %v5191_v49, %v9678_v21  ;;  %v5473_v51 = vrot.slane %v5192_v58, %v9678_v21  ;;  %v4852_v13 = vcombine.high %v4596_v6, %v4596_v6 }
 0x416   : > { %v5197_v55 = vmax.f32 %v4851_v56, %v5966_v30  ;;  %v5485_v25 = vrot.slane %v5195_v12, %v9678_v21  ;;  %v5489_v23 = vrot.slane %v5196_v19, %v9678_v21  ;;  %v4859_v15 = vrot.slane %v4596_v6, %v9667_v10 }
 0x417   : > { %v5477_v63 = vrot.slane %v5193_v3, %v9678_v21  ;;  %v5575_v32 = vsel %vm5526_vm0, %v5469_v9, %v5465_v44  ;;  %v4866_v28 = vrot.slane %v4852_v13, %v9667_v10  ;;  %v4869_v48 = vcombine.high %v4597_v35, %v4597_v35 }
 0x418   : > { %v5576_v0 = vsel %vm5528_vm1, %v5473_v51, %v5575_v32  ;;  %v5493_v17 = vrot.slane %v5197_v55, %v9678_v21  ;;  %v4867_v57 = vcombine.high %v4859_v15, %v4859_v15  ;;  %v5967_v47 = vrot.slane %v4859_v15, 9 }
 0x419   : > { %v5577_v4 = vsel %vm5530_vm2, %v5477_v63, %v5576_v0  ;;  %v4868_v43 = vcombine.high %v4866_v28, %v4866_v28  ;;  %v5969_v54 = vrot.slane %v4866_v28, 9  ;;  %v4876_v1 = vrot.slane %v4597_v35, %v9667_v10 }
 0x41a   : > { %v5578_v11 = vsel %vm5532_vm3, %v5481_v61, %v5577_v4  ;;  %v5968_v31 = vrot.slane %v4867_v57, 9  ;;  %v5198_v27 = vmax.f32 %v4859_v15, %v5967_v47  ;;  %v4883_v36 = vrot.slane %v4869_v48, %v9667_v10 }
 0x41b   : > { %v5579_v52 = vsel %vm5534_vm4, %v5485_v25, %v5578_v11  ;;  %v5970_v2 = vrot.slane %v4868_v43, 9  ;;  %v5200_v20 = vmax.f32 %v4866_v28, %v5969_v54  ;;  %v4884_v41 = vcombine.high %v4876_v1, %v4876_v1 }
 0x41c   : > { %v5580_v33 = vsel %vm5536_vm5, %v5489_v23, %v5579_v52  ;;  %v5199_v24 = vmax.f32 %v4867_v57, %v5968_v31  ;;  %v5497_v14 = vrot.slane %v5198_v27, %v9678_v21  ;;  %v4885_v46 = vcombine.high %v4883_v36, %v4883_v36 }
 0x41d   : > { %v5581_v8 = vsel %vm5538_vm6, %v5493_v17, %v5580_v33  ;;  %v5201_v18 = vmax.f32 %v4868_v43, %v5970_v2  ;;  %v5505_v40 = vrot.slane %v5200_v20, %v9678_v21  ;;  %v5971_v62 = vrot.slane %v4876_v1, 9 }
 0x41e   : > { %5603 = vst [vmem:[%s9736_s28 + $0x30] sm:$0xff] %v5581_v8  ;;  %v5501_v10 = vrot.slane %v5199_v24, %v9678_v21  ;;  %v5972_v50 = vrot.slane %v4884_v41, 9  ;;  %v5973_v53 = vrot.slane %v4883_v36, 9  ;;  %v5974_v22 = vrot.slane %v4885_v46, 9 }
 0x41f   : > { %v5509_v42 = vrot.slane %v5201_v18, %v9678_v21  ;;  %v5202_v16 = vmax.f32 %v4876_v1, %v5971_v62 }
 0x420   : > { %v5582_v6 = vsel %vm5526_vm0, %v5501_v10, %v5497_v14  ;;  %v5203_v29 = vmax.f32 %v4884_v41, %v5972_v50  ;;  %v5204_v45 = vmax.f32 %v4883_v36, %v5973_v53  ;;  %v5205_v38 = vmax.f32 %v4885_v46, %v5974_v22 }
 0x421   : > { %v5583_v35 = vsel %vm5528_vm1, %v5505_v40, %v5582_v6  ;;  %v5513_v5 = vrot.slane %v5202_v16, %v9678_v21 }
 0x422   : > { %v5517_v37 = vrot.slane %v5203_v29, %v9678_v21  ;;  %v5521_v26 = vrot.slane %v5204_v45, %v9678_v21  ;;  %v5525_v34 = vrot.slane %v5205_v38, %v9678_v21  ;;  %v5584_v56 = vsel %vm5530_vm2, %v5509_v42, %v5583_v35 }
 0x423   : > { %v5585_v60 = vsel %vm5532_vm3, %v5513_v5, %v5584_v56 }
 0x424   : > { %v5586_v59 = vsel %vm5534_vm4, %v5517_v37, %v5585_v60 }
 0x425   : > { %v5587_v7 = vsel %vm5536_vm5, %v5521_v26, %v5586_v59 }
 0x426   : > { %v5588_v39 = vsel %vm5538_vm6, %v5525_v34, %v5587_v7 }
 0x427   : > { %5604 = vst [vmem:[%s9736_s28 + $0x38] sm:$0xff] %v5588_v39 }
 0x428 PF: > { %s13_s12 = sadd.s32 1, %s6896_s12  }
 0x429   : > { %p10_p4 = scmp.ge.s32.totalorder %s13_s12, 4  }
 0x42b   :  { %12 = sbr.rel (!%p10_p4) target bundleno = 1 (0x1), region = 71 }

</bundles_post_ra>
